<compile_context>
chip_gen: v7x
topology: tpu7x:2x2x1
jax: 0.10.0
libtpu: 0.0.40
codegen_flags: <defaults>
</compile_context>

<pallas_src>
import jax
import jax.numpy as jnp
import numpy as np
from jax import lax
from jax.experimental import pallas as pl
from jax.experimental.pallas import tpu as pltpu

LN_EPS = 1e-5  # PyTorch nn.LayerNorm default


def _layer_norm_2d(y, gamma, beta):
    """LayerNorm over trailing (L, D) dims per batch element (single sweep)."""
    n_inv = 1.0 / float(y.shape[-2] * y.shape[-1])
    s = jnp.sum(jnp.sum(y, axis=-1, keepdims=True), axis=-2, keepdims=True)
    ss = jnp.sum(jnp.sum(y * y, axis=-1, keepdims=True), axis=-2, keepdims=True)
    mu = s * n_inv
    var = ss * n_inv - mu * mu
    return (y - mu) * lax.rsqrt(var + LN_EPS) * gamma + beta


def fuzzy_encoder_stack_kernel(x_ref, wq_ref, wc_ref, a_ref, bm_ref,
                               w1_ref, w2_ref, vec_ref, ln_ref, o_ref):
    bt, L, D = x_ref.shape
    n_layers = wq_ref.shape[0]
    R = wc_ref.shape[1]
    F = w1_ref.shape[2]
    mxu = wq_ref.dtype  # MXU operand dtype for the big matmuls (f32 accumulation)

    x3 = x_ref[...].astype(jnp.float32)          # (bt, L, D) activation carry (in vregs)

    for l in range(n_layers):                    # static, fully unrolled layer loop
        wq = wq_ref[l]                           # (D, D)
        wc = wc_ref[l]                           # (R, L)
        A = a_ref[l]                             # (D, R) f32
        Bm = bm_ref[l]                           # (D, R) f32
        w1 = w1_ref[l]                           # (D, F)
        w2 = w2_ref[l]                           # (F, D)
        vec = vec_ref[l]                         # (5, Vmax) f32 packed small vectors
        bq = vec[0:1, :D]                        # (1, D)
        bc = vec[1:2, :R]                        # (1, R)
        c3 = vec[2:3, :R]                        # (1, R)
        b1 = vec[3:4, :F]                        # (1, F)
        b2 = vec[4:5, :D]                        # (1, D)
        ln_l = ln_ref[l]                         # (4, L, D) f32
        g1, be1, g2, be2 = ln_l[0], ln_l[1], ln_l[2], ln_l[3]

        x_mxu = x3.astype(mxu)                   # hoisted single cast of the activation
        x2 = x_mxu.reshape(bt * L, D)            # fold batch into the MXU M dimension

        # ---------------- fuzzy attention ----------------
        q = jnp.dot(x2, wq, preferred_element_type=jnp.float32) + bq       # (bt*L, D)

        # membership in f32 (tiny matmuls; avoids bf16 cancellation near centers)
        t1 = jnp.dot(q * q, A, preferred_element_type=jnp.float32)
        t2 = jnp.dot(q, Bm, preferred_element_type=jnp.float32)
        z = (-0.5 / D) * (t1 - 2.0 * t2 + c3)                               # (bt*L, R)

        z = z - jnp.max(z, axis=-1, keepdims=True)
        e = jnp.exp(z)
        fss = e * pl.reciprocal(jnp.sum(e, axis=-1, keepdims=True), approx=True)
        # TODO(synk): dropout on Fss omitted (module default p=0.0 / eval mode).

        # attn = Fss @ (Wc x + bc) == (Fss Wc) x + (Fss bc)
        g_fold = jnp.dot(fss.astype(mxu), wc, preferred_element_type=jnp.float32)
        bias_c = jnp.sum(fss * bc, axis=-1, keepdims=True)                  # (bt*L, 1)
        g3 = g_fold.reshape(bt, L, L)                                       # f32
        if L < 128:
            # tiny per-batch contraction: VPU broadcast-multiply + sublane reduce
            attn = jnp.sum(g3[..., None] * x3[:, None, :, :], axis=2)       # (bt, L, D)
        else:
            # real sizes: batched MXU contraction (L a multiple of 128/256)
            attn = jnp.einsum('blm,bmd->bld', g3.astype(mxu), x_mxu,
                              preferred_element_type=jnp.float32)
        attn = attn + bias_c.reshape(bt, L, 1)

        # -------- residual + LayerNorm([L, D]) --------
        y = _layer_norm_2d(x3 + attn, g1, be1)

        # ---------------- feed-forward (batch-folded) ----------------
        y2 = y.astype(mxu).reshape(bt * L, D)
        h = jnp.maximum(jnp.dot(y2, w1, preferred_element_type=jnp.float32) + b1, 0.0)
        f = jnp.dot(h.astype(mxu), w2, preferred_element_type=jnp.float32) + b2
        # TODO(synk): FFN dropouts omitted (p=0.0 / eval mode).

        # -------- residual + LayerNorm([L, D]) --------
        x3 = _layer_norm_2d(y + f.reshape(bt, L, D), g2, be2)

    o_ref[...] = x3.astype(o_ref.dtype)          # single HBM writeback per batch block


def _vmem_limit_bytes():
    # Generation-aware cap (not a reservation): ~3/4 of physical VMEM, capped at
    # 100 MiB for v5e/v6e (128 MiB physical); naturally lower on v7x (64 MiB).
    try:
        cap = int(pltpu.get_tpu_info().vmem_capacity_bytes)
    except Exception:
        cap = 64 * 1024 * 1024
    return int(min((cap * 3) // 4, 100 * 1024 * 1024))


def fuzzy_attention_encoder(x, layer_params, *, block_batch=None,
                            mxu_dtype=jnp.bfloat16):
    """Full stacked Fuzzy_Attention_Encoder forward in ONE fused pallas_call."""
    B, L, D = x.shape
    R = layer_params[0]["centers"].shape[0]
    F_ = layer_params[0]["w1"].shape[1]

    # Batch tile: bt = B by default (1-TC v5e/v6e: maximize folded MXU M = bt*L and
    # use a single grid step).  On v7x pass block_batch = B // 2 to feed both
    # TensorCores via the "parallel" axis (keep n_bblocks even) and re-check VMEM.
    bt = B if block_batch is None else max(1, min(block_batch, B))
    while B % bt:
        bt -= 1
    n_bblocks = B // bt

    f32 = jnp.float32

    def stack(fn, dtype=None):
        a = jnp.stack([fn(p) for p in layer_params], axis=0)
        return a if dtype is None else a.astype(dtype)

    iw2 = [1.0 / (p["widths"] * p["widths"]) for p in layer_params]
    wq = stack(lambda p: p["wq_t"], mxu_dtype)                            # (Nl, D, D)
    wc = stack(lambda p: p["wc"], mxu_dtype)                              # (Nl, R, L)
    w1 = stack(lambda p: p["w1"], mxu_dtype)                              # (Nl, D, F)
    w2 = stack(lambda p: p["w2"], mxu_dtype)                              # (Nl, F, D)
    # membership tensors kept in f32 (tiny; avoids bf16 cancellation)
    a_ = jnp.stack([jnp.transpose(w) for w in iw2]).astype(f32)           # (Nl, D, R)
    bm = jnp.stack([jnp.transpose(p["centers"] * w)
                    for p, w in zip(layer_params, iw2)]).astype(f32)      # (Nl, D, R)
    c3 = [jnp.sum(p["centers"] * p["centers"] * w, axis=-1)
          for p, w in zip(layer_params, iw2)]                             # (R,) per layer

    # pack small per-layer vectors / LN params -> fewer DMA descriptors per call
    vmax = max(D, R, F_)
    pad = lambda v: jnp.pad(v.astype(f32), (0, vmax - v.shape[0]))
    vecs = jnp.stack([jnp.stack([pad(p["bq"]), pad(p["bc"]), pad(c3_l),
                                 pad(p["b1"]), pad(p["b2"])], axis=0)
                      for p, c3_l in zip(layer_params, c3)], axis=0)      # (Nl, 5, Vmax)
    ln = jnp.stack([jnp.stack([p["g1"], p["beta1"], p["g2"], p["beta2"]], axis=0)
                    for p in layer_params], axis=0).astype(f32)           # (Nl, 4, L, D)

    def whole(arr):
        n = arr.ndim

        def imap(b):
            return (0,) * n

        return pl.BlockSpec(arr.shape, imap)

    in_specs = [
        pl.BlockSpec((bt, L, D), lambda b: (b, 0, 0)),   # x (one fetch per batch block)
        whole(wq), whole(wc), whole(a_), whole(bm),
        whole(w1), whole(w2), whole(vecs), whole(ln),
    ]
    out_spec = pl.BlockSpec((bt, L, D), lambda b: (b, 0, 0))

    return pl.pallas_call(
        fuzzy_encoder_stack_kernel,
        out_shape=jax.ShapeDtypeStruct((B, L, D), x.dtype),
        grid=(n_bblocks,),
        in_specs=in_specs,
        out_specs=out_spec,
        compiler_params=pltpu.CompilerParams(
            dimension_semantics=("parallel",),
            vmem_limit_bytes=_vmem_limit_bytes(),
        ),
    )(x, wq, wc, a_, bm, w1, w2, vecs, ln)


# ---------------------------------------------------------------------------
# Deterministic parameter init (shapes match the PyTorch module's __init__).
# ---------------------------------------------------------------------------
def init_layer_params(key, L, D, R, F_):
    ks = jax.random.split(key, 10)

    def unif(k, shape, fan_in):
        bound = 1.0 / np.sqrt(fan_in)
        return jax.random.uniform(k, shape, jnp.float32, -bound, bound)

    return dict(
        wq_t=unif(ks[0], (D, D), D),        # to_q weight, stored transposed (in, out)
        bq=unif(ks[1], (D,), D),
        wc=unif(ks[2], (R, L), L),          # to_c weight, (out, in) as in PyTorch
        bc=unif(ks[3], (R,), L),
        centers=jax.random.uniform(ks[4], (R, D), jnp.float32, 0.0, 1.0),
        widths=jax.random.uniform(ks[5], (R, D), jnp.float32, 0.5, 1.5),
        w1=unif(ks[6], (D, F_), D),         # ff linear1 weight, transposed
        b1=unif(ks[7], (F_,), D),
        w2=unif(ks[8], (F_, D), F_),        # ff linear2 weight, transposed
        b2=unif(ks[9], (D,), F_),
        g1=jnp.ones((L, D), jnp.float32),
        beta1=jnp.zeros((L, D), jnp.float32),
        g2=jnp.ones((L, D), jnp.float32),
        beta2=jnp.zeros((L, D), jnp.float32),
    )


# ---------------------------------------------------------------------------
# Pure-JAX f32 reference mirroring the PyTorch forward (for correctness check).
# ---------------------------------------------------------------------------
def ref_layer(x, p):
    q = x @ p["wq_t"] + p["bq"]
    dist = jnp.abs(q[:, :, None, :] - p["centers"][None, None])          # (B, L, R, D)
    prot = dist / p["widths"][None, None]
    z = jnp.mean(-0.5 * prot * prot, axis=-1)                            # (B, L, R)
    fss = jax.nn.softmax(z, axis=-1)
    conq = jnp.einsum('rl,bld->brd', p["wc"], x) + p["bc"][None, :, None]
    attn = jnp.einsum('blr,brd->bld', fss, conq)
    y = x + attn
    mu = jnp.mean(y, axis=(1, 2), keepdims=True)
    var = jnp.mean((y - mu) ** 2, axis=(1, 2), keepdims=True)
    y = (y - mu) / jnp.sqrt(var + LN_EPS) * p["g1"] + p["beta1"]
    h = jnp.maximum(y @ p["w1"] + p["b1"], 0.0)
    f = h @ p["w2"] + p["b2"]
    y2 = y + f
    mu2 = jnp.mean(y2, axis=(1, 2), keepdims=True)
    var2 = jnp.mean((y2 - mu2) ** 2, axis=(1, 2), keepdims=True)
    return (y2 - mu2) / jnp.sqrt(var2 + LN_EPS) * p["g2"] + p["beta2"]


if __name__ == "__main__":
    # input_shape = (B, L, D); n_rules defaults to L; dim_feedforward kept small.
    B, L, D = 4, 8, 32
    R = L
    F_ = 64
    n_layers = 2

    key = jax.random.PRNGKey(0)
    kx, *klayers = jax.random.split(key, n_layers + 1)
    x = jax.random.normal(kx, (B, L, D), jnp.float32)
    layer_params = [init_layer_params(k, L, D, R, F_) for k in klayers]

    # PyTorch-faithful f32 reference of the whole stack.
    ref = x
    for p in layer_params:
        ref = ref_layer(ref, p)
    ref = np.asarray(jax.block_until_ready(ref))

    # 1) f32 MXU operands: validates kernel structure / math (approx reciprocal
    #    in the softmax is the only deviation from exact f32).
    out_f32 = jax.block_until_ready(
        fuzzy_attention_encoder(x, layer_params, mxu_dtype=jnp.float32))
    np.testing.assert_allclose(np.asarray(out_f32), ref, rtol=1e-2, atol=1e-2)

    # 2) bf16 MXU operands with f32 accumulation (the performance configuration);
    #    membership and attention application stay f32, so error is small.
    out_bf16 = jax.block_until_ready(
        fuzzy_attention_encoder(x, layer_params, mxu_dtype=jnp.bfloat16))
    np.testing.assert_allclose(np.asarray(out_bf16), ref, rtol=5e-2, atol=5e-2)

    print("KERNEL_OK")
</pallas_src>

<mosaic_0001>
module attributes {stable_mosaic.version = 11 : i64} {
  func.func @fuzzy_encoder_stack_kernel(%arg0: i32, %arg1: memref<4x8x32xf32, #tpu.memory_space<vmem>>, %arg2: memref<2x32x32xf32, #tpu.memory_space<vmem>>, %arg3: memref<2x8x8xf32, #tpu.memory_space<vmem>>, %arg4: memref<2x32x8xf32, #tpu.memory_space<vmem>>, %arg5: memref<2x32x8xf32, #tpu.memory_space<vmem>>, %arg6: memref<2x32x64xf32, #tpu.memory_space<vmem>>, %arg7: memref<2x64x32xf32, #tpu.memory_space<vmem>>, %arg8: memref<2x5x64xf32, #tpu.memory_space<vmem>>, %arg9: memref<2x4x8x32xf32, #tpu.memory_space<vmem>>, %arg10: memref<4x8x32xf32, #tpu.memory_space<vmem>>) attributes {dimension_semantics = [#tpu.dimension_semantics<parallel>], iteration_bounds = array<i64: 1>, scalar_prefetch = 0 : i64, scratch_operands = 0 : i64, tpu.core_type = #tpu.core_type<tc>, window_params = [{transform_indices = @transform_0, window_bounds = array<i64: 4, 8, 32>}, {pipeline_mode = #tpu.pipeline_mode<synchronous>, transform_indices = @transform_1, window_bounds = array<i64: 2, 32, 32>}, {pipeline_mode = #tpu.pipeline_mode<synchronous>, transform_indices = @transform_2, window_bounds = array<i64: 2, 8, 8>}, {pipeline_mode = #tpu.pipeline_mode<synchronous>, transform_indices = @transform_3, window_bounds = array<i64: 2, 32, 8>}, {pipeline_mode = #tpu.pipeline_mode<synchronous>, transform_indices = @transform_4, window_bounds = array<i64: 2, 32, 8>}, {pipeline_mode = #tpu.pipeline_mode<synchronous>, transform_indices = @transform_5, window_bounds = array<i64: 2, 32, 64>}, {pipeline_mode = #tpu.pipeline_mode<synchronous>, transform_indices = @transform_6, window_bounds = array<i64: 2, 64, 32>}, {pipeline_mode = #tpu.pipeline_mode<synchronous>, transform_indices = @transform_7, window_bounds = array<i64: 2, 5, 64>}, {pipeline_mode = #tpu.pipeline_mode<synchronous>, transform_indices = @transform_8, window_bounds = array<i64: 2, 4, 8, 32>}, {transform_indices = @transform_9, window_bounds = array<i64: 4, 8, 32>}]} {
    %c0 = arith.constant 0 : index
    %c0_0 = arith.constant 0 : index
    %c0_1 = arith.constant 0 : index
    %0 = vector.load %arg1[%c0, %c0_0, %c0_1] : memref<4x8x32xf32, #tpu.memory_space<vmem>>, vector<4x8x32xf32>
    %c0_2 = arith.constant 0 : index
    %c0_3 = arith.constant 0 : index
    %c0_4 = arith.constant 0 : index
    %1 = vector.load %arg2[%c0_2, %c0_3, %c0_4] : memref<2x32x32xf32, #tpu.memory_space<vmem>>, vector<1x32x32xf32>
    %2 = vector.shape_cast %1 : vector<1x32x32xf32> to vector<32x32xf32>
    %c0_5 = arith.constant 0 : index
    %c0_6 = arith.constant 0 : index
    %c0_7 = arith.constant 0 : index
    %3 = vector.load %arg3[%c0_5, %c0_6, %c0_7] : memref<2x8x8xf32, #tpu.memory_space<vmem>>, vector<1x8x8xf32>
    %4 = vector.shape_cast %3 : vector<1x8x8xf32> to vector<8x8xf32>
    %c0_8 = arith.constant 0 : index
    %c0_9 = arith.constant 0 : index
    %c0_10 = arith.constant 0 : index
    %5 = vector.load %arg4[%c0_8, %c0_9, %c0_10] : memref<2x32x8xf32, #tpu.memory_space<vmem>>, vector<1x32x8xf32>
    %6 = vector.shape_cast %5 : vector<1x32x8xf32> to vector<32x8xf32>
    %c0_11 = arith.constant 0 : index
    %c0_12 = arith.constant 0 : index
    %c0_13 = arith.constant 0 : index
    %7 = vector.load %arg5[%c0_11, %c0_12, %c0_13] : memref<2x32x8xf32, #tpu.memory_space<vmem>>, vector<1x32x8xf32>
    %8 = vector.shape_cast %7 : vector<1x32x8xf32> to vector<32x8xf32>
    %c0_14 = arith.constant 0 : index
    %c0_15 = arith.constant 0 : index
    %c0_16 = arith.constant 0 : index
    %9 = vector.load %arg6[%c0_14, %c0_15, %c0_16] : memref<2x32x64xf32, #tpu.memory_space<vmem>>, vector<1x32x64xf32>
    %10 = vector.shape_cast %9 : vector<1x32x64xf32> to vector<32x64xf32>
    %c0_17 = arith.constant 0 : index
    %c0_18 = arith.constant 0 : index
    %c0_19 = arith.constant 0 : index
    %11 = vector.load %arg7[%c0_17, %c0_18, %c0_19] : memref<2x64x32xf32, #tpu.memory_space<vmem>>, vector<1x64x32xf32>
    %12 = vector.shape_cast %11 : vector<1x64x32xf32> to vector<64x32xf32>
    %c0_20 = arith.constant 0 : index
    %c0_21 = arith.constant 0 : index
    %c0_22 = arith.constant 0 : index
    %13 = vector.load %arg8[%c0_20, %c0_21, %c0_22] : memref<2x5x64xf32, #tpu.memory_space<vmem>>, vector<1x5x64xf32>
    %14 = vector.shape_cast %13 : vector<1x5x64xf32> to vector<5x64xf32>
    %15 = vector.extract_strided_slice %14 {offsets = [0, 0], sizes = [1, 32], strides = [1, 1]} : vector<5x64xf32> to vector<1x32xf32>
    %16 = vector.extract_strided_slice %14 {offsets = [1, 0], sizes = [1, 8], strides = [1, 1]} : vector<5x64xf32> to vector<1x8xf32>
    %17 = vector.extract_strided_slice %14 {offsets = [2, 0], sizes = [1, 8], strides = [1, 1]} : vector<5x64xf32> to vector<1x8xf32>
    %18 = vector.extract_strided_slice %14 {offsets = [3, 0], sizes = [1, 64], strides = [1, 1]} : vector<5x64xf32> to vector<1x64xf32>
    %19 = vector.extract_strided_slice %14 {offsets = [4, 0], sizes = [1, 32], strides = [1, 1]} : vector<5x64xf32> to vector<1x32xf32>
    %c0_23 = arith.constant 0 : index
    %c0_24 = arith.constant 0 : index
    %c0_25 = arith.constant 0 : index
    %c0_26 = arith.constant 0 : index
    %20 = vector.load %arg9[%c0_23, %c0_24, %c0_25, %c0_26] : memref<2x4x8x32xf32, #tpu.memory_space<vmem>>, vector<1x4x8x32xf32>
    %21 = vector.shape_cast %20 : vector<1x4x8x32xf32> to vector<4x8x32xf32>
    %22 = vector.extract_strided_slice %21 {offsets = [0, 0, 0], sizes = [1, 8, 32], strides = [1, 1, 1]} : vector<4x8x32xf32> to vector<1x8x32xf32>
    %23 = vector.shape_cast %22 : vector<1x8x32xf32> to vector<8x32xf32>
    %24 = vector.extract_strided_slice %21 {offsets = [1, 0, 0], sizes = [1, 8, 32], strides = [1, 1, 1]} : vector<4x8x32xf32> to vector<1x8x32xf32>
    %25 = vector.shape_cast %24 : vector<1x8x32xf32> to vector<8x32xf32>
    %26 = vector.extract_strided_slice %21 {offsets = [2, 0, 0], sizes = [1, 8, 32], strides = [1, 1, 1]} : vector<4x8x32xf32> to vector<1x8x32xf32>
    %27 = vector.shape_cast %26 : vector<1x8x32xf32> to vector<8x32xf32>
    %28 = vector.extract_strided_slice %21 {offsets = [3, 0, 0], sizes = [1, 8, 32], strides = [1, 1, 1]} : vector<4x8x32xf32> to vector<1x8x32xf32>
    %29 = vector.shape_cast %28 : vector<1x8x32xf32> to vector<8x32xf32>
    %30 = vector.shape_cast %0 : vector<4x8x32xf32> to vector<32x32xf32>
    %cst = arith.constant dense<0.000000e+00> : vector<32x32xf32>
    %31 = tpu.matmul %30, %2, %cst {dimension_numbers = #tpu.dot_dimension_numbers<[1], [0], [0], [1], [0, 0, 1, 1], [], []>} : vector<32x32xf32>, vector<32x32xf32>, vector<32x32xf32> -> vector<32x32xf32>
    %32 = vector.broadcast %15 : vector<1x32xf32> to vector<32x32xf32>
    %33 = arith.addf %31, %32 : vector<32x32xf32>
    %34 = arith.mulf %33, %33 : vector<32x32xf32>
    %cst_27 = arith.constant dense<0.000000e+00> : vector<32x8xf32>
    %35 = tpu.matmul %34, %6, %cst_27 {dimension_numbers = #tpu.dot_dimension_numbers<[1], [0], [0], [1], [0, 0, 1, 1], [], []>} : vector<32x32xf32>, vector<32x8xf32>, vector<32x8xf32> -> vector<32x8xf32>
    %cst_28 = arith.constant dense<0.000000e+00> : vector<32x8xf32>
    %36 = tpu.matmul %33, %8, %cst_28 {dimension_numbers = #tpu.dot_dimension_numbers<[1], [0], [0], [1], [0, 0, 1, 1], [], []>} : vector<32x32xf32>, vector<32x8xf32>, vector<32x8xf32> -> vector<32x8xf32>
    %cst_29 = arith.constant 2.000000e+00 : f32
    %37 = vector.broadcast %cst_29 : f32 to vector<32x8xf32>
    %38 = arith.mulf %37, %36 : vector<32x8xf32>
    %39 = arith.subf %35, %38 : vector<32x8xf32>
    %40 = vector.broadcast %17 : vector<1x8xf32> to vector<32x8xf32>
    %41 = arith.addf %39, %40 : vector<32x8xf32>
    %cst_30 = arith.constant -1.562500e-02 : f32
    %42 = vector.broadcast %cst_30 : f32 to vector<32x8xf32>
    %43 = arith.mulf %42, %41 : vector<32x8xf32>
    %cst_31 = arith.constant dense<0xFF800000> : vector<32xf32>
    %44 = vector.multi_reduction <maximumf>, %43, %cst_31 [1] : vector<32x8xf32> to vector<32xf32>
    %45 = vector.shape_cast %44 : vector<32xf32> to vector<32x1xf32>
    %46 = vector.broadcast %45 : vector<32x1xf32> to vector<32x8xf32>
    %47 = arith.subf %43, %46 : vector<32x8xf32>
    %48 = math.exp %47 : vector<32x8xf32>
    %cst_32 = arith.constant dense<0.000000e+00> : vector<32xf32>
    %49 = vector.multi_reduction <add>, %48, %cst_32 [1] : vector<32x8xf32> to vector<32xf32>
    %50 = vector.shape_cast %49 : vector<32xf32> to vector<32x1xf32>
    %51 = tpu.reciprocal %50 {approx = true} : vector<32x1xf32> -> vector<32x1xf32>
    %52 = vector.broadcast %51 : vector<32x1xf32> to vector<32x8xf32>
    %53 = arith.mulf %48, %52 : vector<32x8xf32>
    %cst_33 = arith.constant dense<0.000000e+00> : vector<32x8xf32>
    %54 = tpu.matmul %53, %4, %cst_33 {dimension_numbers = #tpu.dot_dimension_numbers<[1], [0], [0], [1], [0, 0, 1, 1], [], []>} : vector<32x8xf32>, vector<8x8xf32>, vector<32x8xf32> -> vector<32x8xf32>
    %55 = vector.broadcast %16 : vector<1x8xf32> to vector<32x8xf32>
    %56 = arith.mulf %53, %55 : vector<32x8xf32>
    %cst_34 = arith.constant dense<0.000000e+00> : vector<32xf32>
    %57 = vector.multi_reduction <add>, %56, %cst_34 [1] : vector<32x8xf32> to vector<32xf32>
    %58 = vector.shape_cast %57 : vector<32xf32> to vector<32x1xf32>
    %59 = vector.shape_cast %54 : vector<32x8xf32> to vector<4x8x8xf32>
    %60 = vector.shape_cast %59 : vector<4x8x8xf32> to vector<4x8x8x1xf32>
    %61 = vector.shape_cast %0 : vector<4x8x32xf32> to vector<4x1x8x32xf32>
    %62 = vector.broadcast %60 : vector<4x8x8x1xf32> to vector<4x8x8x32xf32>
    %63 = vector.broadcast %61 : vector<4x1x8x32xf32> to vector<4x8x8x32xf32>
    %64 = arith.mulf %62, %63 : vector<4x8x8x32xf32>
    %cst_35 = arith.constant dense<0.000000e+00> : vector<4x8x32xf32>
    %65 = vector.multi_reduction <add>, %64, %cst_35 [2] : vector<4x8x8x32xf32> to vector<4x8x32xf32>
    %66 = vector.shape_cast %58 : vector<32x1xf32> to vector<4x8x1xf32>
    %67 = vector.broadcast %66 : vector<4x8x1xf32> to vector<4x8x32xf32>
    %68 = arith.addf %65, %67 : vector<4x8x32xf32>
    %69 = arith.addf %0, %68 : vector<4x8x32xf32>
    %cst_36 = arith.constant dense<0.000000e+00> : vector<4x8xf32>
    %70 = vector.multi_reduction <add>, %69, %cst_36 [2] : vector<4x8x32xf32> to vector<4x8xf32>
    %71 = vector.shape_cast %70 : vector<4x8xf32> to vector<4x8x1xf32>
    %cst_37 = arith.constant dense<0.000000e+00> : vector<4x1xf32>
    %72 = vector.multi_reduction <add>, %71, %cst_37 [1] : vector<4x8x1xf32> to vector<4x1xf32>
    %73 = vector.shape_cast %72 : vector<4x1xf32> to vector<4x1x1xf32>
    %74 = arith.mulf %69, %69 : vector<4x8x32xf32>
    %cst_38 = arith.constant dense<0.000000e+00> : vector<4x8xf32>
    %75 = vector.multi_reduction <add>, %74, %cst_38 [2] : vector<4x8x32xf32> to vector<4x8xf32>
    %76 = vector.shape_cast %75 : vector<4x8xf32> to vector<4x8x1xf32>
    %cst_39 = arith.constant dense<0.000000e+00> : vector<4x1xf32>
    %77 = vector.multi_reduction <add>, %76, %cst_39 [1] : vector<4x8x1xf32> to vector<4x1xf32>
    %78 = vector.shape_cast %77 : vector<4x1xf32> to vector<4x1x1xf32>
    %cst_40 = arith.constant 3.906250e-03 : f32
    %79 = vector.broadcast %cst_40 : f32 to vector<4x1x1xf32>
    %80 = arith.mulf %73, %79 : vector<4x1x1xf32>
    %cst_41 = arith.constant 3.906250e-03 : f32
    %81 = vector.broadcast %cst_41 : f32 to vector<4x1x1xf32>
    %82 = arith.mulf %78, %81 : vector<4x1x1xf32>
    %83 = arith.mulf %80, %80 : vector<4x1x1xf32>
    %84 = arith.subf %82, %83 : vector<4x1x1xf32>
    %85 = vector.broadcast %80 : vector<4x1x1xf32> to vector<4x8x32xf32>
    %86 = arith.subf %69, %85 : vector<4x8x32xf32>
    %cst_42 = arith.constant 9.99999974E-6 : f32
    %87 = vector.broadcast %cst_42 : f32 to vector<4x1x1xf32>
    %88 = arith.addf %84, %87 : vector<4x1x1xf32>
    %89 = math.rsqrt %88 : vector<4x1x1xf32>
    %90 = vector.broadcast %89 : vector<4x1x1xf32> to vector<4x8x32xf32>
    %91 = arith.mulf %86, %90 : vector<4x8x32xf32>
    %92 = vector.shape_cast %23 : vector<8x32xf32> to vector<1x8x32xf32>
    %93 = vector.broadcast %92 : vector<1x8x32xf32> to vector<4x8x32xf32>
    %94 = arith.mulf %91, %93 : vector<4x8x32xf32>
    %95 = vector.shape_cast %25 : vector<8x32xf32> to vector<1x8x32xf32>
    %96 = vector.broadcast %95 : vector<1x8x32xf32> to vector<4x8x32xf32>
    %97 = arith.addf %94, %96 : vector<4x8x32xf32>
    %98 = vector.shape_cast %97 : vector<4x8x32xf32> to vector<32x32xf32>
    %cst_43 = arith.constant dense<0.000000e+00> : vector<32x64xf32>
    %99 = tpu.matmul %98, %10, %cst_43 {dimension_numbers = #tpu.dot_dimension_numbers<[1], [0], [0], [1], [0, 0, 1, 1], [], []>} : vector<32x32xf32>, vector<32x64xf32>, vector<32x64xf32> -> vector<32x64xf32>
    %100 = vector.broadcast %18 : vector<1x64xf32> to vector<32x64xf32>
    %101 = arith.addf %99, %100 : vector<32x64xf32>
    %cst_44 = arith.constant 0.000000e+00 : f32
    %102 = vector.broadcast %cst_44 : f32 to vector<32x64xf32>
    %103 = arith.maximumf %101, %102 : vector<32x64xf32>
    %cst_45 = arith.constant dense<0.000000e+00> : vector<32x32xf32>
    %104 = tpu.matmul %103, %12, %cst_45 {dimension_numbers = #tpu.dot_dimension_numbers<[1], [0], [0], [1], [0, 0, 1, 1], [], []>} : vector<32x64xf32>, vector<64x32xf32>, vector<32x32xf32> -> vector<32x32xf32>
    %105 = vector.broadcast %19 : vector<1x32xf32> to vector<32x32xf32>
    %106 = arith.addf %104, %105 : vector<32x32xf32>
    %107 = vector.shape_cast %106 : vector<32x32xf32> to vector<4x8x32xf32>
    %108 = arith.addf %97, %107 : vector<4x8x32xf32>
    %cst_46 = arith.constant dense<0.000000e+00> : vector<4x8xf32>
    %109 = vector.multi_reduction <add>, %108, %cst_46 [2] : vector<4x8x32xf32> to vector<4x8xf32>
    %110 = vector.shape_cast %109 : vector<4x8xf32> to vector<4x8x1xf32>
    %cst_47 = arith.constant dense<0.000000e+00> : vector<4x1xf32>
    %111 = vector.multi_reduction <add>, %110, %cst_47 [1] : vector<4x8x1xf32> to vector<4x1xf32>
    %112 = vector.shape_cast %111 : vector<4x1xf32> to vector<4x1x1xf32>
    %113 = arith.mulf %108, %108 : vector<4x8x32xf32>
    %cst_48 = arith.constant dense<0.000000e+00> : vector<4x8xf32>
    %114 = vector.multi_reduction <add>, %113, %cst_48 [2] : vector<4x8x32xf32> to vector<4x8xf32>
    %115 = vector.shape_cast %114 : vector<4x8xf32> to vector<4x8x1xf32>
    %cst_49 = arith.constant dense<0.000000e+00> : vector<4x1xf32>
    %116 = vector.multi_reduction <add>, %115, %cst_49 [1] : vector<4x8x1xf32> to vector<4x1xf32>
    %117 = vector.shape_cast %116 : vector<4x1xf32> to vector<4x1x1xf32>
    %cst_50 = arith.constant 3.906250e-03 : f32
    %118 = vector.broadcast %cst_50 : f32 to vector<4x1x1xf32>
    %119 = arith.mulf %112, %118 : vector<4x1x1xf32>
    %cst_51 = arith.constant 3.906250e-03 : f32
    %120 = vector.broadcast %cst_51 : f32 to vector<4x1x1xf32>
    %121 = arith.mulf %117, %120 : vector<4x1x1xf32>
    %122 = arith.mulf %119, %119 : vector<4x1x1xf32>
    %123 = arith.subf %121, %122 : vector<4x1x1xf32>
    %124 = vector.broadcast %119 : vector<4x1x1xf32> to vector<4x8x32xf32>
    %125 = arith.subf %108, %124 : vector<4x8x32xf32>
    %cst_52 = arith.constant 9.99999974E-6 : f32
    %126 = vector.broadcast %cst_52 : f32 to vector<4x1x1xf32>
    %127 = arith.addf %123, %126 : vector<4x1x1xf32>
    %128 = math.rsqrt %127 : vector<4x1x1xf32>
    %129 = vector.broadcast %128 : vector<4x1x1xf32> to vector<4x8x32xf32>
    %130 = arith.mulf %125, %129 : vector<4x8x32xf32>
    %131 = vector.shape_cast %27 : vector<8x32xf32> to vector<1x8x32xf32>
    %132 = vector.broadcast %131 : vector<1x8x32xf32> to vector<4x8x32xf32>
    %133 = arith.mulf %130, %132 : vector<4x8x32xf32>
    %134 = vector.shape_cast %29 : vector<8x32xf32> to vector<1x8x32xf32>
    %135 = vector.broadcast %134 : vector<1x8x32xf32> to vector<4x8x32xf32>
    %136 = arith.addf %133, %135 : vector<4x8x32xf32>
    %c1 = arith.constant 1 : index
    %c0_53 = arith.constant 0 : index
    %c0_54 = arith.constant 0 : index
    %137 = vector.load %arg2[%c1, %c0_53, %c0_54] : memref<2x32x32xf32, #tpu.memory_space<vmem>>, vector<1x32x32xf32>
    %138 = vector.shape_cast %137 : vector<1x32x32xf32> to vector<32x32xf32>
    %c1_55 = arith.constant 1 : index
    %c0_56 = arith.constant 0 : index
    %c0_57 = arith.constant 0 : index
    %139 = vector.load %arg3[%c1_55, %c0_56, %c0_57] : memref<2x8x8xf32, #tpu.memory_space<vmem>>, vector<1x8x8xf32>
    %140 = vector.shape_cast %139 : vector<1x8x8xf32> to vector<8x8xf32>
    %c1_58 = arith.constant 1 : index
    %c0_59 = arith.constant 0 : index
    %c0_60 = arith.constant 0 : index
    %141 = vector.load %arg4[%c1_58, %c0_59, %c0_60] : memref<2x32x8xf32, #tpu.memory_space<vmem>>, vector<1x32x8xf32>
    %142 = vector.shape_cast %141 : vector<1x32x8xf32> to vector<32x8xf32>
    %c1_61 = arith.constant 1 : index
    %c0_62 = arith.constant 0 : index
    %c0_63 = arith.constant 0 : index
    %143 = vector.load %arg5[%c1_61, %c0_62, %c0_63] : memref<2x32x8xf32, #tpu.memory_space<vmem>>, vector<1x32x8xf32>
    %144 = vector.shape_cast %143 : vector<1x32x8xf32> to vector<32x8xf32>
    %c1_64 = arith.constant 1 : index
    %c0_65 = arith.constant 0 : index
    %c0_66 = arith.constant 0 : index
    %145 = vector.load %arg6[%c1_64, %c0_65, %c0_66] : memref<2x32x64xf32, #tpu.memory_space<vmem>>, vector<1x32x64xf32>
    %146 = vector.shape_cast %145 : vector<1x32x64xf32> to vector<32x64xf32>
    %c1_67 = arith.constant 1 : index
    %c0_68 = arith.constant 0 : index
    %c0_69 = arith.constant 0 : index
    %147 = vector.load %arg7[%c1_67, %c0_68, %c0_69] : memref<2x64x32xf32, #tpu.memory_space<vmem>>, vector<1x64x32xf32>
    %148 = vector.shape_cast %147 : vector<1x64x32xf32> to vector<64x32xf32>
    %c1_70 = arith.constant 1 : index
    %c0_71 = arith.constant 0 : index
    %c0_72 = arith.constant 0 : index
    %149 = vector.load %arg8[%c1_70, %c0_71, %c0_72] : memref<2x5x64xf32, #tpu.memory_space<vmem>>, vector<1x5x64xf32>
    %150 = vector.shape_cast %149 : vector<1x5x64xf32> to vector<5x64xf32>
    %151 = vector.extract_strided_slice %150 {offsets = [0, 0], sizes = [1, 32], strides = [1, 1]} : vector<5x64xf32> to vector<1x32xf32>
    %152 = vector.extract_strided_slice %150 {offsets = [1, 0], sizes = [1, 8], strides = [1, 1]} : vector<5x64xf32> to vector<1x8xf32>
    %153 = vector.extract_strided_slice %150 {offsets = [2, 0], sizes = [1, 8], strides = [1, 1]} : vector<5x64xf32> to vector<1x8xf32>
    %154 = vector.extract_strided_slice %150 {offsets = [3, 0], sizes = [1, 64], strides = [1, 1]} : vector<5x64xf32> to vector<1x64xf32>
    %155 = vector.extract_strided_slice %150 {offsets = [4, 0], sizes = [1, 32], strides = [1, 1]} : vector<5x64xf32> to vector<1x32xf32>
    %c1_73 = arith.constant 1 : index
    %c0_74 = arith.constant 0 : index
    %c0_75 = arith.constant 0 : index
    %c0_76 = arith.constant 0 : index
    %156 = vector.load %arg9[%c1_73, %c0_74, %c0_75, %c0_76] : memref<2x4x8x32xf32, #tpu.memory_space<vmem>>, vector<1x4x8x32xf32>
    %157 = vector.shape_cast %156 : vector<1x4x8x32xf32> to vector<4x8x32xf32>
    %158 = vector.extract_strided_slice %157 {offsets = [0, 0, 0], sizes = [1, 8, 32], strides = [1, 1, 1]} : vector<4x8x32xf32> to vector<1x8x32xf32>
    %159 = vector.shape_cast %158 : vector<1x8x32xf32> to vector<8x32xf32>
    %160 = vector.extract_strided_slice %157 {offsets = [1, 0, 0], sizes = [1, 8, 32], strides = [1, 1, 1]} : vector<4x8x32xf32> to vector<1x8x32xf32>
    %161 = vector.shape_cast %160 : vector<1x8x32xf32> to vector<8x32xf32>
    %162 = vector.extract_strided_slice %157 {offsets = [2, 0, 0], sizes = [1, 8, 32], strides = [1, 1, 1]} : vector<4x8x32xf32> to vector<1x8x32xf32>
    %163 = vector.shape_cast %162 : vector<1x8x32xf32> to vector<8x32xf32>
    %164 = vector.extract_strided_slice %157 {offsets = [3, 0, 0], sizes = [1, 8, 32], strides = [1, 1, 1]} : vector<4x8x32xf32> to vector<1x8x32xf32>
    %165 = vector.shape_cast %164 : vector<1x8x32xf32> to vector<8x32xf32>
    %166 = vector.shape_cast %136 : vector<4x8x32xf32> to vector<32x32xf32>
    %cst_77 = arith.constant dense<0.000000e+00> : vector<32x32xf32>
    %167 = tpu.matmul %166, %138, %cst_77 {dimension_numbers = #tpu.dot_dimension_numbers<[1], [0], [0], [1], [0, 0, 1, 1], [], []>} : vector<32x32xf32>, vector<32x32xf32>, vector<32x32xf32> -> vector<32x32xf32>
    %168 = vector.broadcast %151 : vector<1x32xf32> to vector<32x32xf32>
    %169 = arith.addf %167, %168 : vector<32x32xf32>
    %170 = arith.mulf %169, %169 : vector<32x32xf32>
    %cst_78 = arith.constant dense<0.000000e+00> : vector<32x8xf32>
    %171 = tpu.matmul %170, %142, %cst_78 {dimension_numbers = #tpu.dot_dimension_numbers<[1], [0], [0], [1], [0, 0, 1, 1], [], []>} : vector<32x32xf32>, vector<32x8xf32>, vector<32x8xf32> -> vector<32x8xf32>
    %cst_79 = arith.constant dense<0.000000e+00> : vector<32x8xf32>
    %172 = tpu.matmul %169, %144, %cst_79 {dimension_numbers = #tpu.dot_dimension_numbers<[1], [0], [0], [1], [0, 0, 1, 1], [], []>} : vector<32x32xf32>, vector<32x8xf32>, vector<32x8xf32> -> vector<32x8xf32>
    %cst_80 = arith.constant 2.000000e+00 : f32
    %173 = vector.broadcast %cst_80 : f32 to vector<32x8xf32>
    %174 = arith.mulf %173, %172 : vector<32x8xf32>
    %175 = arith.subf %171, %174 : vector<32x8xf32>
    %176 = vector.broadcast %153 : vector<1x8xf32> to vector<32x8xf32>
    %177 = arith.addf %175, %176 : vector<32x8xf32>
    %cst_81 = arith.constant -1.562500e-02 : f32
    %178 = vector.broadcast %cst_81 : f32 to vector<32x8xf32>
    %179 = arith.mulf %178, %177 : vector<32x8xf32>
    %cst_82 = arith.constant dense<0xFF800000> : vector<32xf32>
    %180 = vector.multi_reduction <maximumf>, %179, %cst_82 [1] : vector<32x8xf32> to vector<32xf32>
    %181 = vector.shape_cast %180 : vector<32xf32> to vector<32x1xf32>
    %182 = vector.broadcast %181 : vector<32x1xf32> to vector<32x8xf32>
    %183 = arith.subf %179, %182 : vector<32x8xf32>
    %184 = math.exp %183 : vector<32x8xf32>
    %cst_83 = arith.constant dense<0.000000e+00> : vector<32xf32>
    %185 = vector.multi_reduction <add>, %184, %cst_83 [1] : vector<32x8xf32> to vector<32xf32>
    %186 = vector.shape_cast %185 : vector<32xf32> to vector<32x1xf32>
    %187 = tpu.reciprocal %186 {approx = true} : vector<32x1xf32> -> vector<32x1xf32>
    %188 = vector.broadcast %187 : vector<32x1xf32> to vector<32x8xf32>
    %189 = arith.mulf %184, %188 : vector<32x8xf32>
    %cst_84 = arith.constant dense<0.000000e+00> : vector<32x8xf32>
    %190 = tpu.matmul %189, %140, %cst_84 {dimension_numbers = #tpu.dot_dimension_numbers<[1], [0], [0], [1], [0, 0, 1, 1], [], []>} : vector<32x8xf32>, vector<8x8xf32>, vector<32x8xf32> -> vector<32x8xf32>
    %191 = vector.broadcast %152 : vector<1x8xf32> to vector<32x8xf32>
    %192 = arith.mulf %189, %191 : vector<32x8xf32>
    %cst_85 = arith.constant dense<0.000000e+00> : vector<32xf32>
    %193 = vector.multi_reduction <add>, %192, %cst_85 [1] : vector<32x8xf32> to vector<32xf32>
    %194 = vector.shape_cast %193 : vector<32xf32> to vector<32x1xf32>
    %195 = vector.shape_cast %190 : vector<32x8xf32> to vector<4x8x8xf32>
    %196 = vector.shape_cast %195 : vector<4x8x8xf32> to vector<4x8x8x1xf32>
    %197 = vector.shape_cast %136 : vector<4x8x32xf32> to vector<4x1x8x32xf32>
    %198 = vector.broadcast %196 : vector<4x8x8x1xf32> to vector<4x8x8x32xf32>
    %199 = vector.broadcast %197 : vector<4x1x8x32xf32> to vector<4x8x8x32xf32>
    %200 = arith.mulf %198, %199 : vector<4x8x8x32xf32>
    %cst_86 = arith.constant dense<0.000000e+00> : vector<4x8x32xf32>
    %201 = vector.multi_reduction <add>, %200, %cst_86 [2] : vector<4x8x8x32xf32> to vector<4x8x32xf32>
    %202 = vector.shape_cast %194 : vector<32x1xf32> to vector<4x8x1xf32>
    %203 = vector.broadcast %202 : vector<4x8x1xf32> to vector<4x8x32xf32>
    %204 = arith.addf %201, %203 : vector<4x8x32xf32>
    %205 = arith.addf %136, %204 : vector<4x8x32xf32>
    %cst_87 = arith.constant dense<0.000000e+00> : vector<4x8xf32>
    %206 = vector.multi_reduction <add>, %205, %cst_87 [2] : vector<4x8x32xf32> to vector<4x8xf32>
    %207 = vector.shape_cast %206 : vector<4x8xf32> to vector<4x8x1xf32>
    %cst_88 = arith.constant dense<0.000000e+00> : vector<4x1xf32>
    %208 = vector.multi_reduction <add>, %207, %cst_88 [1] : vector<4x8x1xf32> to vector<4x1xf32>
    %209 = vector.shape_cast %208 : vector<4x1xf32> to vector<4x1x1xf32>
    %210 = arith.mulf %205, %205 : vector<4x8x32xf32>
    %cst_89 = arith.constant dense<0.000000e+00> : vector<4x8xf32>
    %211 = vector.multi_reduction <add>, %210, %cst_89 [2] : vector<4x8x32xf32> to vector<4x8xf32>
    %212 = vector.shape_cast %211 : vector<4x8xf32> to vector<4x8x1xf32>
    %cst_90 = arith.constant dense<0.000000e+00> : vector<4x1xf32>
    %213 = vector.multi_reduction <add>, %212, %cst_90 [1] : vector<4x8x1xf32> to vector<4x1xf32>
    %214 = vector.shape_cast %213 : vector<4x1xf32> to vector<4x1x1xf32>
    %cst_91 = arith.constant 3.906250e-03 : f32
    %215 = vector.broadcast %cst_91 : f32 to vector<4x1x1xf32>
    %216 = arith.mulf %209, %215 : vector<4x1x1xf32>
    %cst_92 = arith.constant 3.906250e-03 : f32
    %217 = vector.broadcast %cst_92 : f32 to vector<4x1x1xf32>
    %218 = arith.mulf %214, %217 : vector<4x1x1xf32>
    %219 = arith.mulf %216, %216 : vector<4x1x1xf32>
    %220 = arith.subf %218, %219 : vector<4x1x1xf32>
    %221 = vector.broadcast %216 : vector<4x1x1xf32> to vector<4x8x32xf32>
    %222 = arith.subf %205, %221 : vector<4x8x32xf32>
    %cst_93 = arith.constant 9.99999974E-6 : f32
    %223 = vector.broadcast %cst_93 : f32 to vector<4x1x1xf32>
    %224 = arith.addf %220, %223 : vector<4x1x1xf32>
    %225 = math.rsqrt %224 : vector<4x1x1xf32>
    %226 = vector.broadcast %225 : vector<4x1x1xf32> to vector<4x8x32xf32>
    %227 = arith.mulf %222, %226 : vector<4x8x32xf32>
    %228 = vector.shape_cast %159 : vector<8x32xf32> to vector<1x8x32xf32>
    %229 = vector.broadcast %228 : vector<1x8x32xf32> to vector<4x8x32xf32>
    %230 = arith.mulf %227, %229 : vector<4x8x32xf32>
    %231 = vector.shape_cast %161 : vector<8x32xf32> to vector<1x8x32xf32>
    %232 = vector.broadcast %231 : vector<1x8x32xf32> to vector<4x8x32xf32>
    %233 = arith.addf %230, %232 : vector<4x8x32xf32>
    %234 = vector.shape_cast %233 : vector<4x8x32xf32> to vector<32x32xf32>
    %cst_94 = arith.constant dense<0.000000e+00> : vector<32x64xf32>
    %235 = tpu.matmul %234, %146, %cst_94 {dimension_numbers = #tpu.dot_dimension_numbers<[1], [0], [0], [1], [0, 0, 1, 1], [], []>} : vector<32x32xf32>, vector<32x64xf32>, vector<32x64xf32> -> vector<32x64xf32>
    %236 = vector.broadcast %154 : vector<1x64xf32> to vector<32x64xf32>
    %237 = arith.addf %235, %236 : vector<32x64xf32>
    %cst_95 = arith.constant 0.000000e+00 : f32
    %238 = vector.broadcast %cst_95 : f32 to vector<32x64xf32>
    %239 = arith.maximumf %237, %238 : vector<32x64xf32>
    %cst_96 = arith.constant dense<0.000000e+00> : vector<32x32xf32>
    %240 = tpu.matmul %239, %148, %cst_96 {dimension_numbers = #tpu.dot_dimension_numbers<[1], [0], [0], [1], [0, 0, 1, 1], [], []>} : vector<32x64xf32>, vector<64x32xf32>, vector<32x32xf32> -> vector<32x32xf32>
    %241 = vector.broadcast %155 : vector<1x32xf32> to vector<32x32xf32>
    %242 = arith.addf %240, %241 : vector<32x32xf32>
    %243 = vector.shape_cast %242 : vector<32x32xf32> to vector<4x8x32xf32>
    %244 = arith.addf %233, %243 : vector<4x8x32xf32>
    %cst_97 = arith.constant dense<0.000000e+00> : vector<4x8xf32>
    %245 = vector.multi_reduction <add>, %244, %cst_97 [2] : vector<4x8x32xf32> to vector<4x8xf32>
    %246 = vector.shape_cast %245 : vector<4x8xf32> to vector<4x8x1xf32>
    %cst_98 = arith.constant dense<0.000000e+00> : vector<4x1xf32>
    %247 = vector.multi_reduction <add>, %246, %cst_98 [1] : vector<4x8x1xf32> to vector<4x1xf32>
    %248 = vector.shape_cast %247 : vector<4x1xf32> to vector<4x1x1xf32>
    %249 = arith.mulf %244, %244 : vector<4x8x32xf32>
    %cst_99 = arith.constant dense<0.000000e+00> : vector<4x8xf32>
    %250 = vector.multi_reduction <add>, %249, %cst_99 [2] : vector<4x8x32xf32> to vector<4x8xf32>
    %251 = vector.shape_cast %250 : vector<4x8xf32> to vector<4x8x1xf32>
    %cst_100 = arith.constant dense<0.000000e+00> : vector<4x1xf32>
    %252 = vector.multi_reduction <add>, %251, %cst_100 [1] : vector<4x8x1xf32> to vector<4x1xf32>
    %253 = vector.shape_cast %252 : vector<4x1xf32> to vector<4x1x1xf32>
    %cst_101 = arith.constant 3.906250e-03 : f32
    %254 = vector.broadcast %cst_101 : f32 to vector<4x1x1xf32>
    %255 = arith.mulf %248, %254 : vector<4x1x1xf32>
    %cst_102 = arith.constant 3.906250e-03 : f32
    %256 = vector.broadcast %cst_102 : f32 to vector<4x1x1xf32>
    %257 = arith.mulf %253, %256 : vector<4x1x1xf32>
    %258 = arith.mulf %255, %255 : vector<4x1x1xf32>
    %259 = arith.subf %257, %258 : vector<4x1x1xf32>
    %260 = vector.broadcast %255 : vector<4x1x1xf32> to vector<4x8x32xf32>
    %261 = arith.subf %244, %260 : vector<4x8x32xf32>
    %cst_103 = arith.constant 9.99999974E-6 : f32
    %262 = vector.broadcast %cst_103 : f32 to vector<4x1x1xf32>
    %263 = arith.addf %259, %262 : vector<4x1x1xf32>
    %264 = math.rsqrt %263 : vector<4x1x1xf32>
    %265 = vector.broadcast %264 : vector<4x1x1xf32> to vector<4x8x32xf32>
    %266 = arith.mulf %261, %265 : vector<4x8x32xf32>
    %267 = vector.shape_cast %163 : vector<8x32xf32> to vector<1x8x32xf32>
    %268 = vector.broadcast %267 : vector<1x8x32xf32> to vector<4x8x32xf32>
    %269 = arith.mulf %266, %268 : vector<4x8x32xf32>
    %270 = vector.shape_cast %165 : vector<8x32xf32> to vector<1x8x32xf32>
    %271 = vector.broadcast %270 : vector<1x8x32xf32> to vector<4x8x32xf32>
    %272 = arith.addf %269, %271 : vector<4x8x32xf32>
    %c0_104 = arith.constant 0 : index
    %c0_105 = arith.constant 0 : index
    %c0_106 = arith.constant 0 : index
    %273 = vector.load %arg10[%c0_104, %c0_105, %c0_106] : memref<4x8x32xf32, #tpu.memory_space<vmem>>, vector<4x8x32xf32>
    tpu.vector_store %arg10[%c0_104, %c0_105, %c0_106], %272 {strides = array<i32>} : memref<4x8x32xf32, #tpu.memory_space<vmem>>, vector<4x8x32xf32>,
    return
  }
  func.func @transform_0(%arg0: i32) -> (i32, i32, i32) {
    %c0_i32 = arith.constant 0 : i32
    %c0_i32_0 = arith.constant 0 : i32
    %c0_i32_1 = arith.constant 0 : i32
    return %arg0, %c0_i32, %c0_i32_0 : i32, i32, i32
  }
  func.func @transform_1(%arg0: i32) -> (i32, i32, i32) {
    %c0_i32 = arith.constant 0 : i32
    %c0_i32_0 = arith.constant 0 : i32
    %c0_i32_1 = arith.constant 0 : i32
    %c0_i32_2 = arith.constant 0 : i32
    return %c0_i32, %c0_i32_0, %c0_i32_1 : i32, i32, i32
  }
  func.func @transform_2(%arg0: i32) -> (i32, i32, i32) {
    %c0_i32 = arith.constant 0 : i32
    %c0_i32_0 = arith.constant 0 : i32
    %c0_i32_1 = arith.constant 0 : i32
    %c0_i32_2 = arith.constant 0 : i32
    return %c0_i32, %c0_i32_0, %c0_i32_1 : i32, i32, i32
  }
  func.func @transform_3(%arg0: i32) -> (i32, i32, i32) {
    %c0_i32 = arith.constant 0 : i32
    %c0_i32_0 = arith.constant 0 : i32
    %c0_i32_1 = arith.constant 0 : i32
    %c0_i32_2 = arith.constant 0 : i32
    return %c0_i32, %c0_i32_0, %c0_i32_1 : i32, i32, i32
  }
  func.func @transform_4(%arg0: i32) -> (i32, i32, i32) {
    %c0_i32 = arith.constant 0 : i32
    %c0_i32_0 = arith.constant 0 : i32
    %c0_i32_1 = arith.constant 0 : i32
    %c0_i32_2 = arith.constant 0 : i32
    return %c0_i32, %c0_i32_0, %c0_i32_1 : i32, i32, i32
  }
  func.func @transform_5(%arg0: i32) -> (i32, i32, i32) {
    %c0_i32 = arith.constant 0 : i32
    %c0_i32_0 = arith.constant 0 : i32
    %c0_i32_1 = arith.constant 0 : i32
    %c0_i32_2 = arith.constant 0 : i32
    return %c0_i32, %c0_i32_0, %c0_i32_1 : i32, i32, i32
  }
  func.func @transform_6(%arg0: i32) -> (i32, i32, i32) {
    %c0_i32 = arith.constant 0 : i32
    %c0_i32_0 = arith.constant 0 : i32
    %c0_i32_1 = arith.constant 0 : i32
    %c0_i32_2 = arith.constant 0 : i32
    return %c0_i32, %c0_i32_0, %c0_i32_1 : i32, i32, i32
  }
  func.func @transform_7(%arg0: i32) -> (i32, i32, i32) {
    %c0_i32 = arith.constant 0 : i32
    %c0_i32_0 = arith.constant 0 : i32
    %c0_i32_1 = arith.constant 0 : i32
    %c0_i32_2 = arith.constant 0 : i32
    return %c0_i32, %c0_i32_0, %c0_i32_1 : i32, i32, i32
  }
  func.func @transform_8(%arg0: i32) -> (i32, i32, i32, i32) {
    %c0_i32 = arith.constant 0 : i32
    %c0_i32_0 = arith.constant 0 : i32
    %c0_i32_1 = arith.constant 0 : i32
    %c0_i32_2 = arith.constant 0 : i32
    %c0_i32_3 = arith.constant 0 : i32
    return %c0_i32, %c0_i32_0, %c0_i32_1, %c0_i32_2 : i32, i32, i32, i32
  }
  func.func @transform_9(%arg0: i32) -> (i32, i32, i32) {
    %c0_i32 = arith.constant 0 : i32
    %c0_i32_0 = arith.constant 0 : i32
    %c0_i32_1 = arith.constant 0 : i32
    return %arg0, %c0_i32, %c0_i32_0 : i32, i32, i32
  }
}

</mosaic_0001>

<bundles_post_ra>
// kernel: tpu_custom_call.1
= control target key start
LH: loop header
LB: loop body
LE: loop exit
PB: predicated region body
PF: predicated region fallthrough
CT: control target
= control target key end

     0   :  { %vm71_vm0 = vcmask 261120   ;;  %s5024_s0 = inlined_call_operand.vmem [shape: f32[4,8,32], index: 0, kind: input, shape index: {}]   ;;  %s5025_s1 = inlined_call_operand.vmem [shape: f32[2,32,32], index: 1, kind: input, shape index: {}]   ;;  %s5026_s2 = inlined_call_operand.vmem [shape: f32[2,8,8], index: 2, kind: input, shape index: {}]   ;;  %s5027_s3 = inlined_call_operand.vmem [shape: f32[2,32,8], index: 3, kind: input, shape index: {}]   ;;  %s5028_s4 = inlined_call_operand.vmem [shape: f32[2,32,8], index: 4, kind: input, shape index: {}]   ;;  %s5029_s5 = inlined_call_operand.vmem [shape: f32[2,32,64], index: 5, kind: input, shape index: {}]   ;;  %s5030_s6 = inlined_call_operand.vmem [shape: f32[2,64,32], index: 6, kind: input, shape index: {}]   ;;  %s5031_s7 = inlined_call_operand.vmem [shape: f32[2,5,64], index: 7, kind: input, shape index: {}]   ;;  %s5032_s8 = inlined_call_operand.vmem [shape: f32[2,4,8,32], index: 8, kind: input, shape index: {}]   ;;  %s5033_s9 = inlined_call_operand.hbm [shape: f32[4,8,32], index: 9, kind: output, shape index: {}]  }
   0x1   :  { %v37_v0 = vld [vmem:[%s5025_s1] sm:$0xff]  ;;  %v38_v1 = vld [vmem:[%s5025_s1 + $0x8] sm:$0xff]  ;;  %v39_v2 = vld [vmem:[%s5025_s1 + $0x10] sm:$0xff] }
   0x2   :  { %v3671_v3 = vpack.c.bf16 %v38_v1, %v37_v0  ;;  %v40_v4 = vld [vmem:[%s5025_s1 + $0x18] sm:$0xff]  ;;  %v3932_v5 = vld [vmem:[%s5024_s0] sm:$0xff]  ;;  %v47_v8 = vld [vmem:[%s5028_s4 + $0x8] sm:$0xff] }
   0x3   :  { %v3675_v6 = vpack.c.bf16 %v40_v4, %v39_v2  ;;  %3507 = vmatprep.mubr.msk.f32.mxu1 %vm71_vm0, %v3932_v5  ;;  %v46_v7 = vld [vmem:[%s5028_s4] sm:$0xff]  ;;  %v43_v10 = vld [vmem:[%s5027_s3 + $0x8] sm:$0xff] }
   0x4   :  { %3672 = vmatprep.subr.bf16.mxu1 %v3671_v3  ;;  %v42_v9 = vld [vmem:[%s5027_s3] sm:$0xff]  ;;  %v3687_v11 = vpack.c.bf16 %v47_v8, %v46_v7 }
   0x5   :  { %3674 = vmatpush3.bf16.msra.mxu1 %v3671_v3 }
   0x6   :  { %14 = vsyncpa [#allocation3], 0  ;;  %3676 = vmatprep.subr.bf16.mxu1 %v3675_v6  ;;  %v3679_v12 = vpack.c.bf16 %v43_v10, %v42_v9  ;;  %3688 = vmatprep.subr.bf16.mxu0 %v3687_v11  ;;  %v3951_v13 = vld [vmem:[%s5024_s0 + $0x8] sm:$0xff]  ;;  %v3956_v14 = vld [vmem:[%s5024_s0 + $0x10] sm:$0xff]  ;;  %v67_v22 = vlaneseq  ;;  %vm387_vm1 = vcmask 64512   ;;  %vm1158_vm2 = vcmask 1041409  }
   0x7   :  { %3690 = vmatpush3.bf16.msra.mxu0 %v3687_v11  ;;  %v3965_v15 = vld [vmem:[%s5024_s0 + $0x18] sm:$0xff]  ;;  %v48_v16 = vld [vmem:[%s5028_s4 + $0x10] sm:$0xff]  ;;  %v3989_v25 = vld [vmem:[%s5031_s7] sm:$0x1f]  ;;  %vm1161_vm3 = vcmask 1042434   ;;  %vm1164_vm4 = vcmask 1043459  }
   0x8   :  { %v49_v17 = vld [vmem:[%s5028_s4 + $0x18] sm:$0xff]  ;;  %v44_v19 = vld [vmem:[%s5027_s3 + $0x10] sm:$0xff]  ;;  %v3981_v23 = vshrl.u32 %v67_v22, 7  ;;  %vm1167_vm5 = vcmask 1044484   ;;  %vm1170_vm6 = vcmask 1045509   ;;  %vm1173_vm7 = vcmask 1046534  }
   0x9   :  { %3678 = vmatpush3.bf16.msra.mxu1 %v3675_v6  ;;  %v3691_v18 = vpack.c.bf16 %v49_v17, %v48_v16  ;;  %v45_v20 = vld [vmem:[%s5027_s3 + $0x18] sm:$0xff]  ;;  %vm1176_vm8 = vcmask 1047559   ;;  %vm1453_vm9 = vcmask 523264  }
   0xa   :  { %3680 = vmatprep.subr.bf16.mxu1 %v3679_v12  ;;  %v3683_v21 = vpack.c.bf16 %v45_v20, %v44_v19  ;;  %v3984_v24 = vsub.s32 0, %v3981_v23  ;;  %v4002_v39 = vsub.s32 2, %v3981_v23 }
   0xb   :  { %3692 = vmatprep.subr.bf16.mxu0 %v3691_v18 }
   0xc   :  { %3508 = vmatmul.mubr.msk.f32.vlgmr.msra.gmra.mrb[0].mxu1 %vm71_vm0, %v3951_v13  ;;  %3694 = vmatpush3.bf16.msra.mxu0 %v3691_v18  ;;  %v70_v26 = vrot.slane %v3989_v25, %v3984_v24  ;;  %v378_v45 = vrot.slane %v3989_v25, %v4002_v39 }
   0xd   :  { %3510 = vmatprep.mubr.msk.f32.mxu1 %vm71_vm0, %v3956_v14  ;;  %3682 = vmatpush3.bf16.msra.mxu1 %v3679_v12 }
   0xe   :  { %3684 = vmatprep.subr.bf16.mxu1 %v3683_v21 }
  0x10   :  { %3511 = vmatmul.mubr.msk.f32.gmra.mrb[2].mxu1 %vm71_vm0, %v3965_v15 }
  0x11   :  { %3686 = vmatpush3.bf16.msra.mxu1 %v3683_v21 }
  0xdf   :  { %v3509_v27 = vpop.f32.mrb[0].mxu1 }
  0xe0   :  { %v156_v28 = vadd.f32 %v3509_v27, %v70_v26  ;;  %v150_v29 = vpop.f32.mrb[1].mxu1 }
  0xe1   :  { %v151_v30 = vadd.f32 %v150_v29, %v70_v26 }
  0xe2   :  { %v170_v33 = vmul.f32 %v156_v28, %v156_v28 }
  0xe3   :  { %v169_v31 = vmul.f32 %v151_v30, %v151_v30  ;;  %v3512_v32 = vpop.f32.mrb[2].mxu1  ;;  %3535 = vmatprep.mubr.msk.f32.mxu0 %vm71_vm0, %v151_v30 }
  0xe4   :  { %v166_v34 = vadd.f32 %v3512_v32, %v70_v26  ;;  %v160_v35 = vpop.f32.mrb[3].mxu1  ;;  %3536 = vmatmul.mubr.msk.f32.vlgmr.msra.gmra.mrb[0].mxu0 %vm71_vm0, %v156_v28  ;;  %v41_v32 = vld [vmem:[%s5026_s2] sm:$0xff] }
  0xe5   :  { %v161_v36 = vadd.f32 %v160_v35, %v70_v26  ;;  %3521 = vmatprep.mubr.msk.f32.mxu1 %vm71_vm0, %v169_v31  ;;  %3541 = vmatprep.subr.mxu1 %v41_v32 }
  0xe6   :  { %v172_v37 = vmul.f32 %v166_v34, %v166_v34  ;;  %3522 = vmatmul.mubr.msk.f32.vlgmr.msra.gmra.mrb[4].mxu1 %vm71_vm0, %v170_v33 }
  0xe7   :  { %v171_v38 = vmul.f32 %v161_v36, %v161_v36  ;;  %3538 = vmatprep.mubr.msk.f32.mxu0 %vm71_vm0, %v161_v36  ;;  %3542 = vmatpush3.msra.mxu1 %v41_v32  ;;  %v4018_v36 = vsub.s32 1, %v3981_v23 }
  0xe8   :  { %3539 = vmatmul.mubr.msk.f32.gmra.mrb[2].mxu0 %vm71_vm0, %v166_v34 }
  0xe9   :  { %3524 = vmatprep.mubr.msk.f32.mxu1 %vm71_vm0, %v171_v38  ;;  %v532_v38 = vrot.slane %v3989_v25, %v4018_v36 }
  0xea   :  { %3525 = vmatmul.mubr.msk.f32.gmra.mrb[6].mxu1 %vm71_vm0, %v172_v37 }
 0x1b7   :  { %v3537_v40 = vpop.f32.mrb[0].mxu0 }
 0x1b8   :  { %v368_v41 = vmul.f32 2.0, %v3537_v40  ;;  %v348_v42 = vpop.f32.mrb[1].mxu0 }
 0x1b9   :  { %v367_v43 = vmul.f32 2.0, %v348_v42  ;;  %v3523_v44 = vpop.f32.mrb[4].mxu1 }
 0x1ba   :  { %v372_v46 = vsub.f32 %v3523_v44, %v368_v41  ;;  %v251_v47 = vpop.f32.mrb[5].mxu1 }
 0x1bb   :  { %v371_v48 = vsub.f32 %v251_v47, %v367_v43  ;;  %v3540_v49 = vpop.f32.mrb[2].mxu0 }
 0x1bc   :  { %v370_v50 = vmul.f32 2.0, %v3540_v49  ;;  %v358_v51 = vpop.f32.mrb[3].mxu0  ;;  %v380_v52 = vadd.f32 %v378_v45, %v372_v46 }
 0x1bd   :  { %v369_v53 = vmul.f32 2.0, %v358_v51  ;;  %v3526_v54 = vpop.f32.mrb[6].mxu1  ;;  %v379_v55 = vadd.f32 %v378_v45, %v371_v48 }
 0x1be   :  { %v374_v56 = vsub.f32 %v3526_v54, %v370_v50  ;;  %v261_v57 = vpop.f32.mrb[7].mxu1  ;;  %v384_v62 = vmul.f32 -0.015625, %v380_v52 }
 0x1bf   :  { %v373_v58 = vsub.f32 %v261_v57, %v369_v53  ;;  %v383_v59 = vmul.f32 -0.015625, %v379_v55  ;;  %v4031_v55 = vsub.s32 5, %v3981_v23 }
 0x1c0   :  { %v382_v60 = vadd.f32 %v378_v45, %v374_v56  ;;  %v391_v2 = vsel %vm387_vm1, %v384_v62, -inf }
 0x1c1   :  { %v388_v61 = vsel %vm387_vm1, %v383_v59, -inf  ;;  %v381_v63 = vadd.f32 %v378_v45, %v373_v58 }
 0x1c2   :  { %389 = vmax.xlane.f32.xlu0 %v388_v61  ;;  %v386_v1 = vmul.f32 -0.015625, %v382_v60 }
 0x1c3   :  { %v385_v0 = vmul.f32 -0.015625, %v381_v63 }
 0x1c4   :  { %v397_v4 = vsel %vm387_vm1, %v386_v1, -inf }
 0x1c5   :  { %v394_v3 = vsel %vm387_vm1, %v385_v0, -inf }
 0x1c6   :  { %392 = vmax.xlane.f32.xlu0 %v391_v2  ;;  %395 = vmax.xlane.f32.xlu1 %v394_v3 }
 0x1ca   :  { %398 = vmax.xlane.f32.xlu1 %v397_v4 }
 0x24f   :  { %v390_v6 = vpop.xlane.xlu0 %389 }
 0x250   :  { %v400_v7 = vsub.f32 %v383_v59, %v390_v6  ;;  %v4047_v6 = vsub.s32 6, %v3981_v23 }
 0x252   :  { %v404_v8 = vmul.f32 1.442695, %v400_v7  ;;  %v4050_v7 = vsub.s32 4, %v3981_v23 }
 0x253   :  { %v393_v9 = vpop.xlane.xlu0 %392  ;;  %v396_v10 = vpop.xlane.xlu1 %395 }
 0x254   :  { %3770 = vpow2.f32 %v404_v8  ;;  %v401_v11 = vsub.f32 %v384_v62, %v393_v9  ;;  %v402_v12 = vsub.f32 %v385_v0, %v396_v10  ;;  %v4040_v0 = vsub.s32 3, %v3981_v23 }
 0x255   :  { %v4055_v10 = vsub.s32 7, %v3981_v23 }
 0x256   :  { %v406_v16 = vmul.f32 1.442695, %v401_v11  ;;  %v408_v17 = vmul.f32 1.442695, %v402_v12 }
 0x257   :  { %v399_v18 = vpop.xlane.xlu1 %398 }
 0x258   :  { %3772 = vpow2.f32 %v406_v16  ;;  %v403_v19 = vsub.f32 %v386_v1, %v399_v18 }
 0x259   :  { %3774 = vpow2.f32 %v408_v17 }
 0x25a   :  { %v410_v20 = vmul.f32 1.442695, %v403_v19 }
 0x25c   :  { %3776 = vpow2.f32 %v410_v20 }
 0x25e   :  { %v3771_v21 = vpop.eup %3770 }
 0x25f   :  { %v412_v22 = vsel %vm387_vm1, %v3771_v21, 0.0 }
 0x260   :  { %413 = vadd.xlane.f32.xlu0 %v412_v22 }
 0x262   :  { %v3773_v26 = vpop.eup %3772 }
 0x263   :  { %v3775_v27 = vpop.eup %3774  ;;  %v415_v28 = vsel %vm387_vm1, %v3773_v26, 0.0 }
 0x264   :  { %416 = vadd.xlane.f32.xlu1 %v415_v28  ;;  %v418_v29 = vsel %vm387_vm1, %v3775_v27, 0.0 }
 0x265   :  { %419 = vadd.xlane.f32.xlu0 %v418_v29 }
 0x266   :  { %v3777_v30 = vpop.eup %3776 }
 0x267   :  { %v421_v31 = vsel %vm387_vm1, %v3777_v30, 0.0 }
 0x268   :  { %422 = vadd.xlane.f32.xlu1 %v421_v31 }
 0x2ed   :  { %v414_v33 = vpop.xlane.xlu0 %413 }
 0x2ee   :  { %3778 = vrcp.f32 %v414_v33 }
 0x2f1   :  { %v417_v34 = vpop.xlane.xlu1 %416 }
 0x2f2   :  { %v420_v35 = vpop.xlane.xlu0 %419  ;;  %3780 = vrcp.f32 %v417_v34 }
 0x2f3   :  { %3782 = vrcp.f32 %v420_v35 }
 0x2f5   :  { %v423_v37 = vpop.xlane.xlu1 %422 }
 0x2f6   :  { %3784 = vrcp.f32 %v423_v37 }
 0x2f8   :  { %v3779_v40 = vpop.eup %3778 }
 0x2f9   :  { %v428_v41 = vmul.f32 %v3779_v40, %v3771_v21 }
 0x2fb   :  { %3543 = vmatprep.mubr.msk.f32.mxu1 %vm387_vm1, %v428_v41  ;;  %v533_v42 = vmul.f32 %v532_v38, %v428_v41 }
 0x2fc   :  { %v3781_v43 = vpop.eup %3780 }
 0x2fd   :  { %v3783_v44 = vpop.eup %3782  ;;  %v429_v45 = vmul.f32 %v3781_v43, %v3773_v26  ;;  %v537_v46 = vsel %vm387_vm1, %v533_v42, 0.0 }
 0x2fe   :  { %538 = vadd.xlane.f32.xlu0 %v537_v46  ;;  %v430_v47 = vmul.f32 %v3783_v44, %v3775_v27 }
 0x2ff   :  { %3544 = vmatmul.mubr.msk.f32.vlgmr.msra.gmra.mrb[8].mxu1 %vm387_vm1, %v429_v45  ;;  %v534_v48 = vmul.f32 %v532_v38, %v429_v45 }
 0x300   :  { %v3785_v49 = vpop.eup %3784  ;;  %3546 = vmatprep.mubr.msk.f32.mxu1 %vm387_vm1, %v430_v47  ;;  %v535_v50 = vmul.f32 %v532_v38, %v430_v47 }
 0x301   :  { %v540_v25 = vsel %vm387_vm1, %v534_v48, 0.0  ;;  %v431_v51 = vmul.f32 %v3785_v49, %v3777_v30 }
 0x302   :  { %v543_v52 = vsel %vm387_vm1, %v535_v50, 0.0  ;;  %541 = vadd.xlane.f32.xlu1 %v540_v25 }
 0x303   :  { %544 = vadd.xlane.f32.xlu0 %v543_v52  ;;  %3547 = vmatmul.mubr.msk.f32.gmra.mrb[10].mxu1 %vm387_vm1, %v431_v51  ;;  %v536_v53 = vmul.f32 %v532_v38, %v431_v51 }
 0x305   :  { %v546_v54 = vsel %vm387_vm1, %v536_v53, 0.0 }
 0x306   :  { %547 = vadd.xlane.f32.xlu1 %v546_v54 }
 0x38b   :  { %v4087_v40 = vpop.xlane.xlu0 %538 }
 0x38c   :  { %v1033_v51 = vrot.slane %v4087_v40, 1  ;;  %v1035_v54 = vrot.slane %v4087_v40, 3 }
 0x38f   :  { %v4089_v41 = vpop.xlane.xlu1 %541 }
 0x390   :  { %v4091_v42 = vpop.xlane.xlu0 %544 }
 0x393   :  { %v4093_v43 = vpop.xlane.xlu1 %547 }
 0x3d2   :  { %v3545_v56 = vpop.f32.mrb[8].mxu1 }
 0x3d3   :  { %v510_v57 = vpop.f32.mrb[9].mxu1  ;;  %v643_v58 = vrot.slane %v3545_v56, %v4031_v55  ;;  %v615_v59 = vrot.slane %v3545_v56, %v4018_v36  ;;  %v622_v63 = vrot.slane %v3545_v56, %v4002_v39  ;;  %v608_v2 = vrot.slane %v3545_v56, %v3984_v24 }
 0x3d4   :  { %v559_v62 = vrot.slane %v510_v57, %v4018_v36  ;;  %v573_v1 = vrot.slane %v510_v57, %v4040_v0  ;;  %v587_v3 = vrot.slane %v510_v57, %v4031_v55  ;;  %v629_v4 = vrot.slane %v3545_v56, %v4040_v0 }
 0x3d5   :  { %645 = vbcast.lane.b32.xlu0 %v643_v58, 256  ;;  %617 = vbcast.lane.b32.xlu1 %v615_v59, 256  ;;  %v594_v8 = vrot.slane %v510_v57, %v4047_v6  ;;  %v636_v9 = vrot.slane %v3545_v56, %v4050_v7  ;;  %v601_v11 = vrot.slane %v510_v57, %v4055_v10  ;;  %v1037_v58 = vrot.slane %v4087_v40, 5 }
 0x3d6   :  { %v4035_v60 = vpop.f32.mrb[10].mxu1  ;;  %v650_v12 = vrot.slane %v3545_v56, %v4047_v6  ;;  %v657_v16 = vrot.slane %v3545_v56, %v4055_v10  ;;  %v566_v18 = vrot.slane %v510_v57, %v4002_v39  ;;  %v552_v19 = vrot.slane %v510_v57, %v3984_v24 }
 0x3d7   :  { %v520_v61 = vpop.f32.mrb[11].mxu1  ;;  %v734_v17 = vrot.slane %v4035_v60, %v4002_v39  ;;  %v741_v23 = vrot.slane %v4035_v60, %v4040_v0  ;;  %v748_v20 = vrot.slane %v4035_v60, %v4050_v7  ;;  %v580_v21 = vrot.slane %v510_v57, %v4050_v7 }
 0x3d8   :  { %v755_v22 = vrot.slane %v4035_v60, %v4031_v55  ;;  %v727_v26 = vrot.slane %v4035_v60, %v4018_v36  ;;  %v671_v27 = vrot.slane %v520_v61, %v4018_v36  ;;  %v720_v28 = vrot.slane %v4035_v60, %v3984_v24 }
 0x3d9   :  { %561 = vbcast.lane.b32.xlu0 %v559_v62, 256  ;;  %624 = vbcast.lane.b32.xlu1 %v622_v63, 256  ;;  %v678_v29 = vrot.slane %v520_v61, %v4002_v39  ;;  %v685_v30 = vrot.slane %v520_v61, %v4040_v0  ;;  %v664_v31 = vrot.slane %v520_v61, %v3984_v24  ;;  %v1038_v59 = vrot.slane %v4087_v40, 6 }
 0x3da   :  { %v699_v32 = vrot.slane %v520_v61, %v4031_v55  ;;  %v692_v33 = vrot.slane %v520_v61, %v4050_v7  ;;  %v706_v34 = vrot.slane %v520_v61, %v4047_v6  ;;  %v762_v35 = vrot.slane %v4035_v60, %v4047_v6 }
 0x3db   :  { %v713_v37 = vrot.slane %v520_v61, %v4055_v10  ;;  %v769_v38 = vrot.slane %v4035_v60, %v4055_v10  ;;  %v1039_v62 = vrot.slane %v4087_v40, 7 }
 0x3dd   :  { %575 = vbcast.lane.b32.xlu0 %v573_v1, 256  ;;  %610 = vbcast.lane.b32.xlu1 %v608_v2, 256  ;;  %v1044_v1 = vrot.slane %v4089_v41, 5 }
 0x3e1   :  { %589 = vbcast.lane.b32.xlu0 %v587_v3, 256  ;;  %631 = vbcast.lane.b32.xlu1 %v629_v4, 256 }
 0x3e5   :  { %596 = vbcast.lane.b32.xlu0 %v594_v8, 256  ;;  %638 = vbcast.lane.b32.xlu1 %v636_v9, 256 }
 0x3e9   :  { %603 = vbcast.lane.b32.xlu0 %v601_v11, 256  ;;  %652 = vbcast.lane.b32.xlu1 %v650_v12, 256 }
 0x3ed   :  { %659 = vbcast.lane.b32.xlu1 %v657_v16, 256  ;;  %736 = vbcast.lane.b32.xlu0 %v734_v17, 256 }
 0x3f1   :  { %568 = vbcast.lane.b32.xlu1 %v566_v18, 256  ;;  %743 = vbcast.lane.b32.xlu0 %v741_v23, 256  ;;  %v1040_v18 = vrot.slane %v4089_v41, 1  ;;  %v1041_v23 = vrot.slane %v4089_v41, 2 }
 0x3f5   :  { %554 = vbcast.lane.b32.xlu1 %v552_v19, 256  ;;  %750 = vbcast.lane.b32.xlu0 %v748_v20, 256 }
 0x3f9   :  { %582 = vbcast.lane.b32.xlu1 %v580_v21, 256  ;;  %757 = vbcast.lane.b32.xlu0 %v755_v22, 256 }
 0x3fd   :  { %729 = vbcast.lane.b32.xlu1 %v727_v26, 256  ;;  %673 = vbcast.lane.b32.xlu0 %v671_v27, 256 }
 0x401   :  { %722 = vbcast.lane.b32.xlu1 %v720_v28, 256  ;;  %680 = vbcast.lane.b32.xlu0 %v678_v29, 256 }
 0x405   :  { %687 = vbcast.lane.b32.xlu1 %v685_v30, 256  ;;  %666 = vbcast.lane.b32.xlu0 %v664_v31, 256  ;;  %v1042_v30 = vrot.slane %v4089_v41, 3  ;;  %v1043_v31 = vrot.slane %v4089_v41, 4 }
 0x409   :  { %701 = vbcast.lane.b32.xlu1 %v699_v32, 256  ;;  %694 = vbcast.lane.b32.xlu0 %v692_v33, 256 }
 0x40d   :  { %708 = vbcast.lane.b32.xlu1 %v706_v34, 256  ;;  %764 = vbcast.lane.b32.xlu0 %v762_v35, 256 }
 0x411   :  { %715 = vbcast.lane.b32.xlu1 %v713_v37, 256  ;;  %v1045_v37 = vrot.slane %v4089_v41, 6 }
 0x415   :  { %771 = vbcast.lane.b32.xlu1 %v769_v38, 256 }
 0x447   :  { %v646_v44 = vpop.permute.xlu0 %645  ;;  %v618_v45 = vpop.permute.xlu1 %617 }
 0x448   :  { %v786_v46 = vmul.f32 %v646_v44, %v3951_v13  ;;  %v782_v47 = vmul.f32 %v618_v45, %v3951_v13 }
 0x44a   :  { %v896_v48 = vsel %vm71_vm0, %v786_v46, 0.0  ;;  %v868_v49 = vsel %vm71_vm0, %v782_v47, 0.0 }
 0x44b   :  { %v897_v50 = vrot.slane %v896_v48, 4  ;;  %v869_v25 = vrot.slane %v868_v49, 4  ;;  %v562_v52 = vpop.permute.xlu0 %561  ;;  %v625_v53 = vpop.permute.xlu1 %624 }
 0x44c   :  { %v774_v56 = vmul.f32 %v562_v52, %v3932_v5  ;;  %v783_v57 = vmul.f32 %v625_v53, %v3951_v13 }
 0x44d   :  { %v898_v60 = vadd.f32 %v897_v50, %v896_v48  ;;  %v870_v61 = vadd.f32 %v869_v25, %v868_v49 }
 0x44e   :  { %v812_v2 = vsel %vm71_vm0, %v774_v56, 0.0  ;;  %v875_v3 = vsel %vm71_vm0, %v783_v57, 0.0 }
 0x44f   :  { %v899_v8 = vrot.slane %v898_v60, 2  ;;  %v871_v9 = vrot.slane %v870_v61, 2  ;;  %v813_v11 = vrot.slane %v812_v2, 4  ;;  %v876_v12 = vrot.slane %v875_v3, 4  ;;  %v576_v16 = vpop.permute.xlu0 %575  ;;  %v611_v17 = vpop.permute.xlu1 %610 }
 0x450   :  { %v776_v19 = vmul.f32 %v576_v16, %v3932_v5  ;;  %v781_v20 = vmul.f32 %v611_v17, %v3951_v13 }
 0x451   :  { %v900_v21 = vadd.f32 %v899_v8, %v898_v60  ;;  %v872_v22 = vadd.f32 %v871_v9, %v870_v61  ;;  %v814_v26 = vadd.f32 %v813_v11, %v812_v2  ;;  %v877_v27 = vadd.f32 %v876_v12, %v875_v3 }
 0x452   :  { %v826_v28 = vsel %vm71_vm0, %v776_v19, 0.0  ;;  %v861_v29 = vsel %vm71_vm0, %v781_v20, 0.0 }
 0x453   :  { %v901_v32 = vrot.slane %v900_v21, 1  ;;  %v873_v33 = vrot.slane %v872_v22, 1  ;;  %v590_v34 = vpop.permute.xlu0 %589  ;;  %v632_v35 = vpop.permute.xlu1 %631  ;;  %v827_v44 = vrot.slane %v826_v28, 4  ;;  %v862_v45 = vrot.slane %v861_v29, 4 }
 0x454   :  { %v778_v46 = vmul.f32 %v590_v34, %v3932_v5  ;;  %v784_v47 = vmul.f32 %v632_v35, %v3951_v13  ;;  %v815_v48 = vrot.slane %v814_v26, 2  ;;  %v878_v49 = vrot.slane %v877_v27, 2 }
 0x455   :  { %v828_v52 = vadd.f32 %v827_v44, %v826_v28  ;;  %v863_v53 = vadd.f32 %v862_v45, %v861_v29  ;;  %v902_v60 = vadd.f32 %v901_v32, %v900_v21  ;;  %v874_v11 = vadd.f32 %v873_v33, %v872_v22 }
 0x456   :  { %v840_v56 = vsel %vm71_vm0, %v778_v46, 0.0  ;;  %v882_v57 = vsel %vm71_vm0, %v784_v47, 0.0  ;;  %v816_v19 = vadd.f32 %v815_v48, %v814_v26  ;;  %v879_v21 = vadd.f32 %v878_v49, %v877_v27 }
 0x457   :  { %v597_v61 = vpop.permute.xlu0 %596  ;;  %v639_v2 = vpop.permute.xlu1 %638  ;;  %v829_v12 = vrot.slane %v828_v52, 2  ;;  %v841_v16 = vrot.slane %v840_v56, 4  ;;  %v883_v17 = vrot.slane %v882_v57, 4  ;;  %v864_v32 = vrot.slane %v863_v53, 2 }
 0x458   :  { %v779_v44 = vmul.f32 %v597_v61, %v3932_v5  ;;  %v785_v45 = vmul.f32 %v639_v2, %v3951_v13  ;;  %v4139_v47 = vadd.f32 %v1044_v1, %v902_v60  ;;  %v4141_v48 = vadd.f32 %v1040_v18, %v874_v11 }
 0x459   :  { %v842_v34 = vadd.f32 %v841_v16, %v840_v56  ;;  %v884_v35 = vadd.f32 %v883_v17, %v882_v57  ;;  %v830_v27 = vadd.f32 %v829_v12, %v828_v52  ;;  %v817_v16 = vrot.slane %v816_v19, 1 }
 0x45a   :  { %v847_v56 = vsel %vm71_vm0, %v779_v44, 0.0  ;;  %v889_v57 = vsel %vm71_vm0, %v785_v45, 0.0  ;;  %v880_v17 = vrot.slane %v879_v21, 1  ;;  %v865_v29 = vadd.f32 %v864_v32, %v863_v53 }
 0x45b   :  { %v604_v46 = vpop.permute.xlu0 %603  ;;  %v653_v22 = vpop.permute.xlu1 %652  ;;  %v843_v49 = vrot.slane %v842_v34, 2  ;;  %v885_v28 = vrot.slane %v884_v35, 2  ;;  %v848_v26 = vrot.slane %v847_v56, 4  ;;  %v890_v9 = vrot.slane %v889_v57, 4 }
 0x45c   :  { %v780_v1 = vmul.f32 %v604_v46, %v3932_v5  ;;  %v787_v18 = vmul.f32 %v653_v22, %v3951_v13  ;;  %v1178_v12 = vrot.slane %v4141_v48, 7  ;;  %v831_v44 = vrot.slane %v830_v27, 1 }
 0x45d   :  { %v844_v45 = vadd.f32 %v843_v49, %v842_v34  ;;  %v849_v8 = vadd.f32 %v848_v26, %v847_v56  ;;  %v891_v2 = vadd.f32 %v890_v9, %v889_v57  ;;  %v818_v32 = vadd.f32 %v817_v16, %v816_v19 }
 0x45e   :  { %v854_v3 = vsel %vm71_vm0, %v780_v1, 0.0  ;;  %v903_v53 = vsel %vm71_vm0, %v787_v18, 0.0  ;;  %v881_v25 = vadd.f32 %v880_v17, %v879_v21  ;;  %v866_v61 = vrot.slane %v865_v29, 1 }
 0x45f   :  { %v737_v52 = vpop.permute.xlu0 %736  ;;  %v660_v60 = vpop.permute.xlu1 %659  ;;  %v886_v46 = vadd.f32 %v885_v28, %v884_v35  ;;  %v850_v50 = vrot.slane %v849_v8, 2  ;;  %v892_v22 = vrot.slane %v891_v2, 2  ;;  %v855_v4 = vrot.slane %v854_v3, 4 }
 0x460   :  { %v904_v33 = vrot.slane %v903_v53, 4  ;;  %v832_v38 = vadd.f32 %v831_v44, %v830_v27  ;;  %v845_v20 = vrot.slane %v844_v45, 1  ;;  %v799_v34 = vmul.f32 %v737_v52, %v3965_v15 }
 0x461   :  { %v788_v9 = vmul.f32 %v660_v60, %v3951_v13  ;;  %v851_v26 = vadd.f32 %v850_v50, %v849_v8  ;;  %v893_v49 = vadd.f32 %v892_v22, %v891_v2  ;;  %v856_v56 = vadd.f32 %v855_v4, %v854_v3 }
 0x462   :  { %v905_v19 = vadd.f32 %v904_v33, %v903_v53  ;;  %v4157_v28 = vadd.f32 %v1033_v51, %v818_v32  ;;  %v4161_v21 = vadd.f32 %v1041_v23, %v881_v25  ;;  %v987_v35 = vsel %vm71_vm0, %v799_v34, 0.0 }
 0x463   :  { %v744_v63 = vpop.permute.xlu0 %743  ;;  %v569_v11 = vpop.permute.xlu1 %568  ;;  %v910_v27 = vsel %vm71_vm0, %v788_v9, 0.0  ;;  %v867_v57 = vadd.f32 %v866_v61, %v865_v29  ;;  %v887_v16 = vrot.slane %v886_v46, 1  ;;  %v857_v17 = vrot.slane %v856_v56, 2 }
 0x464   :  { %v906_v13 = vrot.slane %v905_v19, 2  ;;  %v988_v4 = vrot.slane %v987_v35, 4  ;;  %v911_v3 = vrot.slane %v910_v27, 4  ;;  %v800_v33 = vmul.f32 %v744_v63, %v3965_v15 }
 0x465   :  { %v775_v51 = vmul.f32 %v569_v11, %v3932_v5  ;;  %v4169_v23 = vadd.f32 %v1035_v54, %v832_v38  ;;  %v846_v25 = vadd.f32 %v845_v20, %v844_v45  ;;  %v852_v2 = vrot.slane %v851_v26, 1 }
 0x466   :  { %v894_v1 = vrot.slane %v893_v49, 1  ;;  %v989_v18 = vadd.f32 %v988_v4, %v987_v35  ;;  %v912_v29 = vadd.f32 %v911_v3, %v910_v27  ;;  %v994_v61 = vsel %vm71_vm0, %v800_v33, 0.0 }
 0x467   :  { %v751_v50 = vpop.permute.xlu0 %750  ;;  %v555_v8 = vpop.permute.xlu1 %554  ;;  %v819_v52 = vsel %vm71_vm0, %v775_v51, 0.0  ;;  %v1157_v60 = vrot.slane %v4157_v28, 7  ;;  %v1101_v44 = vadd.f32 %v867_v57, %v4089_v41  ;;  %v888_v63 = vadd.f32 %v887_v16, %v886_v46 }
 0x468   :  { %v858_v53 = vadd.f32 %v857_v17, %v856_v56  ;;  %v907_v32 = vadd.f32 %v906_v13, %v905_v19  ;;  %v990_v22 = vrot.slane %v989_v18, 2  ;;  %v995_v54 = vrot.slane %v994_v61, 4 }
 0x469   :  { %v820_v38 = vrot.slane %v819_v52, 4  ;;  %v1180_v45 = vrot.slane %v4161_v21, 6  ;;  %v1163_v34 = vrot.slane %v4169_v23, 5  ;;  %v4179_v9 = vadd.f32 %v1037_v58, %v846_v25 }
 0x46a   :  { %v853_v35 = vadd.f32 %v852_v2, %v851_v26  ;;  %v895_v27 = vadd.f32 %v894_v1, %v893_v49  ;;  %v913_v4 = vrot.slane %v912_v29, 2  ;;  %v996_v57 = vadd.f32 %v995_v54, %v994_v61 }
 0x46b   :  { %v583_v11 = vpop.permute.xlu1 %582  ;;  %v758_v20 = vpop.permute.xlu0 %757  ;;  %v821_v46 = vadd.f32 %v820_v38, %v819_v52  ;;  %v4184_v56 = vsel %vm1158_vm2, %v1178_v12, %v1101_v44  ;;  %v4188_v19 = vadd.f32 %v1042_v30, %v888_v63  ;;  %v801_v16 = vmul.f32 %v751_v50, %v3965_v15 }
 0x46c   :  { %v773_v17 = vmul.f32 %v555_v8, %v3932_v5  ;;  %v859_v58 = vrot.slane %v858_v53, 1  ;;  %v908_v13 = vrot.slane %v907_v32, 1  ;;  %v991_v26 = vadd.f32 %v990_v22, %v989_v18 }
 0x46d   :  { %v822_v49 = vrot.slane %v821_v46, 2  ;;  %v1169_v3 = vrot.slane %v4179_v9, 3  ;;  %v4195_v48 = vadd.f32 %v1038_v59, %v853_v35  ;;  %v1001_v12 = vsel %vm71_vm0, %v801_v16, 0.0 }
 0x46e   :  { %v805_v33 = vsel %vm71_vm0, %v773_v17, 0.0  ;;  %v4201_v50 = vadd.f32 %v1043_v31, %v895_v27  ;;  %v914_v8 = vadd.f32 %v913_v4, %v912_v29  ;;  %v997_v51 = vrot.slane %v996_v57, 2 }
 0x46f   :  { %v730_v30 = vpop.permute.xlu1 %729  ;;  %v823_v25 = vadd.f32 %v822_v49, %v821_v46  ;;  %v674_v2 = vpop.permute.xlu0 %673  ;;  %v1002_v1 = vrot.slane %v1001_v12, 4  ;;  %v806_v18 = vrot.slane %v805_v33, 4  ;;  %v802_v61 = vmul.f32 %v758_v20, %v3965_v15 }
 0x470   :  { %v777_v59 = vmul.f32 %v583_v11, %v3932_v5  ;;  %v1182_v52 = vrot.slane %v4188_v19, 5  ;;  %v860_v44 = vadd.f32 %v859_v58, %v858_v53  ;;  %v909_v63 = vadd.f32 %v908_v13, %v907_v32 }
 0x471   :  { %v992_v22 = vrot.slane %v991_v26, 1  ;;  %v1003_v54 = vadd.f32 %v1002_v1, %v1001_v12  ;;  %v807_v38 = vadd.f32 %v806_v18, %v805_v33  ;;  %v1008_v31 = vsel %vm71_vm0, %v802_v61, 0.0 }
 0x472   :  { %v833_v29 = vsel %vm71_vm0, %v777_v59, 0.0  ;;  %v1184_v27 = vrot.slane %v4201_v50, 4  ;;  %v915_v4 = vrot.slane %v914_v8, 1  ;;  %v998_v46 = vadd.f32 %v997_v51, %v996_v57 }
 0x473   :  { %v824_v20 = vrot.slane %v823_v25, 1  ;;  %v808_v16 = vrot.slane %v807_v38, 2  ;;  %v1009_v5 = vrot.slane %v1008_v31, 4  ;;  %v834_v11 = vrot.slane %v833_v29, 4  ;;  %v723_v17 = vpop.permute.xlu1 %722  ;;  %v681_v49 = vpop.permute.xlu0 %680 }
 0x474   :  { %v4212_v53 = vadd.f32 %v1039_v62, %v860_v44  ;;  %v4216_v32 = vadd.f32 %v1045_v37, %v909_v63  ;;  %v790_v58 = vmul.f32 %v674_v2, %v3956_v14  ;;  %v798_v13 = vmul.f32 %v730_v30, %v3965_v15 }
 0x475   :  { %v993_v12 = vadd.f32 %v992_v22, %v991_v26  ;;  %v1004_v57 = vrot.slane %v1003_v54, 2  ;;  %v809_v33 = vadd.f32 %v808_v16, %v807_v38  ;;  %v835_v51 = vadd.f32 %v834_v11, %v833_v29 }
 0x476   :  { %v916_v1 = vadd.f32 %v915_v4, %v914_v8  ;;  %v999_v18 = vrot.slane %v998_v46, 1  ;;  %v924_v61 = vsel %vm71_vm0, %v790_v58, 0.0  ;;  %v980_v62 = vsel %vm71_vm0, %v798_v13, 0.0 }
 0x477   :  { %v825_v59 = vadd.f32 %v824_v20, %v823_v25  ;;  %v810_v44 = vrot.slane %v809_v33, 1  ;;  %v1010_v35 = vadd.f32 %v1009_v5, %v1008_v31  ;;  %v836_v37 = vrot.slane %v835_v51, 2  ;;  %v688_v16 = vpop.permute.xlu1 %687  ;;  %v667_v11 = vpop.permute.xlu0 %666 }
 0x478   :  { %v925_v63 = vrot.slane %v924_v61, 4  ;;  %v981_v2 = vrot.slane %v980_v62, 4  ;;  %v791_v30 = vmul.f32 %v681_v49, %v3956_v14  ;;  %v797_v26 = vmul.f32 %v723_v17, %v3965_v15 }
 0x479   :  { %v5034_v22 = vrot.slane %v4093_v43, 2  ;;  %v1005_v8 = vadd.f32 %v1004_v57, %v1003_v54  ;;  %v811_v29 = vadd.f32 %v810_v44, %v809_v33  ;;  %v837_v4 = vadd.f32 %v836_v37, %v835_v51 }
 0x47a   :  { %v926_v25 = vadd.f32 %v925_v63, %v924_v61  ;;  %v982_v20 = vadd.f32 %v981_v2, %v980_v62  ;;  %v931_v31 = vsel %vm71_vm0, %v791_v30, 0.0  ;;  %v973_v5 = vsel %vm71_vm0, %v797_v26, 0.0 }
 0x47b   :  { %v4226_v38 = vadd.f32 %v5034_v22, %v993_v12  ;;  %v5035_v58 = vrot.slane %v4089_v41, 7  ;;  %v1000_v17 = vadd.f32 %v999_v18, %v998_v46  ;;  %v5036_v13 = vrot.slane %v4087_v40, 2  ;;  %v702_v26 = vpop.permute.xlu1 %701 }
 0x47c   :  { %v1011_v49 = vrot.slane %v1010_v35, 2  ;;  %v927_v12 = vrot.slane %v926_v25, 2  ;;  %v983_v57 = vrot.slane %v982_v20, 2  ;;  %v932_v33 = vrot.slane %v931_v31, 4 }
 0x47d   :  { %v4232_v15 = vadd.f32 %v5035_v58, %v916_v1  ;;  %v1095_v54 = vadd.f32 %v5036_v13, %v825_v59  ;;  %v974_v51 = vrot.slane %v973_v5, 4  ;;  %v1175_v61 = vrot.slane %v4212_v53, 1 }
 0x47e   :  { %v1188_v62 = vrot.slane %v4216_v32, 2  ;;  %v1006_v44 = vrot.slane %v1005_v8, 1  ;;  %v838_v37 = vrot.slane %v837_v4, 1  ;;  %v1093_v41 = vadd.f32 %v811_v29, %v4087_v40 }
 0x47f   :  { %v928_v1 = vadd.f32 %v927_v12, %v926_v25  ;;  %v984_v46 = vadd.f32 %v983_v57, %v982_v20  ;;  %v933_v18 = vadd.f32 %v932_v33, %v931_v31  ;;  %v1208_v59 = vrot.slane %v4226_v38, 6  ;;  %v695_v25 = vpop.permute.xlu0 %694 }
 0x480   :  { %v1190_v63 = vrot.slane %v4232_v15, 1  ;;  %v975_v2 = vadd.f32 %v974_v51, %v973_v5  ;;  %v789_v30 = vmul.f32 %v667_v11, %v3956_v14  ;;  %v5037_v22 = vrot.slane %v4093_v43, 3 }
 0x481   :  { %v1160_v58 = vrot.slane %v1095_v54, 6  ;;  %v4246_v13 = vadd.f32 %v1011_v49, %v1010_v35  ;;  %v934_v29 = vrot.slane %v933_v18, 2  ;;  %v4248_v20 = vadd.f32 %v1006_v44, %v1005_v8 }
 0x482   :  { %v4244_v32 = vadd.f32 %v5037_v22, %v1000_v17  ;;  %v839_v31 = vadd.f32 %v838_v37, %v837_v4  ;;  %v976_v12 = vrot.slane %v975_v2, 2  ;;  %v917_v57 = vsel %vm71_vm0, %v789_v30, 0.0 }
 0x483   :  { %v1159_v5 = vsel %vm1158_vm2, %v1157_v60, %v1093_v41  ;;  %v929_v11 = vrot.slane %v928_v1, 1  ;;  %v985_v15 = vrot.slane %v984_v46, 1  ;;  %v918_v33 = vrot.slane %v917_v57, 4 }
 0x484   :  { %v935_v17 = vadd.f32 %v934_v29, %v933_v18  ;;  %v1181_v35 = vsel %vm1161_vm3, %v1180_v45, %v4184_v56  ;;  %v792_v8 = vmul.f32 %v688_v16, %v3956_v14  ;;  %v793_v4 = vmul.f32 %v695_v25, %v3956_v14  ;;  %v709_v14 = vpop.permute.xlu1 %708  ;;  %v4279_v29 = vld [vmem:[%s5024_s0 + $0x10] sm:$0xff] }
 0x485   :  { %v1013_v54 = vrot.slane %v4246_v13, 1  ;;  %v977_v49 = vadd.f32 %v976_v12, %v975_v2  ;;  %v919_v51 = vadd.f32 %v918_v33, %v917_v57  ;;  %v1183_v28 = vsel %vm1164_vm4, %v1182_v52, %v1181_v35 }
 0x486   :  { %v5038_v60 = vrot.slane %v4087_v40, 4  ;;  %v1185_v21 = vsel %vm1167_vm5, %v1184_v27, %v1183_v28  ;;  %v938_v45 = vsel %vm71_vm0, %v792_v8, 0.0  ;;  %v945_v56 = vsel %vm71_vm0, %v793_v4, 0.0 }
 0x487   :  { %v1162_v16 = vsel %vm1161_vm3, %v1160_v58, %v1159_v5  ;;  %v930_v37 = vadd.f32 %v929_v11, %v928_v1  ;;  %v986_v41 = vadd.f32 %v985_v15, %v984_v46  ;;  %v920_v18 = vrot.slane %v919_v51, 2 }
 0x488   :  { %v1097_v44 = vadd.f32 %v5038_v60, %v839_v31  ;;  %v936_v19 = vrot.slane %v935_v17, 1  ;;  %v5039_v52 = vrot.slane %v4139_v47, 3  ;;  %v939_v2 = vrot.slane %v938_v45, 4  ;;  %v765_v31 = vpop.permute.xlu0 %764  ;;  %v716_v4 = vpop.permute.xlu1 %715 }
 0x489   :  { %v946_v30 = vrot.slane %v945_v56, 4  ;;  %v978_v50 = vrot.slane %v977_v49, 1  ;;  %v921_v22 = vadd.f32 %v920_v18, %v919_v51  ;;  %v794_v1 = vmul.f32 %v4279_v29, %v702_v26 }
 0x48a   :  { %v1187_v40 = vsel %vm1170_vm6, %v5039_v52, %v1185_v21  ;;  %v1166_v46 = vrot.slane %v1097_v44, 4  ;;  %v940_v25 = vadd.f32 %v939_v2, %v938_v45  ;;  %v5040_v12 = vrot.slane %v4091_v42, 1  ;;  %v4300_v44 = vld [vmem:[%s5024_s0 + $0x18] sm:$0xff] }
 0x48b   :  { %v1189_v27 = vsel %vm1173_vm7, %v1188_v62, %v1187_v40  ;;  %v947_v47 = vadd.f32 %v946_v30, %v945_v56  ;;  %v922_v5 = vrot.slane %v921_v22, 1  ;;  %v3835_v62 = vld [vmem:[%s5024_s0 + $0x8] sm:$0xff]  ;;  %v952_v15 = vsel %vm71_vm0, %v794_v1, 0.0 }
 0x48c   :  { %v1191_v58 = vsel %vm1176_vm8, %v1190_v63, %v1189_v27  ;;  %v1110_v57 = vadd.f32 %v5040_v12, %v930_v37  ;;  %v5041_v26 = vrot.slane %v4093_v43, 1  ;;  %v941_v63 = vrot.slane %v940_v25, 2 }
 0x48d   :  { %v4288_v11 = vadd.f32 %v3835_v62, %v1191_v58  ;;  %v948_v35 = vrot.slane %v947_v47, 2  ;;  %v953_v8 = vrot.slane %v952_v15, 4  ;;  %v937_v51 = vadd.f32 %v936_v19, %v935_v17 }
 0x48e   :  { %v4293_v33 = vadd.f32 %v5041_v26, %v986_v41  ;;  %v979_v28 = vadd.f32 %v978_v50, %v977_v49  ;;  %v803_v21 = vmul.f32 %v4300_v44, %v765_v31  ;;  %v942_v45 = vadd.f32 %v941_v63, %v940_v25  ;;  %v772_v26 = vpop.permute.xlu1 %771 }
 0x48f   :  { %v1231_v60 = vsel %vm71_vm0, %v4288_v11, 0.0  ;;  %v949_v56 = vadd.f32 %v948_v35, %v947_v47  ;;  %v954_v37 = vadd.f32 %v953_v8, %v952_v15  ;;  %v795_v41 = vmul.f32 %v4279_v29, %v709_v14 }
 0x490   :  { %1232 = vadd.xlane.f32.xlu1 %v1231_v60  ;;  %v923_v18 = vadd.f32 %v922_v5, %v921_v22  ;;  %v1015_v17 = vsel %vm71_vm0, %v803_v21, 0.0  ;;  %v796_v49 = vmul.f32 %v4279_v29, %v716_v4  ;;  %v1165_v19 = vsel %vm1164_vm4, %v1163_v34, %v1162_v16 }
 0x491   :  { %v943_v52 = vrot.slane %v942_v45, 1  ;;  %v950_v40 = vrot.slane %v949_v56, 1  ;;  %v955_v2 = vrot.slane %v954_v37, 2  ;;  %v1016_v30 = vrot.slane %v1015_v17, 4 }
 0x492   :  { %v1192_v50 = vrot.slane %v1110_v57, 7  ;;  %v959_v27 = vsel %vm71_vm0, %v795_v41, 0.0  ;;  %v966_v1 = vsel %vm71_vm0, %v796_v49, 0.0  ;;  %v1168_v14 = vsel %vm1167_vm5, %v1166_v46, %v1165_v19 }
 0x493   :  { %v5042_v22 = vrot.slane %v4091_v42, 2  ;;  %v944_v25 = vadd.f32 %v943_v52, %v942_v45  ;;  %v951_v47 = vadd.f32 %v950_v40, %v949_v56  ;;  %v956_v31 = vadd.f32 %v955_v2, %v954_v37 }
 0x494   :  { %v1017_v23 = vadd.f32 %v1016_v30, %v1015_v17  ;;  %v960_v12 = vrot.slane %v959_v27, 4  ;;  %v967_v34 = vrot.slane %v966_v1, 4  ;;  %v1171_v16 = vsel %vm1170_vm6, %v1169_v3, %v1168_v14 }
 0x495   :  { %v1111_v58 = vadd.f32 %v5042_v22, %v937_v51  ;;  %v1117_v57 = vadd.f32 %v979_v28, %v4093_v43  ;;  %v1109_v5 = vadd.f32 %v923_v18, %v4091_v42  ;;  %v957_v62 = vrot.slane %v956_v31, 1 }
 0x496   :  { %v5043_v46 = vrot.slane %v4195_v48, 2  ;;  %v1018_v63 = vrot.slane %v1017_v23, 2  ;;  %v961_v35 = vadd.f32 %v960_v12, %v959_v27  ;;  %v968_v8 = vadd.f32 %v967_v34, %v966_v1  ;;  %v3837_v48 = vld [vmem:[%s5024_s0] sm:$0xff] }
 0x497   :  { %v5044_v9 = vrot.slane %v4091_v42, 3  ;;  %v5045_v51 = vrot.slane %v4091_v42, 4  ;;  %v958_v60 = vadd.f32 %v957_v62, %v956_v31  ;;  %v804_v53 = vmul.f32 %v4300_v44, %v772_v26 }
 0x498   :  { %v1174_v15 = vsel %vm1173_vm7, %v5043_v46, %v1171_v16  ;;  %v1019_v45 = vadd.f32 %v1018_v63, %v1017_v23  ;;  %v962_v56 = vrot.slane %v961_v35, 2  ;;  %v969_v37 = vrot.slane %v968_v8, 2 }
 0x499   :  { %v1177_v4 = vsel %vm1176_vm8, %v1175_v61, %v1174_v15  ;;  %v1112_v3 = vadd.f32 %v5044_v9, %v944_v25  ;;  %v1113_v28 = vadd.f32 %v5045_v51, %v951_v47  ;;  %v1194_v41 = vrot.slane %v1111_v58, 6 }
 0x49a   :  { %v4332_v21 = vadd.f32 %v3837_v48, %v1177_v4  ;;  %v1193_v61 = vsel %vm1158_vm2, %v1192_v50, %v1109_v5  ;;  %v1265_v17 = vmul.f32 %v4288_v11, %v4288_v11  ;;  %v1020_v49 = vrot.slane %v1019_v45, 1 }
 0x49b   :  { %v963_v19 = vadd.f32 %v962_v56, %v961_v35  ;;  %v970_v52 = vadd.f32 %v969_v37, %v968_v8  ;;  %v1022_v40 = vsel %vm71_vm0, %v804_v53, 0.0  ;;  %v1206_v2 = vrot.slane %v4293_v33, 7 }
 0x49c   :  { %v1228_v18 = vsel %vm71_vm0, %v4332_v21, 0.0  ;;  %v1196_v30 = vrot.slane %v1112_v3, 5  ;;  %v5046_v27 = vrot.slane %v4091_v42, 5  ;;  %v1023_v14 = vrot.slane %v1022_v40, 4 }
 0x49d   :  { %1229 = vadd.xlane.f32.xlu0 %v1228_v18  ;;  %v1195_v50 = vsel %vm1161_vm3, %v1194_v41, %v1193_v61  ;;  %v1198_v22 = vrot.slane %v1113_v28, 4  ;;  %v964_v58 = vrot.slane %v963_v19, 1  ;;  %v971_v25 = vrot.slane %v970_v52, 1 }
 0x49e   :  { %v1114_v1 = vadd.f32 %v5046_v27, %v958_v60  ;;  %v1207_v47 = vsel %vm1158_vm2, %v1206_v2, %v1117_v57  ;;  %v1024_v31 = vadd.f32 %v1023_v14, %v1022_v40  ;;  %v1271_v23 = vsel %vm71_vm0, %v1265_v17, 0.0 }
 0x49f   :  { %v1264_v12 = vmul.f32 %v4332_v21, %v4332_v21  ;;  %v5047_v33 = vrot.slane %v4093_v43, 4  ;;  %v1021_v16 = vadd.f32 %v1020_v49, %v1019_v45  ;;  %v965_v5 = vadd.f32 %v964_v58, %v963_v19 }
 0x4a0   :  { %v972_v62 = vadd.f32 %v971_v25, %v970_v52  ;;  %v1014_v46 = vadd.f32 %v1013_v54, %v4246_v13  ;;  %v1197_v57 = vsel %vm1164_vm4, %v1196_v30, %v1195_v50  ;;  %v1200_v15 = vrot.slane %v1114_v1, 3  ;;  %v50_v25 = vld [vmem:[%s5029_s5] sm:$0xff] }
 0x4a1   :  { %v1121_v34 = vadd.f32 %v5047_v33, %v4248_v20  ;;  %1272 = vadd.xlane.f32.xlu0 %v1271_v23  ;;  %v1025_v26 = vrot.slane %v1024_v31, 2  ;;  %v1209_v63 = vsel %vm1161_vm3, %v1208_v59, %v1207_v47  ;;  %v5048_v35 = vrot.slane %v4091_v42, 6  ;;  %v52_v47 = vld [vmem:[%s5029_s5 + $0x10] sm:$0xff]  ;;  %v53_v23 = vld [vmem:[%s5029_s5 + $0x18] sm:$0xff]  ;;  %v54_v33 = vld [vmem:[%s5030_s6] sm:$0xff] }
 0x4a2   :  { %v5049_v20 = vrot.slane %v4091_v42, 7  ;;  %v1199_v9 = vsel %vm1167_vm5, %v1198_v22, %v1197_v57  ;;  %v1210_v3 = vrot.slane %v4244_v32, 5  ;;  %v1058_v13 = vrot.slane %v4093_v43, 5  ;;  %v58_v57 = vld [vmem:[%s5030_s6 + $0x20] sm:$0xff] }
 0x4a3   :  { %v1115_v8 = vadd.f32 %v5048_v35, %v965_v5  ;;  %v1026_v54 = vadd.f32 %v1025_v26, %v1024_v31  ;;  %v1268_v51 = vsel %vm71_vm0, %v1264_v12, 0.0  ;;  %v5050_v28 = vrot.slane %v4093_v43, 6 }
 0x4a4   :  { %v1116_v4 = vadd.f32 %v5049_v20, %v972_v62  ;;  %v1122_v48 = vadd.f32 %v1058_v13, %v1014_v46  ;;  %v1201_v42 = vsel %vm1170_vm6, %v1200_v15, %v1199_v9  ;;  %v1211_v56 = vsel %vm1164_vm4, %v1210_v3, %v1209_v63  ;;  %v57_v62 = vld [vmem:[%s5030_s6 + $0x18] sm:$0xff]  ;;  %v59_v15 = vld [vmem:[%s5030_s6 + $0x28] sm:$0xff] }
 0x4a5   :  { %v1123_v38 = vadd.f32 %v5050_v28, %v1021_v16  ;;  %v1202_v60 = vrot.slane %v1115_v8, 2  ;;  %1269 = vadd.xlane.f32.xlu0 %v1268_v51  ;;  %v1027_v45 = vrot.slane %v1026_v54, 1  ;;  %v1212_v37 = vrot.slane %v1121_v34, 4  ;;  %v55_v34 = vld [vmem:[%s5030_s6 + $0x8] sm:$0xff]  ;;  %v56_v16 = vld [vmem:[%s5030_s6 + $0x10] sm:$0xff] }
 0x4a6   :  { %v1204_v59 = vrot.slane %v1116_v4, 1  ;;  %v1060_v53 = vrot.slane %v4093_v43, 7  ;;  %v1214_v19 = vrot.slane %v1122_v48, 3  ;;  %v3699_v12 = vpack.c.bf16 %v53_v23, %v52_v47 }
 0x4a7   :  { %v1203_v32 = vsel %vm1173_vm7, %v1202_v60, %v1201_v42  ;;  %v1028_v41 = vadd.f32 %v1027_v45, %v1026_v54  ;;  %v1216_v18 = vrot.slane %v1123_v38, 2  ;;  %v1213_v49 = vsel %vm1167_vm5, %v1212_v37, %v1211_v56 }
 0x4a8   :  { %v1205_v61 = vsel %vm1176_vm8, %v1204_v59, %v1203_v32  ;;  %v1215_v43 = vsel %vm1170_vm6, %v1214_v19, %v1213_v49  ;;  %v3703_v5 = vpack.c.bf16 %v55_v34, %v54_v33  ;;  %v3707_v46 = vpack.c.bf16 %v57_v62, %v56_v16 }
 0x4a9   :  { %v4375_v17 = vadd.f32 %v4279_v29, %v1205_v61  ;;  %v1124_v52 = vadd.f32 %v1060_v53, %v1028_v41  ;;  %v1217_v27 = vsel %vm1173_vm7, %v1216_v18, %v1215_v43  ;;  %v3711_v26 = vpack.c.bf16 %v59_v15, %v58_v57 }
 0x4aa   :  { %3704 = vmatprep.subr.bf16.mxu1 %v3703_v5 }
 0x4ab   :  { %v1234_v40 = vsel %vm71_vm0, %v4375_v17, 0.0  ;;  %v1266_v2 = vmul.f32 %v4375_v17, %v4375_v17  ;;  %v1218_v30 = vrot.slane %v1124_v52, 1  ;;  %3706 = vmatpush3.bf16.msra.mxu1 %v3703_v5 }
 0x4ac   :  { %1235 = vadd.xlane.f32.xlu0 %v1234_v40  ;;  %3708 = vmatprep.subr.bf16.mxu1 %v3707_v46 }
 0x4ad   :  { %v1219_v1 = vsel %vm1176_vm8, %v1218_v30, %v1217_v27  ;;  %v1274_v29 = vsel %vm71_vm0, %v1266_v2, 0.0 }
 0x4ae   :  { %v4387_v14 = vadd.f32 %v4300_v44, %v1219_v1  ;;  %v51_v44 = vld [vmem:[%s5029_s5 + $0x8] sm:$0xff] }
 0x4af   :  { %v3695_v31 = vpack.c.bf16 %v51_v44, %v50_v25  ;;  %3710 = vmatpush3.bf16.msra.mxu1 %v3707_v46 }
 0x4b0   :  { %1275 = vadd.xlane.f32.xlu0 %v1274_v29  ;;  %v1237_v50 = vsel %vm71_vm0, %v4387_v14, 0.0  ;;  %v1267_v22 = vmul.f32 %v4387_v14, %v4387_v14  ;;  %3712 = vmatprep.subr.bf16.mxu1 %v3711_v26 }
 0x4b1   :  { %1238 = vadd.xlane.f32.xlu1 %v1237_v50  ;;  %3696 = vmatprep.subr.bf16.mxu0 %v3695_v31 }
 0x4b2   :  { %v1277_v58 = vsel %vm71_vm0, %v1267_v22, 0.0  ;;  %3698 = vmatpush3.bf16.msra.mxu0 %v3695_v31 }
 0x4b3   :  { %3700 = vmatprep.subr.bf16.mxu0 %v3699_v12  ;;  %3714 = vmatpush3.bf16.msra.mxu1 %v3711_v26 }
 0x4b5   :  { %1278 = vadd.xlane.f32.xlu1 %v1277_v58 }
 0x4b6   :  { %3702 = vmatpush3.bf16.msra.mxu0 %v3699_v12 }
 0x51d   :  { %v1233_v63 = vpop.xlane.xlu1 %1232 }
 0x51e   :  { %v1246_v35 = vrot.slane %v1233_v63, 4 }
 0x520   :  { %v1247_v8 = vadd.f32 %v1246_v35, %v1233_v63 }
 0x522   :  { %v1248_v20 = vrot.slane %v1247_v8, 2 }
 0x524   :  { %v1249_v9 = vadd.f32 %v1248_v20, %v1247_v8 }
 0x526   :  { %v1250_v51 = vrot.slane %v1249_v9, 1 }
 0x528   :  { %v1251_v45 = vadd.f32 %v1250_v51, %v1249_v9 }
 0x52a   :  { %v1230_v4 = vpop.xlane.xlu0 %1229  ;;  %v1305_v41 = vmul.f32 0.00390625, %v1251_v45 }
 0x52b   :  { %v1240_v3 = vrot.slane %v1230_v4, 4 }
 0x52c   :  { %v1313_v30 = vmul.f32 %v1305_v41, %v1305_v41  ;;  %v1321_v45 = vsub.f32 %v4288_v11, %v1305_v41  ;;  %v64_v11 = vld [vmem:[%s5032_s8 + $0x8] sm:$0xff] }
 0x52d   :  { %v1241_v13 = vadd.f32 %v1240_v3, %v1230_v4 }
 0x52e   :  { %v1273_v54 = vpop.xlane.xlu0 %1272 }
 0x52f   :  { %v1242_v28 = vrot.slane %v1241_v13, 2  ;;  %v1286_v38 = vrot.slane %v1273_v54, 4 }
 0x531   :  { %v1243_v60 = vadd.f32 %v1242_v28, %v1241_v13  ;;  %v1287_v59 = vadd.f32 %v1286_v38, %v1273_v54 }
 0x532   :  { %v1270_v48 = vpop.xlane.xlu0 %1269 }
 0x533   :  { %v1244_v42 = vrot.slane %v1243_v60, 1  ;;  %v1288_v56 = vrot.slane %v1287_v59, 2  ;;  %v1280_v37 = vrot.slane %v1270_v48, 4 }
 0x535   :  { %v1289_v32 = vadd.f32 %v1288_v56, %v1287_v59  ;;  %v1281_v53 = vadd.f32 %v1280_v37, %v1270_v48  ;;  %v1245_v61 = vadd.f32 %v1244_v42, %v1243_v60 }
 0x537   :  { %v1290_v18 = vrot.slane %v1289_v32, 1  ;;  %v1282_v49 = vrot.slane %v1281_v53, 2  ;;  %v1304_v43 = vmul.f32 0.00390625, %v1245_v61 }
 0x539   :  { %v1291_v19 = vadd.f32 %v1290_v18, %v1289_v32  ;;  %v1283_v52 = vadd.f32 %v1282_v49, %v1281_v53  ;;  %v1236_v40 = vpop.xlane.xlu0 %1235  ;;  %v1312_v47 = vmul.f32 %v1304_v43, %v1304_v43  ;;  %v1320_v61 = vsub.f32 %v4332_v21, %v1304_v43  ;;  %v63_v49 = vld [vmem:[%s5032_s8] sm:$0xff] }
 0x53a   :  { %v1252_v2 = vrot.slane %v1236_v40, 4 }
 0x53b   :  { %v1309_v27 = vmul.f32 0.00390625, %v1291_v19  ;;  %v1284_v1 = vrot.slane %v1283_v52, 1 }
 0x53c   :  { %v1253_v29 = vadd.f32 %v1252_v2, %v1236_v40 }
 0x53d   :  { %v1317_v50 = vsub.f32 %v1309_v27, %v1313_v30  ;;  %v1285_v22 = vadd.f32 %v1284_v1, %v1283_v52  ;;  %v1276_v58 = vpop.xlane.xlu0 %1275 }
 0x53e   :  { %v1254_v25 = vrot.slane %v1253_v29, 2  ;;  %v1292_v44 = vrot.slane %v1276_v58, 4  ;;  %v1239_v12 = vpop.xlane.xlu1 %1238 }
 0x53f   :  { %v1325_v31 = vadd.f32 1e-05, %v1317_v50  ;;  %v1308_v23 = vmul.f32 0.00390625, %v1285_v22  ;;  %v1258_v16 = vrot.slane %v1239_v12, 4 }
 0x540   :  { %v1255_v33 = vadd.f32 %v1254_v25, %v1253_v29  ;;  %v1293_v34 = vadd.f32 %v1292_v44, %v1276_v58 }
 0x541   :  { %3786 = vrsqrt.f32 %v1325_v31  ;;  %v1316_v5 = vsub.f32 %v1308_v23, %v1312_v47  ;;  %v1259_v57 = vadd.f32 %v1258_v16, %v1239_v12 }
 0x542   :  { %v1256_v62 = vrot.slane %v1255_v33, 1  ;;  %v1294_v46 = vrot.slane %v1293_v34, 2  ;;  %v1279_v26 = vpop.xlane.xlu1 %1278 }
 0x543   :  { %v1324_v15 = vadd.f32 1e-05, %v1316_v5  ;;  %v1260_v8 = vrot.slane %v1259_v57, 2  ;;  %v1298_v20 = vrot.slane %v1279_v26, 4 }
 0x544   :  { %v1257_v63 = vadd.f32 %v1256_v62, %v1255_v33  ;;  %v1295_v35 = vadd.f32 %v1294_v46, %v1293_v34  ;;  %v60_v34 = vld [vmem:[%s5030_s6 + $0x30] sm:$0xff] }
 0x545   :  { %3788 = vrsqrt.f32 %v1324_v15  ;;  %v1261_v3 = vadd.f32 %v1260_v8, %v1259_v57  ;;  %v1299_v13 = vadd.f32 %v1298_v20, %v1279_v26 }
 0x546   :  { %v1306_v4 = vmul.f32 0.00390625, %v1257_v63  ;;  %v1296_v9 = vrot.slane %v1295_v35, 1 }
 0x547   :  { %v1262_v51 = vrot.slane %v1261_v3, 1  ;;  %v1300_v28 = vrot.slane %v1299_v13, 2 }
 0x548   :  { %v1297_v54 = vadd.f32 %v1296_v9, %v1295_v35  ;;  %v1314_v38 = vmul.f32 %v1306_v4, %v1306_v4  ;;  %v1322_v50 = vsub.f32 %v4375_v17, %v1306_v4  ;;  %v61_v17 = vld [vmem:[%s5030_s6 + $0x38] sm:$0xff] }
 0x549   :  { %v1263_v59 = vadd.f32 %v1262_v51, %v1261_v3  ;;  %v1301_v42 = vadd.f32 %v1300_v28, %v1299_v13  ;;  %v3715_v16 = vpack.c.bf16 %v61_v17, %v60_v34 }
 0x54a   :  { %v1310_v60 = vmul.f32 0.00390625, %v1297_v54 }
 0x54b   :  { %v3787_v48 = vpop.eup %3786  ;;  %v1307_v37 = vmul.f32 0.00390625, %v1263_v59  ;;  %v1302_v32 = vrot.slane %v1301_v42, 1  ;;  %3716 = vmatprep.subr.bf16.mxu1 %v3715_v16 }
 0x54c   :  { %v1318_v56 = vsub.f32 %v1310_v60, %v1314_v38  ;;  %v1333_v53 = vmul.f32 %v3787_v48, %v1321_v45  ;;  %3718 = vmatpush3.bf16.msra.mxu1 %v3715_v16 }
 0x54d   :  { %v1303_v52 = vadd.f32 %v1302_v32, %v1301_v42  ;;  %v1315_v2 = vmul.f32 %v1307_v37, %v1307_v37  ;;  %v1323_v47 = vsub.f32 %v4387_v14, %v1307_v37  ;;  %v3838_v14 = vld [vmem:[%s5031_s7] sm:$0x1f] }
 0x54e   :  { %v1326_v18 = vadd.f32 1e-05, %v1318_v56  ;;  %v1337_v27 = vmul.f32 %v1333_v53, %v63_v49  ;;  %v1347_v5 = vrot.slane %v3838_v14, %v4040_v0  ;;  %v1452_v13 = vrot.slane %v3838_v14, %v4050_v7 }
 0x54f   :  { %v3789_v19 = vpop.eup %3788  ;;  %v1311_v30 = vmul.f32 0.00390625, %v1303_v52 }
 0x550   :  { %3790 = vrsqrt.f32 %v1326_v18  ;;  %v1332_v40 = vmul.f32 %v3789_v19, %v1320_v61  ;;  %v1341_v43 = vadd.f32 %v1337_v27, %v64_v11 }
 0x551   :  { %v1319_v1 = vsub.f32 %v1311_v30, %v1315_v2 }
 0x552   :  { %v1336_v41 = vmul.f32 %v1332_v40, %v63_v49 }
 0x553   :  { %v1327_v21 = vadd.f32 1e-05, %v1319_v1  ;;  %v3347_v1 = vld [vmem:[%s5025_s1 + $0x20] sm:$0xff] }
 0x554   :  { %v1340_v29 = vadd.f32 %v1336_v41, %v64_v11 }
 0x555   :  { %3792 = vrsqrt.f32 %v1327_v21 }
 0x556   :  { %3557 = vmatprep.mubr.msk.f32.mxu0 %vm71_vm0, %v1340_v29 }
 0x557   :  { %3558 = vmatmul.mubr.msk.f32.vlgmr.msra.gmra.mrb[4].mxu0 %vm71_vm0, %v1341_v43 }
 0x55a   :  { %v3791_v22 = vpop.eup %3790 }
 0x55b   :  { %v1334_v58 = vmul.f32 %v3791_v22, %v1322_v50  ;;  %v3350_v50 = vld [vmem:[%s5025_s1 + $0x38] sm:$0xff] }
 0x55d   :  { %v1338_v25 = vmul.f32 %v1334_v58, %v63_v49  ;;  %v3356_v58 = vld [vmem:[%s5028_s4 + $0x20] sm:$0xff] }
 0x55f   :  { %v1342_v44 = vadd.f32 %v1338_v25, %v64_v11  ;;  %v3793_v31 = vpop.eup %3792  ;;  %v3357_v25 = vld [vmem:[%s5028_s4 + $0x28] sm:$0xff] }
 0x560   :  { %v1335_v23 = vmul.f32 %v3793_v31, %v1323_v47  ;;  %v3735_v47 = vpack.c.bf16 %v3357_v25, %v3356_v58  ;;  %v3353_v31 = vld [vmem:[%s5027_s3 + $0x28] sm:$0xff] }
 0x561   :  { %3560 = vmatprep.mubr.msk.f32.mxu0 %vm71_vm0, %v1342_v44 }
 0x562   :  { %v1339_v12 = vmul.f32 %v1335_v23, %v63_v49  ;;  %3736 = vmatprep.subr.bf16.mxu1 %v3735_v47 }
 0x564   :  { %v1343_v33 = vadd.f32 %v1339_v12, %v64_v11 }
 0x566   :  { %3561 = vmatmul.mubr.msk.f32.gmra.mrb[6].mxu0 %vm71_vm0, %v1343_v33 }
 0x62a   :  { %v3559_v62 = vpop.f32.mrb[4].mxu0 }
 0x62b   :  { %v1432_v46 = vadd.f32 %v3559_v62, %v1347_v5  ;;  %v1426_v57 = vpop.f32.mrb[5].mxu0 }
 0x62c   :  { %v1427_v15 = vadd.f32 %v1426_v57, %v1347_v5 }
 0x62d   :  { %v1446_v63 = vmax.f32 %v1432_v46, 0.0 }
 0x62e   :  { %v1445_v26 = vmax.f32 %v1427_v15, 0.0 }
 0x630   :  { %3579 = vmatprep.mubr.msk.f32.mxu1 %vm1453_vm9, %v1445_v26 }
 0x631   :  { %3580 = vmatmul.mubr.msk.f32.vlgmr.msra.gmra.mrb[12].mxu1 %vm1453_vm9, %v1446_v63 }
 0x632   :  { %3738 = vmatpush3.bf16.msra.mxu1 %v3735_v47 }
 0x639   :  { %v3562_v35 = vpop.f32.mrb[6].mxu0 }
 0x63a   :  { %v1442_v8 = vadd.f32 %v3562_v35, %v1347_v5  ;;  %v1436_v20 = vpop.f32.mrb[7].mxu0 }
 0x63b   :  { %v1437_v4 = vadd.f32 %v1436_v20, %v1347_v5 }
 0x63c   :  { %v1448_v3 = vmax.f32 %v1442_v8, 0.0 }
 0x63d   :  { %v1447_v9 = vmax.f32 %v1437_v4, 0.0 }
 0x63f   :  { %3582 = vmatprep.mubr.msk.f32.mxu1 %vm1453_vm9, %v1447_v9 }
 0x640   :  { %3583 = vmatmul.mubr.msk.f32.gmra.mrb[14].mxu1 %vm1453_vm9, %v1448_v3 }
 0x704   :  { %v3581_v54 = vpop.f32.mrb[12].mxu1 }
 0x705   :  { %v1538_v51 = vadd.f32 %v3581_v54, %v1452_v13  ;;  %v1532_v28 = vpop.f32.mrb[13].mxu1 }
 0x706   :  { %v1533_v38 = vadd.f32 %v1532_v28, %v1452_v13 }
 0x707   :  { %v4453_v60 = vadd.f32 %v1538_v51, %v1341_v43  ;;  %v3349_v43 = vld [vmem:[%s5025_s1 + $0x30] sm:$0xff] }
 0x708   :  { %v4455_v59 = vadd.f32 %v1533_v38, %v1340_v29  ;;  %v3348_v29 = vld [vmem:[%s5025_s1 + $0x28] sm:$0xff]  ;;  %v3723_v22 = vpack.c.bf16 %v3350_v50, %v3349_v43 }
 0x709   :  { %v1558_v48 = vsel %vm71_vm0, %v4453_v60, 0.0  ;;  %v1592_v45 = vmul.f32 %v4453_v60, %v4453_v60  ;;  %v3719_v21 = vpack.c.bf16 %v3348_v29, %v3347_v1 }
 0x70a   :  { %1559 = vadd.xlane.f32.xlu1 %v1558_v48  ;;  %v1555_v42 = vsel %vm71_vm0, %v4455_v59, 0.0  ;;  %v1591_v56 = vmul.f32 %v4455_v59, %v4455_v59 }
 0x70b   :  { %1556 = vadd.xlane.f32.xlu0 %v1555_v42  ;;  %v1598_v37 = vsel %vm71_vm0, %v1592_v45, 0.0  ;;  %3720 = vmatprep.subr.bf16.mxu0 %v3719_v21 }
 0x70c   :  { %v1595_v32 = vsel %vm71_vm0, %v1591_v56, 0.0  ;;  %3722 = vmatpush3.bf16.msra.mxu0 %v3719_v21 }
 0x70d   :  { %3724 = vmatprep.subr.bf16.mxu0 %v3723_v22 }
 0x70e   :  { %1599 = vadd.xlane.f32.xlu1 %v1598_v37 }
 0x70f   :  { %1596 = vadd.xlane.f32.xlu0 %v1595_v32 }
 0x710   :  { %3726 = vmatpush3.bf16.msra.mxu0 %v3723_v22 }
 0x713   :  { %v3584_v53 = vpop.f32.mrb[14].mxu1 }
 0x714   :  { %v1548_v61 = vadd.f32 %v3584_v53, %v1452_v13  ;;  %v1542_v18 = vpop.f32.mrb[15].mxu1 }
 0x715   :  { %v1543_v49 = vadd.f32 %v1542_v18, %v1452_v13 }
 0x716   :  { %v4467_v19 = vadd.f32 %v1548_v61, %v1343_v33 }
 0x717   :  { %v4469_v52 = vadd.f32 %v1543_v49, %v1342_v44  ;;  %v3352_v44 = vld [vmem:[%s5027_s3 + $0x20] sm:$0xff] }
 0x718   :  { %v1564_v40 = vsel %vm71_vm0, %v4467_v19, 0.0  ;;  %v1594_v2 = vmul.f32 %v4467_v19, %v4467_v19  ;;  %v4505_v23 = vpack.c.bf16 %v3353_v31, %v3352_v44 }
 0x719   :  { %1565 = vadd.xlane.f32.xlu1 %v1564_v40  ;;  %v1561_v30 = vsel %vm71_vm0, %v4469_v52, 0.0  ;;  %v1593_v27 = vmul.f32 %v4469_v52, %v4469_v52 }
 0x71a   :  { %1562 = vadd.xlane.f32.xlu0 %v1561_v30  ;;  %v1604_v11 = vsel %vm71_vm0, %v1594_v2, 0.0  ;;  %3728 = vmatprep.subr.bf16.mxu0 %v4505_v23 }
 0x71b   :  { %v1601_v41 = vsel %vm71_vm0, %v1593_v27, 0.0 }
 0x71d   :  { %1605 = vadd.xlane.f32.xlu1 %v1604_v11 }
 0x71e   :  { %1602 = vadd.xlane.f32.xlu0 %v1601_v41 }
 0x797   :  { %v1560_v12 = vpop.xlane.xlu1 %1559 }
 0x798   :  { %v1573_v33 = vrot.slane %v1560_v12, 4  ;;  %v1557_v34 = vpop.xlane.xlu0 %1556 }
 0x799   :  { %v1567_v17 = vrot.slane %v1557_v34, 4 }
 0x79a   :  { %v1574_v16 = vadd.f32 %v1573_v33, %v1560_v12 }
 0x79b   :  { %v1568_v14 = vadd.f32 %v1567_v17, %v1557_v34  ;;  %v1600_v5 = vpop.xlane.xlu1 %1599 }
 0x79c   :  { %v1575_v62 = vrot.slane %v1574_v16, 2  ;;  %v1613_v46 = vrot.slane %v1600_v5, 4  ;;  %v1597_v57 = vpop.xlane.xlu0 %1596 }
 0x79d   :  { %v1569_v15 = vrot.slane %v1568_v14, 2  ;;  %v1607_v26 = vrot.slane %v1597_v57, 4 }
 0x79e   :  { %v1576_v63 = vadd.f32 %v1575_v62, %v1574_v16  ;;  %v1614_v35 = vadd.f32 %v1613_v46, %v1600_v5 }
 0x79f   :  { %v1570_v8 = vadd.f32 %v1569_v15, %v1568_v14  ;;  %v1608_v20 = vadd.f32 %v1607_v26, %v1597_v57 }
 0x7a0   :  { %v1577_v4 = vrot.slane %v1576_v63, 1  ;;  %v1615_v9 = vrot.slane %v1614_v35, 2 }
 0x7a1   :  { %v1571_v3 = vrot.slane %v1570_v8, 1  ;;  %v1609_v13 = vrot.slane %v1608_v20, 2 }
 0x7a2   :  { %v1578_v54 = vadd.f32 %v1577_v4, %v1576_v63  ;;  %v1616_v51 = vadd.f32 %v1615_v9, %v1614_v35 }
 0x7a3   :  { %v1572_v28 = vadd.f32 %v1571_v3, %v1570_v8  ;;  %v1610_v38 = vadd.f32 %v1609_v13, %v1608_v20  ;;  %v65_v13 = vld [vmem:[%s5032_s8 + $0x10] sm:$0xff] }
 0x7a4   :  { %v1632_v48 = vmul.f32 0.00390625, %v1578_v54  ;;  %v1617_v45 = vrot.slane %v1616_v51, 1 }
 0x7a5   :  { %v1631_v42 = vmul.f32 0.00390625, %v1572_v28  ;;  %v1611_v56 = vrot.slane %v1610_v38, 1 }
 0x7a6   :  { %v1618_v37 = vadd.f32 %v1617_v45, %v1616_v51  ;;  %v1640_v53 = vmul.f32 %v1632_v48, %v1632_v48  ;;  %v1566_v18 = vpop.xlane.xlu1 %1565  ;;  %v1648_v20 = vsub.f32 %v4453_v60, %v1632_v48  ;;  %v66_v60 = vld [vmem:[%s5032_s8 + $0x18] sm:$0xff] }
 0x7a7   :  { %v1612_v32 = vadd.f32 %v1611_v56, %v1610_v38  ;;  %v1639_v49 = vmul.f32 %v1631_v42, %v1631_v42  ;;  %v1585_v2 = vrot.slane %v1566_v18, 4  ;;  %v1563_v30 = vpop.xlane.xlu0 %1562  ;;  %v1647_v3 = vsub.f32 %v4455_v59, %v1631_v42 }
 0x7a8   :  { %v1636_v61 = vmul.f32 0.00390625, %v1618_v37  ;;  %v1579_v11 = vrot.slane %v1563_v30, 4 }
 0x7a9   :  { %v1635_v40 = vmul.f32 0.00390625, %v1612_v32  ;;  %v1586_v1 = vadd.f32 %v1585_v2, %v1566_v18 }
 0x7aa   :  { %v1644_v27 = vsub.f32 %v1636_v61, %v1640_v53  ;;  %v1580_v21 = vadd.f32 %v1579_v11, %v1563_v30  ;;  %v1606_v43 = vpop.xlane.xlu1 %1605 }
 0x7ab   :  { %v1643_v41 = vsub.f32 %v1635_v40, %v1639_v49  ;;  %v1587_v22 = vrot.slane %v1586_v1, 2  ;;  %v1625_v58 = vrot.slane %v1606_v43, 4  ;;  %v1603_v25 = vpop.xlane.xlu0 %1602 }
 0x7ac   :  { %v1652_v29 = vadd.f32 1e-05, %v1644_v27  ;;  %v1581_v44 = vrot.slane %v1580_v21, 2  ;;  %v1619_v47 = vrot.slane %v1603_v25, 4 }
 0x7ad   :  { %v1651_v50 = vadd.f32 1e-05, %v1643_v41  ;;  %v1588_v31 = vadd.f32 %v1587_v22, %v1586_v1  ;;  %v1626_v12 = vadd.f32 %v1625_v58, %v1606_v43  ;;  %v3354_v22 = vld [vmem:[%s5027_s3 + $0x30] sm:$0xff]  ;;  %v3355_v58 = vld [vmem:[%s5027_s3 + $0x38] sm:$0xff] }
 0x7ae   :  { %3794 = vrsqrt.f32 %v1652_v29  ;;  %v1582_v33 = vadd.f32 %v1581_v44, %v1580_v21  ;;  %v1620_v34 = vadd.f32 %v1619_v47, %v1603_v25  ;;  %v3731_v25 = vpack.c.bf16 %v3355_v58, %v3354_v22  ;;  %v4550_v44 = vld [vmem:[%s5031_s7 + $0x8] sm:$0x1f] }
 0x7af   :  { %3796 = vrsqrt.f32 %v1651_v50  ;;  %v1589_v17 = vrot.slane %v1588_v31, 1  ;;  %v1627_v16 = vrot.slane %v1626_v12, 2  ;;  %v1712_v47 = vrot.slane %v4550_v44, %v3984_v24 }
 0x7b0   :  { %v1583_v14 = vrot.slane %v1582_v33, 1  ;;  %v1621_v5 = vrot.slane %v1620_v34, 2 }
 0x7b1   :  { %v1590_v62 = vadd.f32 %v1589_v17, %v1588_v31  ;;  %v1628_v46 = vadd.f32 %v1627_v16, %v1626_v12 }
 0x7b2   :  { %v1584_v57 = vadd.f32 %v1583_v14, %v1582_v33  ;;  %v1622_v15 = vadd.f32 %v1621_v5, %v1620_v34 }
 0x7b3   :  { %v1634_v26 = vmul.f32 0.00390625, %v1590_v62  ;;  %v1629_v63 = vrot.slane %v1628_v46, 1 }
 0x7b4   :  { %v1633_v35 = vmul.f32 0.00390625, %v1584_v57  ;;  %v1623_v8 = vrot.slane %v1622_v15, 1 }
 0x7b5   :  { %v1630_v4 = vadd.f32 %v1629_v63, %v1628_v46  ;;  %v1642_v38 = vmul.f32 %v1634_v26, %v1634_v26  ;;  %v1650_v2 = vsub.f32 %v4467_v19, %v1634_v26  ;;  %v3358_v19 = vld [vmem:[%s5028_s4 + $0x30] sm:$0xff] }
 0x7b6   :  { %v1624_v54 = vadd.f32 %v1623_v8, %v1622_v15  ;;  %v1641_v37 = vmul.f32 %v1633_v35, %v1633_v35  ;;  %v1649_v27 = vsub.f32 %v4469_v52, %v1633_v35  ;;  %v3359_v52 = vld [vmem:[%s5028_s4 + $0x38] sm:$0xff]  ;;  %v2019_v8 = vrot.slane %v4550_v44, %v4002_v39 }
 0x7b7   :  { %v1638_v45 = vmul.f32 0.00390625, %v1630_v4 }
 0x7b8   :  { %v3795_v9 = vpop.eup %3794  ;;  %v1637_v32 = vmul.f32 0.00390625, %v1624_v54 }
 0x7b9   :  { %v3797_v51 = vpop.eup %3796  ;;  %v1660_v28 = vmul.f32 %v3795_v9, %v1648_v20  ;;  %v1646_v53 = vsub.f32 %v1638_v45, %v1642_v38 }
 0x7ba   :  { %v1659_v56 = vmul.f32 %v3797_v51, %v1647_v3  ;;  %v1645_v59 = vsub.f32 %v1637_v32, %v1641_v37 }
 0x7bb   :  { %v1664_v48 = vmul.f32 %v1660_v28, %v65_v13  ;;  %v1654_v42 = vadd.f32 1e-05, %v1646_v53 }
 0x7bc   :  { %v1663_v61 = vmul.f32 %v1659_v56, %v65_v13  ;;  %v1653_v49 = vadd.f32 1e-05, %v1645_v59 }
 0x7bd   :  { %v4518_v40 = vadd.f32 %v1664_v48, %v66_v60  ;;  %3798 = vrsqrt.f32 %v1654_v42 }
 0x7be   :  { %v4516_v18 = vadd.f32 %v1663_v61, %v66_v60  ;;  %3800 = vrsqrt.f32 %v1653_v49 }
 0x7c0   :  { %3593 = vmatprep.mubr.msk.f32.mxu0 %vm71_vm0, %v4516_v18 }
 0x7c1   :  { %3594 = vmatmul.mubr.msk.f32.vlgmr.msra.gmra.mrb[8].mxu0 %vm71_vm0, %v4518_v40 }
 0x7c2   :  { %3730 = vmatpush3.bf16.msra.mxu0 %v4505_v23  ;;  %v3739_v23 = vpack.c.bf16 %v3359_v52, %v3358_v19 }
 0x7c3   :  { %3732 = vmatprep.subr.bf16.mxu0 %v3731_v25 }
 0x7c4   :  { %3740 = vmatprep.subr.bf16.mxu1 %v3739_v23 }
 0x7c5   :  { %3742 = vmatpush3.bf16.msra.mxu1 %v3739_v23 }
 0x7c6   :  { %3734 = vmatpush3.bf16.msra.mxu0 %v3731_v25 }
 0x7c7   :  { %v3799_v30 = vpop.eup %3798 }
 0x7c8   :  { %v3801_v11 = vpop.eup %3800  ;;  %v1662_v41 = vmul.f32 %v3799_v30, %v1650_v2 }
 0x7c9   :  { %v1661_v1 = vmul.f32 %v3801_v11, %v1649_v27 }
 0x7ca   :  { %v1666_v29 = vmul.f32 %v1662_v41, %v65_v13 }
 0x7cb   :  { %v1665_v21 = vmul.f32 %v1661_v1, %v65_v13 }
 0x7cc   :  { %v4529_v50 = vadd.f32 %v1666_v29, %v66_v60 }
 0x7cd   :  { %v4527_v43 = vadd.f32 %v1665_v21, %v66_v60 }
 0x7cf   :  { %3596 = vmatprep.mubr.msk.f32.mxu0 %vm71_vm0, %v4527_v43 }
 0x7d0   :  { %3597 = vmatmul.mubr.msk.f32.gmra.mrb[10].mxu0 %vm71_vm0, %v4529_v50 }
 0x894   :  { %v3595_v31 = vpop.f32.mrb[8].mxu0 }
 0x895   :  { %v1797_v12 = vadd.f32 %v3595_v31, %v1712_v47  ;;  %v1791_v33 = vpop.f32.mrb[9].mxu0 }
 0x896   :  { %v1792_v34 = vadd.f32 %v1791_v33, %v1712_v47 }
 0x897   :  { %v1811_v16 = vmul.f32 %v1797_v12, %v1797_v12 }
 0x898   :  { %v1810_v17 = vmul.f32 %v1792_v34, %v1792_v34  ;;  %3621 = vmatprep.mubr.msk.f32.mxu1 %vm71_vm0, %v1792_v34 }
 0x899   :  { %3622 = vmatmul.mubr.msk.f32.vlgmr.msra.gmra.mrb[16].mxu1 %vm71_vm0, %v1797_v12 }
 0x89a   :  { %3607 = vmatprep.mubr.msk.f32.mxu0 %vm71_vm0, %v1810_v17 }
 0x89b   :  { %3608 = vmatmul.mubr.msk.f32.vlgmr.msra.gmra.mrb[12].mxu0 %vm71_vm0, %v1811_v16 }
 0x8a3   :  { %v3598_v14 = vpop.f32.mrb[10].mxu0 }
 0x8a4   :  { %v1807_v5 = vadd.f32 %v3598_v14, %v1712_v47  ;;  %v1801_v62 = vpop.f32.mrb[11].mxu0 }
 0x8a5   :  { %v1802_v46 = vadd.f32 %v1801_v62, %v1712_v47 }
 0x8a6   :  { %v1813_v15 = vmul.f32 %v1807_v5, %v1807_v5 }
 0x8a7   :  { %v1812_v57 = vmul.f32 %v1802_v46, %v1802_v46  ;;  %3624 = vmatprep.mubr.msk.f32.mxu1 %vm71_vm0, %v1802_v46 }
 0x8a8   :  { %3625 = vmatmul.mubr.msk.f32.gmra.mrb[18].mxu1 %vm71_vm0, %v1807_v5 }
 0x8a9   :  { %3610 = vmatprep.mubr.msk.f32.mxu0 %vm71_vm0, %v1812_v57  ;;  %v3351_v57 = vld [vmem:[%s5026_s2 + $0x8] sm:$0xff] }
 0x8aa   :  { %3611 = vmatmul.mubr.msk.f32.gmra.mrb[14].mxu0 %vm71_vm0, %v1813_v15  ;;  %3627 = vmatprep.subr.mxu0 %v3351_v57 }
 0x8ab   :  { %3628 = vmatpush3.msra.mxu0 %v3351_v57 }
 0x96c   :  { %v3623_v26 = vpop.f32.mrb[16].mxu1 }
 0x96d   :  { %v2009_v63 = vmul.f32 2.0, %v3623_v26  ;;  %v1989_v35 = vpop.f32.mrb[17].mxu1 }
 0x96e   :  { %v2008_v20 = vmul.f32 2.0, %v1989_v35  ;;  %v3609_v4 = vpop.f32.mrb[12].mxu0 }
 0x96f   :  { %v2013_v9 = vsub.f32 %v3609_v4, %v2009_v63  ;;  %v1892_v3 = vpop.f32.mrb[13].mxu0  ;;  %v2172_v63 = vrot.slane %v4550_v44, %v4018_v36 }
 0x970   :  { %v2012_v13 = vsub.f32 %v1892_v3, %v2008_v20 }
 0x971   :  { %v2021_v54 = vadd.f32 %v2019_v8, %v2013_v9 }
 0x972   :  { %v2020_v51 = vadd.f32 %v2019_v8, %v2012_v13 }
 0x973   :  { %v2025_v28 = vmul.f32 -0.015625, %v2021_v54 }
 0x974   :  { %v2024_v38 = vmul.f32 -0.015625, %v2020_v51 }
 0x975   :  { %v2031_v45 = vsel %vm387_vm1, %v2025_v28, -inf }
 0x976   :  { %2032 = vmax.xlane.f32.xlu1 %v2031_v45  ;;  %v2028_v56 = vsel %vm387_vm1, %v2024_v38, -inf }
 0x977   :  { %2029 = vmax.xlane.f32.xlu0 %v2028_v56 }
 0x97b   :  { %v3626_v37 = vpop.f32.mrb[18].mxu1 }
 0x97c   :  { %v2011_v32 = vmul.f32 2.0, %v3626_v37  ;;  %v1999_v60 = vpop.f32.mrb[19].mxu1 }
 0x97d   :  { %v2010_v48 = vmul.f32 2.0, %v1999_v60  ;;  %v3612_v53 = vpop.f32.mrb[14].mxu0 }
 0x97e   :  { %v2015_v61 = vsub.f32 %v3612_v53, %v2011_v32  ;;  %v1902_v59 = vpop.f32.mrb[15].mxu0 }
 0x97f   :  { %v2014_v42 = vsub.f32 %v1902_v59, %v2010_v48 }
 0x980   :  { %v2023_v49 = vadd.f32 %v2019_v8, %v2015_v61 }
 0x981   :  { %v2022_v2 = vadd.f32 %v2019_v8, %v2014_v42 }
 0x982   :  { %v2027_v30 = vmul.f32 -0.015625, %v2023_v49 }
 0x983   :  { %v2026_v27 = vmul.f32 -0.015625, %v2022_v2 }
 0x984   :  { %v2037_v11 = vsel %vm387_vm1, %v2027_v30, -inf }
 0x985   :  { %2038 = vmax.xlane.f32.xlu1 %v2037_v11  ;;  %v2034_v41 = vsel %vm387_vm1, %v2026_v27, -inf }
 0x986   :  { %2035 = vmax.xlane.f32.xlu0 %v2034_v41 }
 0xa03   :  { %v2033_v1 = vpop.xlane.xlu1 %2032 }
 0xa04   :  { %v2041_v29 = vsub.f32 %v2025_v28, %v2033_v1  ;;  %v2030_v21 = vpop.xlane.xlu0 %2029 }
 0xa05   :  { %v2040_v19 = vsub.f32 %v2024_v38, %v2030_v21 }
 0xa06   :  { %v2046_v52 = vmul.f32 1.442695, %v2041_v29 }
 0xa07   :  { %v2044_v23 = vmul.f32 1.442695, %v2040_v19 }
 0xa08   :  { %3802 = vpow2.f32 %v2046_v52 }
 0xa09   :  { %3804 = vpow2.f32 %v2044_v23 }
 0xa12   :  { %v3803_v22 = vpop.eup %3802  ;;  %v2039_v31 = vpop.xlane.xlu1 %2038 }
 0xa13   :  { %v3805_v58 = vpop.eup %3804  ;;  %v2055_v25 = vsel %vm387_vm1, %v3803_v22, 0.0  ;;  %v2043_v12 = vsub.f32 %v2027_v30, %v2039_v31  ;;  %v2036_v33 = vpop.xlane.xlu0 %2035 }
 0xa14   :  { %2056 = vadd.xlane.f32.xlu1 %v2055_v25  ;;  %v2052_v47 = vsel %vm387_vm1, %v3805_v58, 0.0  ;;  %v2042_v34 = vsub.f32 %v2026_v27, %v2036_v33 }
 0xa15   :  { %2053 = vadd.xlane.f32.xlu0 %v2052_v47  ;;  %v2050_v17 = vmul.f32 1.442695, %v2043_v12 }
 0xa16   :  { %v2048_v16 = vmul.f32 1.442695, %v2042_v34 }
 0xa17   :  { %3806 = vpow2.f32 %v2050_v17 }
 0xa18   :  { %3808 = vpow2.f32 %v2048_v16 }
 0xa21   :  { %v3807_v14 = vpop.eup %3806 }
 0xa22   :  { %v3809_v5 = vpop.eup %3808  ;;  %v2061_v62 = vsel %vm387_vm1, %v3807_v14, 0.0 }
 0xa23   :  { %2062 = vadd.xlane.f32.xlu1 %v2061_v62  ;;  %v2058_v46 = vsel %vm387_vm1, %v3809_v5, 0.0 }
 0xa24   :  { %2059 = vadd.xlane.f32.xlu0 %v2058_v46 }
 0xaa1   :  { %v2057_v15 = vpop.xlane.xlu1 %2056 }
 0xaa2   :  { %3810 = vrcp.f32 %v2057_v15  ;;  %v2054_v26 = vpop.xlane.xlu0 %2053 }
 0xaa3   :  { %3812 = vrcp.f32 %v2054_v26 }
 0xaac   :  { %v3811_v35 = vpop.eup %3810 }
 0xaad   :  { %v3813_v8 = vpop.eup %3812  ;;  %v2069_v20 = vmul.f32 %v3811_v35, %v3803_v22 }
 0xaae   :  { %v2068_v4 = vmul.f32 %v3813_v8, %v3805_v58 }
 0xaaf   :  { %v2174_v9 = vmul.f32 %v2172_v63, %v2069_v20 }
 0xab0   :  { %3629 = vmatprep.mubr.msk.f32.mxu0 %vm387_vm1, %v2068_v4  ;;  %v2173_v3 = vmul.f32 %v2172_v63, %v2068_v4  ;;  %v2063_v51 = vpop.xlane.xlu1 %2062 }
 0xab1   :  { %3630 = vmatmul.mubr.msk.f32.vlgmr.msra.gmra.mrb[16].mxu0 %vm387_vm1, %v2069_v20  ;;  %v2180_v13 = vsel %vm387_vm1, %v2174_v9, 0.0  ;;  %3814 = vrcp.f32 %v2063_v51  ;;  %v2060_v28 = vpop.xlane.xlu0 %2059 }
 0xab2   :  { %2181 = vadd.xlane.f32.xlu1 %v2180_v13  ;;  %v2177_v54 = vsel %vm387_vm1, %v2173_v3, 0.0  ;;  %3816 = vrcp.f32 %v2060_v28 }
 0xab3   :  { %2178 = vadd.xlane.f32.xlu0 %v2177_v54 }
 0xabb   :  { %v3815_v44 = vpop.eup %3814 }
 0xabc   :  { %v3817_v38 = vpop.eup %3816  ;;  %v2071_v45 = vmul.f32 %v3815_v44, %v3807_v14 }
 0xabd   :  { %v2070_v56 = vmul.f32 %v3817_v38, %v3809_v5 }
 0xabe   :  { %v2176_v37 = vmul.f32 %v2172_v63, %v2071_v45 }
 0xabf   :  { %3632 = vmatprep.mubr.msk.f32.mxu0 %vm387_vm1, %v2070_v56  ;;  %v2175_v32 = vmul.f32 %v2172_v63, %v2070_v56 }
 0xac0   :  { %3633 = vmatmul.mubr.msk.f32.gmra.mrb[18].mxu0 %vm387_vm1, %v2071_v45  ;;  %v2186_v60 = vsel %vm387_vm1, %v2176_v37, 0.0 }
 0xac1   :  { %2187 = vadd.xlane.f32.xlu1 %v2186_v60  ;;  %v2183_v48 = vsel %vm387_vm1, %v2175_v32, 0.0 }
 0xac2   :  { %2184 = vadd.xlane.f32.xlu0 %v2183_v48 }
 0xb40   :  { %v4619_v35 = vpop.xlane.xlu0 %2178 }
 0xb4f   :  { %v4623_v8 = vpop.xlane.xlu0 %2184 }
 0xb84   :  { %v3631_v53 = vpop.f32.mrb[16].mxu0 }
 0xb85   :  { %v2150_v61 = vpop.f32.mrb[17].mxu0  ;;  %v2255_v59 = vrot.slane %v3631_v53, %v4018_v36  ;;  %v2283_v42 = vrot.slane %v3631_v53, %v4031_v55  ;;  %v2262_v49 = vrot.slane %v3631_v53, %v4002_v39  ;;  %v2248_v30 = vrot.slane %v3631_v53, %v3984_v24 }
 0xb86   :  { %v2199_v2 = vrot.slane %v2150_v61, %v4018_v36  ;;  %v2213_v27 = vrot.slane %v2150_v61, %v4040_v0  ;;  %v2269_v11 = vrot.slane %v3631_v53, %v4040_v0  ;;  %v2227_v41 = vrot.slane %v2150_v61, %v4031_v55 }
 0xb87   :  { %2257 = vbcast.lane.b32.xlu1 %v2255_v59, 256  ;;  %2285 = vbcast.lane.b32.xlu0 %v2283_v42, 256  ;;  %v2276_v1 = vrot.slane %v3631_v53, %v4050_v7  ;;  %v2234_v29 = vrot.slane %v2150_v61, %v4047_v6  ;;  %v2290_v52 = vrot.slane %v3631_v53, %v4047_v6 }
 0xb88   :  { %v2241_v23 = vrot.slane %v2150_v61, %v4055_v10  ;;  %v2297_v22 = vrot.slane %v3631_v53, %v4055_v10  ;;  %v2206_v25 = vrot.slane %v2150_v61, %v4002_v39  ;;  %v2192_v31 = vrot.slane %v2150_v61, %v3984_v24 }
 0xb89   :  { %v2220_v33 = vrot.slane %v2150_v61, %v4050_v7  ;;  %v2673_v53 = vrot.slane %v4619_v35, 1  ;;  %v2675_v61 = vrot.slane %v4619_v35, 3 }
 0xb8b   :  { %2264 = vbcast.lane.b32.xlu1 %v2262_v49, 256  ;;  %2201 = vbcast.lane.b32.xlu0 %v2199_v2, 256  ;;  %v2677_v49 = vrot.slane %v4619_v35, 5 }
 0xb8f   :  { %2250 = vbcast.lane.b32.xlu1 %v2248_v30, 256  ;;  %2215 = vbcast.lane.b32.xlu0 %v2213_v27, 256 }
 0xb93   :  { %2271 = vbcast.lane.b32.xlu1 %v2269_v11, 256  ;;  %2229 = vbcast.lane.b32.xlu0 %v2227_v41, 256  ;;  %v3634_v21 = vpop.f32.mrb[18].mxu0 }
 0xb94   :  { %v2160_v19 = vpop.f32.mrb[19].mxu0  ;;  %v2374_v58 = vrot.slane %v3634_v21, %v4002_v39  ;;  %v2381_v47 = vrot.slane %v3634_v21, %v4040_v0  ;;  %v2388_v12 = vrot.slane %v3634_v21, %v4050_v7  ;;  %v2395_v34 = vrot.slane %v3634_v21, %v4031_v55 }
 0xb95   :  { %v2367_v17 = vrot.slane %v3634_v21, %v4018_v36  ;;  %v2311_v16 = vrot.slane %v2160_v19, %v4018_v36  ;;  %v2360_v14 = vrot.slane %v3634_v21, %v3984_v24  ;;  %v2318_v5 = vrot.slane %v2160_v19, %v4002_v39 }
 0xb96   :  { %v2325_v62 = vrot.slane %v2160_v19, %v4040_v0  ;;  %v2304_v46 = vrot.slane %v2160_v19, %v3984_v24  ;;  %v2339_v57 = vrot.slane %v2160_v19, %v4031_v55  ;;  %v2332_v15 = vrot.slane %v2160_v19, %v4050_v7  ;;  %v4617_v24 = vpop.xlane.xlu1 %2181 }
 0xb97   :  { %2278 = vbcast.lane.b32.xlu1 %v2276_v1, 256  ;;  %2236 = vbcast.lane.b32.xlu0 %v2234_v29, 256  ;;  %v2346_v36 = vrot.slane %v2160_v19, %v4047_v6  ;;  %v2402_v26 = vrot.slane %v3634_v21, %v4047_v6  ;;  %v2353_v39 = vrot.slane %v2160_v19, %v4055_v10  ;;  %v2684_v51 = vrot.slane %v4617_v24, 5 }
 0xb98   :  { %v2409_v63 = vrot.slane %v3634_v21, %v4055_v10  ;;  %v2680_v10 = vrot.slane %v4617_v24, 1  ;;  %v2681_v45 = vrot.slane %v4617_v24, 2  ;;  %v2682_v32 = vrot.slane %v4617_v24, 3 }
 0xb99   :  { %v2683_v2 = vrot.slane %v4617_v24, 4 }
 0xb9a   :  { %v4621_v55 = vpop.xlane.xlu1 %2187 }
 0xb9b   :  { %2292 = vbcast.lane.b32.xlu1 %v2290_v52, 256  ;;  %2243 = vbcast.lane.b32.xlu0 %v2241_v23, 256  ;;  %v2678_v52 = vrot.slane %v4619_v35, 6  ;;  %v2685_v23 = vrot.slane %v4617_v24, 6 }
 0xb9f   :  { %2299 = vbcast.lane.b32.xlu1 %v2297_v22, 256  ;;  %2376 = vbcast.lane.b32.xlu0 %v2374_v58, 256 }
 0xba3   :  { %2208 = vbcast.lane.b32.xlu1 %v2206_v25, 256  ;;  %2383 = vbcast.lane.b32.xlu0 %v2381_v47, 256 }
 0xba7   :  { %2194 = vbcast.lane.b32.xlu1 %v2192_v31, 256  ;;  %2390 = vbcast.lane.b32.xlu0 %v2388_v12, 256 }
 0xbab   :  { %2222 = vbcast.lane.b32.xlu1 %v2220_v33, 256  ;;  %2397 = vbcast.lane.b32.xlu0 %v2395_v34, 256  ;;  %v2679_v33 = vrot.slane %v4619_v35, 7  ;;  %v2686_v34 = vrot.slane %v4617_v24, 7 }
 0xbaf   :  { %2369 = vbcast.lane.b32.xlu1 %v2367_v17, 256  ;;  %2313 = vbcast.lane.b32.xlu0 %v2311_v16, 256 }
 0xbb3   :  { %2362 = vbcast.lane.b32.xlu1 %v2360_v14, 256  ;;  %2320 = vbcast.lane.b32.xlu0 %v2318_v5, 256  ;;  %v2695_v5 = vrot.slane %v4621_v55, 2 }
 0xbb7   :  { %2327 = vbcast.lane.b32.xlu1 %v2325_v62, 256  ;;  %2306 = vbcast.lane.b32.xlu0 %v2304_v46, 256  ;;  %v2674_v62 = vrot.slane %v4619_v35, 2  ;;  %v2676_v46 = vrot.slane %v4619_v35, 4 }
 0xbbb   :  { %2341 = vbcast.lane.b32.xlu1 %v2339_v57, 256  ;;  %2334 = vbcast.lane.b32.xlu0 %v2332_v15, 256 }
 0xbbf   :  { %2348 = vbcast.lane.b32.xlu1 %v2346_v36, 256  ;;  %2404 = vbcast.lane.b32.xlu0 %v2402_v26, 256 }
 0xbc3   :  { %2355 = vbcast.lane.b32.xlu1 %v2353_v39, 256 }
 0xbc7   :  { %2411 = vbcast.lane.b32.xlu1 %v2409_v63, 256 }
 0xbf9   :  { %v2258_v20 = vpop.permute.xlu1 %2257  ;;  %v2286_v4 = vpop.permute.xlu0 %2285 }
 0xbfa   :  { %v2422_v6 = vmul.f32 %v2258_v20, %v4518_v40  ;;  %v2426_v9 = vmul.f32 %v2286_v4, %v4518_v40 }
 0xbfc   :  { %v2508_v3 = vsel %vm71_vm0, %v2422_v6, 0.0  ;;  %v2536_v13 = vsel %vm71_vm0, %v2426_v9, 0.0 }
 0xbfd   :  { %v2509_v54 = vrot.slane %v2508_v3, 4  ;;  %v2537_v28 = vrot.slane %v2536_v13, 4  ;;  %v2265_v44 = vpop.permute.xlu1 %2264  ;;  %v2202_v38 = vpop.permute.xlu0 %2201 }
 0xbfe   :  { %v2423_v56 = vmul.f32 %v2265_v44, %v4518_v40  ;;  %v2414_v37 = vmul.f32 %v2202_v38, %v4516_v18  ;;  %v2694_v38 = vrot.slane %v4621_v55, 1 }
 0xbff   :  { %v2510_v60 = vadd.f32 %v2509_v54, %v2508_v3  ;;  %v2538_v48 = vadd.f32 %v2537_v28, %v2536_v13 }
 0xc00   :  { %v2515_v59 = vsel %vm71_vm0, %v2423_v56, 0.0  ;;  %v2452_v42 = vsel %vm71_vm0, %v2414_v37, 0.0  ;;  %v2687_v56 = vrot.slane %v4623_v8, 1  ;;  %v2688_v37 = vrot.slane %v4623_v8, 2 }
 0xc01   :  { %v2511_v30 = vrot.slane %v2510_v60, 2  ;;  %v2539_v27 = vrot.slane %v2538_v48, 2  ;;  %v2516_v11 = vrot.slane %v2515_v59, 4  ;;  %v2453_v41 = vrot.slane %v2452_v42, 4  ;;  %v2251_v1 = vpop.permute.xlu1 %2250  ;;  %v2216_v29 = vpop.permute.xlu0 %2215 }
 0xc02   :  { %v2421_v21 = vmul.f32 %v2251_v1, %v4518_v40  ;;  %v2416_v19 = vmul.f32 %v2216_v29, %v4516_v18 }
 0xc03   :  { %v2512_v22 = vadd.f32 %v2511_v30, %v2510_v60  ;;  %v2540_v58 = vadd.f32 %v2539_v27, %v2538_v48  ;;  %v2517_v25 = vadd.f32 %v2516_v11, %v2515_v59  ;;  %v2454_v47 = vadd.f32 %v2453_v41, %v2452_v42 }
 0xc04   :  { %v2501_v31 = vsel %vm71_vm0, %v2421_v21, 0.0  ;;  %v2466_v12 = vsel %vm71_vm0, %v2416_v19, 0.0  ;;  %v2689_v41 = vrot.slane %v4623_v8, 3 }
 0xc05   :  { %v2513_v17 = vrot.slane %v2512_v22, 1  ;;  %v2272_v16 = vpop.permute.xlu1 %2271  ;;  %v2230_v14 = vpop.permute.xlu0 %2229  ;;  %v2502_v57 = vrot.slane %v2501_v31, 4  ;;  %v2467_v15 = vrot.slane %v2466_v12, 4  ;;  %v2541_v39 = vrot.slane %v2540_v58, 1 }
 0xc06   :  { %v2424_v36 = vmul.f32 %v2272_v16, %v4518_v40  ;;  %v2418_v26 = vmul.f32 %v2230_v14, %v4516_v18  ;;  %v2518_v63 = vrot.slane %v2517_v25, 2  ;;  %v2455_v20 = vrot.slane %v2454_v47, 2 }
 0xc07   :  { %v2503_v6 = vadd.f32 %v2502_v57, %v2501_v31  ;;  %v2468_v9 = vadd.f32 %v2467_v15, %v2466_v12  ;;  %v2514_v60 = vadd.f32 %v2513_v17, %v2512_v22  ;;  %v2542_v30 = vadd.f32 %v2541_v39, %v2540_v58 }
 0xc08   :  { %v2522_v3 = vsel %vm71_vm0, %v2424_v36, 0.0  ;;  %v2480_v13 = vsel %vm71_vm0, %v2418_v26, 0.0  ;;  %v2519_v27 = vadd.f32 %v2518_v63, %v2517_v25  ;;  %v2456_v11 = vadd.f32 %v2455_v20, %v2454_v47 }
 0xc09   :  { %v2279_v54 = vpop.permute.xlu1 %2278  ;;  %v2237_v28 = vpop.permute.xlu0 %2236  ;;  %v2504_v48 = vrot.slane %v2503_v6, 2  ;;  %v2523_v59 = vrot.slane %v2522_v3, 4  ;;  %v2481_v42 = vrot.slane %v2480_v13, 4  ;;  %v2469_v29 = vrot.slane %v2468_v9, 2 }
 0xc0a   :  { %v2425_v31 = vmul.f32 %v2279_v54, %v4518_v40  ;;  %v2419_v12 = vmul.f32 %v2237_v28, %v4516_v18  ;;  %v4668_v58 = vadd.f32 %v2680_v10, %v2514_v60  ;;  %v4673_v15 = vadd.f32 %v2684_v51, %v2542_v30 }
 0xc0b   :  { %v2505_v1 = vadd.f32 %v2504_v48, %v2503_v6  ;;  %v2524_v21 = vadd.f32 %v2523_v59, %v2522_v3  ;;  %v2482_v19 = vadd.f32 %v2481_v42, %v2480_v13  ;;  %v2520_v36 = vrot.slane %v2519_v27, 1 }
 0xc0c   :  { %v2529_v26 = vsel %vm71_vm0, %v2425_v31, 0.0  ;;  %v2487_v39 = vsel %vm71_vm0, %v2419_v12, 0.0  ;;  %v2457_v63 = vrot.slane %v2456_v11, 1  ;;  %v2470_v6 = vadd.f32 %v2469_v29, %v2468_v9 }
 0xc0d   :  { %v2293_v16 = vpop.permute.xlu1 %2292  ;;  %v2244_v14 = vpop.permute.xlu0 %2243  ;;  %v2525_v25 = vrot.slane %v2524_v21, 2  ;;  %v2483_v47 = vrot.slane %v2482_v19, 2  ;;  %v2506_v20 = vrot.slane %v2505_v1, 1  ;;  %v2530_v13 = vrot.slane %v2529_v26, 4 }
 0xc0e   :  { %v2488_v10 = vrot.slane %v2487_v39, 4  ;;  %v2427_v54 = vmul.f32 %v2293_v16, %v4518_v40  ;;  %v2420_v28 = vmul.f32 %v2244_v14, %v4516_v18  ;;  %v2811_v51 = vrot.slane %v4668_v58, 7 }
 0xc0f   :  { %v2526_v3 = vadd.f32 %v2525_v25, %v2524_v21  ;;  %v2484_v42 = vadd.f32 %v2483_v47, %v2482_v19  ;;  %v2531_v31 = vadd.f32 %v2530_v13, %v2529_v26  ;;  %v2819_v29 = vrot.slane %v4673_v15, 3 }
 0xc10   :  { %v2489_v12 = vadd.f32 %v2488_v10, %v2487_v39  ;;  %v2543_v44 = vsel %vm71_vm0, %v2427_v54, 0.0  ;;  %v2494_v9 = vsel %vm71_vm0, %v2420_v28, 0.0  ;;  %v2521_v21 = vadd.f32 %v2520_v36, %v2519_v27 }
 0xc11   :  { %v2300_v60 = vpop.permute.xlu1 %2299  ;;  %v2377_v48 = vpop.permute.xlu0 %2376  ;;  %v2527_v59 = vrot.slane %v2526_v3, 1  ;;  %v2458_v16 = vadd.f32 %v2457_v63, %v2456_v11  ;;  %v2471_v25 = vrot.slane %v2470_v6, 1  ;;  %v2507_v14 = vadd.f32 %v2506_v20, %v2505_v1 }
 0xc12   :  { %v2532_v57 = vrot.slane %v2531_v31, 2  ;;  %v2490_v4 = vrot.slane %v2489_v12, 2  ;;  %v2544_v17 = vrot.slane %v2543_v44, 4  ;;  %v2485_v47 = vrot.slane %v2484_v42, 1 }
 0xc13   :  { %v2528_v19 = vadd.f32 %v2527_v59, %v2526_v3  ;;  %v2495_v30 = vrot.slane %v2494_v9, 4  ;;  %v2428_v26 = vmul.f32 %v2300_v60, %v4518_v40  ;;  %v2439_v54 = vmul.f32 %v2377_v48, %v4529_v50 }
 0xc14   :  { %v2533_v39 = vadd.f32 %v2532_v57, %v2531_v31  ;;  %v2491_v13 = vadd.f32 %v2490_v4, %v2489_v12  ;;  %v2545_v10 = vadd.f32 %v2544_v17, %v2543_v44  ;;  %v2743_v27 = vadd.f32 %v2681_v45, %v2521_v21 }
 0xc15   :  { %v2209_v58 = vpop.permute.xlu1 %2208  ;;  %v2384_v22 = vpop.permute.xlu0 %2383  ;;  %v4690_v11 = vadd.f32 %v2673_v53, %v2458_v16  ;;  %v2496_v1 = vadd.f32 %v2495_v30, %v2494_v9  ;;  %v2550_v36 = vsel %vm71_vm0, %v2428_v26, 0.0  ;;  %v2741_v63 = vadd.f32 %v2507_v14, %v4617_v24 }
 0xc16   :  { %v2472_v20 = vadd.f32 %v2471_v25, %v2470_v6  ;;  %v2546_v3 = vrot.slane %v2545_v10, 2  ;;  %v2551_v28 = vrot.slane %v2550_v36, 4  ;;  %v2486_v4 = vadd.f32 %v2485_v47, %v2484_v42 }
 0xc17   :  { %v2497_v44 = vrot.slane %v2496_v1, 2  ;;  %v2627_v17 = vsel %vm71_vm0, %v2439_v54, 0.0  ;;  %v2415_v60 = vmul.f32 %v2209_v58, %v4516_v18  ;;  %v2744_v53 = vadd.f32 %v2682_v32, %v2528_v19 }
 0xc18   :  { %v2534_v48 = vrot.slane %v2533_v39, 1  ;;  %v2492_v59 = vrot.slane %v2491_v13, 1  ;;  %v2552_v30 = vadd.f32 %v2551_v28, %v2550_v36  ;;  %v2547_v31 = vadd.f32 %v2546_v3, %v2545_v10 }
 0xc19   :  { %v2195_v57 = vpop.permute.xlu1 %2194  ;;  %v2391_v45 = vpop.permute.xlu0 %2390  ;;  %v2628_v12 = vrot.slane %v2627_v17, 4  ;;  %v2459_v6 = vsel %vm71_vm0, %v2415_v60, 0.0  ;;  %v2440_v9 = vmul.f32 %v2384_v22, %v4529_v50  ;;  %v2813_v21 = vrot.slane %v2743_v27, 6 }
 0xc1a   :  { %v2812_v42 = vsel %vm1158_vm2, %v2811_v51, %v2741_v63  ;;  %v4703_v16 = vadd.f32 %v2675_v61, %v2472_v20  ;;  %v2553_v25 = vrot.slane %v2552_v30, 2  ;;  %v2498_v58 = vadd.f32 %v2497_v44, %v2496_v1 }
 0xc1b   :  { %v2629_v32 = vadd.f32 %v2628_v12, %v2627_v17  ;;  %v2460_v19 = vrot.slane %v2459_v6, 4  ;;  %v2634_v47 = vsel %vm71_vm0, %v2440_v9, 0.0  ;;  %v2815_v26 = vrot.slane %v2744_v53, 5 }
 0xc1c   :  { %v4708_v10 = vadd.f32 %v2677_v49, %v2486_v4  ;;  %v2535_v22 = vadd.f32 %v2534_v48, %v2533_v39  ;;  %v2493_v54 = vadd.f32 %v2492_v59, %v2491_v13  ;;  %v2548_v27 = vrot.slane %v2547_v31, 1 }
 0xc1d   :  { %v2223_v14 = vpop.permute.xlu1 %2222  ;;  %v2630_v51 = vrot.slane %v2629_v32, 2  ;;  %v2461_v36 = vadd.f32 %v2460_v19, %v2459_v6  ;;  %v2635_v63 = vrot.slane %v2634_v47, 4  ;;  %v2398_v61 = vpop.permute.xlu0 %2397  ;;  %v2797_v20 = vrot.slane %v4690_v11, 7 }
 0xc1e   :  { %v2554_v3 = vadd.f32 %v2553_v25, %v2552_v30  ;;  %v2413_v1 = vmul.f32 %v2195_v57, %v4516_v18  ;;  %v2441_v28 = vmul.f32 %v2391_v45, %v4529_v50  ;;  %v2801_v44 = vrot.slane %v4703_v16, 5 }
 0xc1f   :  { %v2499_v17 = vrot.slane %v2498_v58, 1  ;;  %v2631_v60 = vadd.f32 %v2630_v51, %v2629_v32  ;;  %v2462_v49 = vrot.slane %v2461_v36, 2  ;;  %v2814_v39 = vsel %vm1161_vm3, %v2813_v21, %v2812_v42 }
 0xc20   :  { %v4717_v13 = vadd.f32 %v2683_v2, %v2535_v22  ;;  %v2636_v53 = vadd.f32 %v2635_v63, %v2634_v47  ;;  %v2445_v48 = vsel %vm71_vm0, %v2413_v1, 0.0  ;;  %v4721_v59 = vsel %vm1164_vm4, %v2815_v26, %v2814_v39 }
 0xc21   :  { %v2370_v4 = vpop.permute.xlu1 %2369  ;;  %v2805_v57 = vrot.slane %v4708_v10, 3  ;;  %v4726_v45 = vadd.f32 %v2678_v52, %v2493_v54  ;;  %v2549_v30 = vadd.f32 %v2548_v27, %v2547_v31  ;;  %v2555_v12 = vrot.slane %v2554_v3, 1  ;;  %v2314_v19 = vpop.permute.xlu0 %2313 }
 0xc22   :  { %v2446_v6 = vrot.slane %v2445_v48, 4  ;;  %v2641_v9 = vsel %vm71_vm0, %v2441_v28, 0.0  ;;  %v2417_v2 = vmul.f32 %v2223_v14, %v4516_v18  ;;  %v2500_v21 = vadd.f32 %v2499_v17, %v2498_v58 }
 0xc23   :  { %v2632_v42 = vrot.slane %v2631_v60, 1  ;;  %v2463_v25 = vadd.f32 %v2462_v49, %v2461_v36  ;;  %v2442_v32 = vmul.f32 %v2398_v61, %v4529_v50  ;;  %v2817_v47 = vrot.slane %v4717_v13, 4 }
 0xc24   :  { %v2637_v26 = vrot.slane %v2636_v53, 2  ;;  %v2447_v22 = vadd.f32 %v2446_v6, %v2445_v48  ;;  %v2473_v52 = vsel %vm71_vm0, %v2417_v2, 0.0  ;;  %v2807_v31 = vrot.slane %v4726_v45, 2 }
 0xc25   :  { %v4736_v54 = vadd.f32 %v2685_v23, %v2549_v30  ;;  %v2642_v27 = vrot.slane %v2641_v9, 4  ;;  %v2474_v14 = vrot.slane %v2473_v52, 4  ;;  %v2363_v58 = vpop.permute.xlu1 %2362  ;;  %v2556_v51 = vadd.f32 %v2555_v12, %v2554_v3 }
 0xc26   :  { %v2448_v36 = vrot.slane %v2447_v22, 2  ;;  %v2648_v63 = vsel %vm71_vm0, %v2442_v32, 0.0  ;;  %v2438_v61 = vmul.f32 %v2370_v4, %v4529_v50  ;;  %v4742_v1 = vadd.f32 %v2679_v33, %v2500_v21  ;;  %v2321_v32 = vpop.permute.xlu0 %2320 }
 0xc27   :  { %v2633_v28 = vadd.f32 %v2632_v42, %v2631_v60  ;;  %v2464_v17 = vrot.slane %v2463_v25, 1  ;;  %v2475_v49 = vadd.f32 %v2474_v14, %v2473_v52  ;;  %v2638_v39 = vadd.f32 %v2637_v26, %v2636_v53 }
 0xc28   :  { %v2449_v48 = vadd.f32 %v2448_v36, %v2447_v22  ;;  %v2649_v23 = vrot.slane %v2648_v63, 4  ;;  %v2620_v30 = vsel %vm71_vm0, %v2438_v61, 0.0  ;;  %v2821_v6 = vrot.slane %v4736_v54, 2 }
 0xc29   :  { %v2643_v3 = vadd.f32 %v2642_v27, %v2641_v9  ;;  %v2476_v12 = vrot.slane %v2475_v49, 2  ;;  %v2621_v2 = vrot.slane %v2620_v30, 4  ;;  %v4748_v4 = vadd.f32 %v2686_v34, %v2556_v51  ;;  %v2328_v9 = vpop.permute.xlu1 %2327 }
 0xc2a   :  { %v2450_v33 = vrot.slane %v2449_v48, 1  ;;  %v2650_v21 = vadd.f32 %v2649_v23, %v2648_v63  ;;  %v2430_v60 = vmul.f32 %v2314_v19, %v4527_v43  ;;  %v4753_v53 = vadd.f32 %v2695_v5, %v2633_v28 }
 0xc2b   :  { %v2477_v42 = vadd.f32 %v2476_v12, %v2475_v49  ;;  %v2622_v26 = vadd.f32 %v2621_v2, %v2620_v30  ;;  %v2437_v22 = vmul.f32 %v2363_v58, %v4529_v50  ;;  %v2465_v52 = vadd.f32 %v2464_v17, %v2463_v25  ;;  %v2307_v17 = vpop.permute.xlu0 %2306 }
 0xc2c   :  { %v2639_v27 = vrot.slane %v2638_v39, 1  ;;  %v2451_v14 = vadd.f32 %v2450_v33, %v2449_v48  ;;  %v2564_v24 = vsel %vm71_vm0, %v2430_v60, 0.0  ;;  %v2644_v34 = vrot.slane %v2643_v3, 2 }
 0xc2d   :  { %v2623_v51 = vrot.slane %v2622_v26, 2  ;;  %v2565_v36 = vrot.slane %v2564_v24, 4  ;;  %v2613_v63 = vsel %vm71_vm0, %v2437_v22, 0.0  ;;  %v2478_v61 = vrot.slane %v2477_v42, 1 }
 0xc2e   :  { %v2651_v5 = vrot.slane %v2650_v21, 2  ;;  %v2614_v28 = vrot.slane %v2613_v63, 4  ;;  %v2733_v49 = vadd.f32 %v2451_v14, %v4619_v35  ;;  %v2431_v25 = vmul.f32 %v2321_v32, %v4527_v43  ;;  %v2342_v14 = vpop.permute.xlu1 %2341 }
 0xc2f   :  { %v2624_v23 = vadd.f32 %v2623_v51, %v2622_v26  ;;  %v2566_v58 = vadd.f32 %v2565_v36, %v2564_v24  ;;  %v2823_v48 = vrot.slane %v4748_v4, 1  ;;  %v2841_v30 = vrot.slane %v4753_v53, 6  ;;  %v2335_v11 = vpop.permute.xlu0 %2334 }
 0xc30   :  { %v2735_v12 = vadd.f32 %v2674_v62, %v2465_v52  ;;  %v2615_v2 = vadd.f32 %v2614_v28, %v2613_v63  ;;  %v4765_v33 = vadd.f32 %v2639_v27, %v2638_v39  ;;  %v4767_v60 = vadd.f32 %v2644_v34, %v2643_v3 }
 0xc31   :  { %v2625_v22 = vrot.slane %v2624_v23, 1  ;;  %v2567_v19 = vrot.slane %v2566_v58, 2  ;;  %v2479_v26 = vadd.f32 %v2478_v61, %v2477_v42  ;;  %v4769_v24 = vadd.f32 %v2651_v5, %v2650_v21 }
 0xc32   :  { %v2571_v32 = vsel %vm71_vm0, %v2431_v25, 0.0  ;;  %v2432_v4 = vmul.f32 %v2328_v9, %v4527_v43  ;;  %v2798_v51 = vsel %vm1158_vm2, %v2797_v20, %v2733_v49  ;;  %v2616_v52 = vrot.slane %v2615_v2, 2  ;;  %v2349_v49 = vpop.permute.xlu1 %2348 }
 0xc33   :  { %v2568_v62 = vadd.f32 %v2567_v19, %v2566_v58  ;;  %v2572_v39 = vrot.slane %v2571_v32, 4  ;;  %v2799_v27 = vrot.slane %v2735_v12, 6  ;;  %v2626_v3 = vadd.f32 %v2625_v22, %v2624_v23 }
 0xc34   :  { %v2578_v34 = vsel %vm71_vm0, %v2432_v4, 0.0  ;;  %v2818_v21 = vsel %vm1167_vm5, %v2817_v47, %v4721_v59  ;;  %v2646_v42 = vrot.slane %v4767_v60, 1  ;;  %v4787_v19 = vadd.f32 %v2676_v46, %v2479_v26  ;;  %v2405_v4 = vpop.permute.xlu0 %2404 }
 0xc35   :  { %v2569_v36 = vrot.slane %v2568_v62, 1  ;;  %v2573_v9 = vadd.f32 %v2572_v39, %v2571_v32  ;;  %v2579_v63 = vrot.slane %v2578_v34, 4  ;;  %v4783_v20 = vsel %vm1161_vm3, %v2799_v27, %v2798_v51 }
 0xc36   :  { %v2653_v61 = vrot.slane %v4769_v24, 1  ;;  %v2429_v5 = vmul.f32 %v2307_v17, %v4527_v43  ;;  %v2617_v13 = vadd.f32 %v2616_v52, %v2615_v2  ;;  %v2820_v47 = vsel %vm1170_vm6, %v2819_v29, %v2818_v21 }
 0xc37   :  { %v2574_v28 = vrot.slane %v2573_v9, 2  ;;  %v2580_v59 = vadd.f32 %v2579_v63, %v2578_v34  ;;  %v4796_v23 = vadd.f32 %v2694_v38, %v2626_v3  ;;  %v2822_v35 = vsel %vm1173_vm7, %v2821_v6, %v2820_v47  ;;  %v2356_v3 = vpop.permute.xlu1 %2355 }
 0xc38   :  { %v2557_v46 = vsel %vm71_vm0, %v2429_v5, 0.0  ;;  %v2434_v58 = vmul.f32 %v2342_v14, %v4527_v43  ;;  %v2570_v25 = vadd.f32 %v2569_v36, %v2568_v62  ;;  %v2824_v15 = vsel %vm1176_vm8, %v2823_v48, %v2822_v35 }
 0xc39   :  { %v2575_v17 = vadd.f32 %v2574_v28, %v2573_v9  ;;  %v2581_v12 = vrot.slane %v2580_v59, 2  ;;  %v2803_v29 = vrot.slane %v4787_v19, 4  ;;  %v4806_v2 = vadd.f32 %v2824_v15, %v4518_v40 }
 0xc3a   :  { %v2558_v38 = vrot.slane %v2557_v46, 4  ;;  %v2592_v22 = vsel %vm71_vm0, %v2434_v58, 0.0  ;;  %v2618_v54 = vrot.slane %v2617_v13, 1  ;;  %v2839_v14 = vrot.slane %v4796_v23, 7 }
 0xc3b   :  { %v2576_v26 = vrot.slane %v2575_v17, 1  ;;  %v2582_v6 = vadd.f32 %v2581_v12, %v2580_v59  ;;  %v2593_v32 = vrot.slane %v2592_v22, 4  ;;  %v2864_v51 = vsel %vm71_vm0, %v4806_v2, 0.0 }
 0xc3c   :  { %v2559_v62 = vadd.f32 %v2558_v38, %v2557_v46  ;;  %v2433_v48 = vmul.f32 %v2335_v11, %v4527_v43  ;;  %v2750_v40 = vadd.f32 %v2687_v56, %v2570_v25  ;;  %2865 = vadd.xlane.f32.xlu1 %v2864_v51  ;;  %v2435_v36 = vmul.f32 %v2349_v49, %v4527_v43 }
 0xc3d   :  { %v2577_v52 = vadd.f32 %v2576_v26, %v2575_v17  ;;  %v2583_v39 = vrot.slane %v2582_v6, 1  ;;  %v2594_v27 = vadd.f32 %v2593_v32, %v2592_v22  ;;  %v2443_v9 = vmul.f32 %v2405_v4, %v4529_v50 }
 0xc3e   :  { %v2560_v34 = vrot.slane %v2559_v62, 2  ;;  %v2585_v21 = vsel %vm71_vm0, %v2433_v48, 0.0  ;;  %v2619_v63 = vadd.f32 %v2618_v54, %v2617_v13  ;;  %v2599_v59 = vsel %vm71_vm0, %v2435_v36, 0.0 }
 0xc3f   :  { %v2584_v19 = vadd.f32 %v2583_v39, %v2582_v6  ;;  %v2595_v5 = vrot.slane %v2594_v27, 2  ;;  %v2586_v28 = vrot.slane %v2585_v21, 4  ;;  %v2655_v56 = vsel %vm71_vm0, %v2443_v9, 0.0 }
 0xc40   :  { %v2561_v11 = vadd.f32 %v2560_v34, %v2559_v62  ;;  %v2436_v47 = vmul.f32 %v2356_v3, %v4527_v43  ;;  %v2825_v35 = vrot.slane %v2750_v40, 7  ;;  %v2751_v46 = vadd.f32 %v2688_v37, %v2577_v52 }
 0xc41   :  { %v2596_v58 = vadd.f32 %v2595_v5, %v2594_v27  ;;  %v2587_v25 = vadd.f32 %v2586_v28, %v2585_v21  ;;  %v2600_v17 = vrot.slane %v2599_v59, 4  ;;  %v2656_v12 = vrot.slane %v2655_v56, 4 }
 0xc42   :  { %v2562_v49 = vrot.slane %v2561_v11, 1  ;;  %v2606_v13 = vsel %vm71_vm0, %v2436_v47, 0.0  ;;  %v2752_v15 = vadd.f32 %v2689_v41, %v2584_v19  ;;  %v2802_v37 = vsel %vm1164_vm4, %v2801_v44, %v4783_v20  ;;  %v2412_v44 = vpop.permute.xlu1 %2411 }
 0xc43   :  { %v2597_v38 = vrot.slane %v2596_v58, 1  ;;  %v2588_v22 = vrot.slane %v2587_v25, 2  ;;  %v2607_v54 = vrot.slane %v2606_v13, 4  ;;  %v2601_v6 = vadd.f32 %v2600_v17, %v2599_v59 }
 0xc44   :  { %v2563_v26 = vadd.f32 %v2562_v49, %v2561_v11  ;;  %v2657_v32 = vadd.f32 %v2656_v12, %v2655_v56  ;;  %v2804_v48 = vsel %vm1167_vm5, %v2803_v29, %v2802_v37  ;;  %v2757_v27 = vadd.f32 %v2619_v63, %v4621_v55 }
 0xc45   :  { %v2598_v4 = vadd.f32 %v2597_v38, %v2596_v58  ;;  %v2589_v51 = vadd.f32 %v2588_v22, %v2587_v25  ;;  %v2608_v62 = vadd.f32 %v2607_v54, %v2606_v13  ;;  %v2602_v52 = vrot.slane %v2601_v6, 2 }
 0xc46   :  { %v2749_v40 = vadd.f32 %v2563_v26, %v4623_v8  ;;  %v2658_v41 = vrot.slane %v2657_v32, 2  ;;  %v2806_v39 = vsel %vm1170_vm6, %v2805_v57, %v2804_v48  ;;  %v5051_v36 = vrot.slane %v4742_v1, 1 }
 0xc47   :  { %v2590_v3 = vrot.slane %v2589_v51, 1  ;;  %v2609_v34 = vrot.slane %v2608_v62, 2  ;;  %v2808_v16 = vsel %vm1173_vm7, %v2807_v31, %v2806_v39  ;;  %v2603_v29 = vadd.f32 %v2602_v52, %v2601_v6 }
 0xc48   :  { %v2826_v20 = vsel %vm1158_vm2, %v2825_v35, %v2749_v40  ;;  %v2659_v21 = vadd.f32 %v2658_v41, %v2657_v32  ;;  %v2810_v9 = vsel %vm1176_vm8, %v5051_v36, %v2808_v16  ;;  %v2827_v10 = vrot.slane %v2751_v46, 6 }
 0xc49   :  { %v5052_v57 = vrot.slane %v4623_v8, 5  ;;  %v2591_v63 = vadd.f32 %v2590_v3, %v2589_v51  ;;  %v2610_v5 = vadd.f32 %v2609_v34, %v2608_v62  ;;  %v2829_v28 = vrot.slane %v2752_v15, 5 }
 0xc4a   :  { %v2604_v11 = vrot.slane %v2603_v29, 1  ;;  %v4846_v45 = vadd.f32 %v2810_v9, %v4516_v18  ;;  %v2444_v31 = vmul.f32 %v2412_v44, %v4529_v50  ;;  %v2828_v59 = vsel %vm1161_vm3, %v2827_v10, %v2826_v20 }
 0xc4b   :  { %v2754_v19 = vadd.f32 %v5052_v57, %v2598_v4  ;;  %v5053_v56 = vrot.slane %v4623_v8, 4  ;;  %v2660_v47 = vrot.slane %v2659_v21, 1  ;;  %v2611_v35 = vrot.slane %v2610_v5, 1 }
 0xc4c   :  { %v2605_v46 = vadd.f32 %v2604_v11, %v2603_v29  ;;  %v2861_v58 = vsel %vm71_vm0, %v4846_v45, 0.0  ;;  %v2662_v25 = vsel %vm71_vm0, %v2444_v31, 0.0  ;;  %v2898_v49 = vmul.f32 %v4806_v2, %v4806_v2 }
 0xc4d   :  { %v2753_v1 = vadd.f32 %v5053_v56, %v2591_v63  ;;  %v2833_v18 = vrot.slane %v2754_v19, 3  ;;  %v2612_v12 = vadd.f32 %v2611_v35, %v2610_v5  ;;  %2862 = vadd.xlane.f32.xlu0 %v2861_v58  ;;  %v2663_v13 = vrot.slane %v2662_v25, 4  ;;  %v3360_v58 = vld [vmem:[%s5029_s5 + $0x20] sm:$0xff] }
 0xc4e   :  { %v5054_v15 = vrot.slane %v4621_v55, 3  ;;  %v2647_v22 = vadd.f32 %v2646_v42, %v4767_v60  ;;  %v5055_v54 = vrot.slane %v4623_v8, 6  ;;  %v2830_v6 = vsel %vm1164_vm4, %v2829_v28, %v2828_v59 }
 0xc4f   :  { %v2831_v17 = vrot.slane %v2753_v1, 4  ;;  %v2840_v32 = vsel %vm1158_vm2, %v2839_v14, %v2757_v27  ;;  %v5056_v37 = vrot.slane %v4623_v8, 7  ;;  %v2664_v51 = vadd.f32 %v2663_v13, %v2662_v25  ;;  %v3361_v25 = vld [vmem:[%s5029_s5 + $0x28] sm:$0xff] }
 0xc50   :  { %v2760_v38 = vadd.f32 %v5054_v15, %v4765_v33  ;;  %v2755_v26 = vadd.f32 %v5055_v54, %v2605_v46  ;;  %v2661_v48 = vadd.f32 %v2660_v47, %v2659_v21  ;;  %v2904_v40 = vsel %vm71_vm0, %v2898_v49, 0.0  ;;  %v3365_v13 = vld [vmem:[%s5030_s6 + $0x48] sm:$0xff]  ;;  %v3366_v15 = vld [vmem:[%s5030_s6 + $0x50] sm:$0xff] }
 0xc51   :  { %v2756_v4 = vadd.f32 %v5056_v37, %v2612_v12  ;;  %v2832_v62 = vsel %vm1167_vm5, %v2831_v17, %v2830_v6  ;;  %v2897_v60 = vmul.f32 %v4846_v45, %v4846_v45  ;;  %v2654_v42 = vadd.f32 %v2653_v61, %v4769_v24  ;;  %2905 = vadd.xlane.f32.xlu0 %v2904_v40  ;;  %v3364_v12 = vld [vmem:[%s5030_s6 + $0x40] sm:$0xff]  ;;  %v3369_v6 = vld [vmem:[%s5030_s6 + $0x68] sm:$0xff] }
 0xc52   :  { %v2835_v33 = vrot.slane %v2755_v26, 2  ;;  %v2665_v52 = vrot.slane %v2664_v51, 2  ;;  %v2834_v8 = vsel %vm1170_vm6, %v2833_v18, %v2832_v62  ;;  %v5057_v14 = vrot.slane %v4621_v55, 4  ;;  %v3363_v18 = vld [vmem:[%s5029_s5 + $0x38] sm:$0xff]  ;;  %v3368_v26 = vld [vmem:[%s5030_s6 + $0x60] sm:$0xff] }
 0xc53   :  { %v2837_v23 = vrot.slane %v2756_v4, 1  ;;  %v2842_v39 = vsel %vm1161_vm3, %v2841_v30, %v2840_v32  ;;  %v2699_v27 = vrot.slane %v4621_v55, 6  ;;  %v2843_v34 = vrot.slane %v2760_v38, 5 }
 0xc54   :  { %v2761_v41 = vadd.f32 %v5057_v14, %v2647_v22  ;;  %v2836_v3 = vsel %vm1173_vm7, %v2835_v33, %v2834_v8  ;;  %v2698_v16 = vrot.slane %v4621_v55, 5  ;;  %v2666_v24 = vadd.f32 %v2665_v52, %v2664_v51  ;;  %v3367_v22 = vld [vmem:[%s5030_s6 + $0x58] sm:$0xff] }
 0xc55   :  { %v2838_v61 = vsel %vm1176_vm8, %v2837_v23, %v2836_v3  ;;  %v2763_v44 = vadd.f32 %v2699_v27, %v2661_v48  ;;  %v2901_v20 = vsel %vm71_vm0, %v2897_v60, 0.0  ;;  %v2844_v30 = vsel %vm1164_vm4, %v2843_v34, %v2842_v39 }
 0xc56   :  { %v4890_v29 = vadd.f32 %v2838_v61, %v4527_v43  ;;  %v2762_v21 = vadd.f32 %v2698_v16, %v2654_v42  ;;  %v2667_v53 = vrot.slane %v2666_v24, 1  ;;  %2902 = vadd.xlane.f32.xlu0 %v2901_v20  ;;  %v2845_v36 = vrot.slane %v2761_v41, 4 }
 0xc57   :  { %v2700_v10 = vrot.slane %v4621_v55, 7  ;;  %v2849_v19 = vrot.slane %v2763_v44, 2  ;;  %v3743_v49 = vpack.c.bf16 %v3361_v25, %v3360_v58  ;;  %v3751_v38 = vpack.c.bf16 %v3365_v13, %v3364_v12 }
 0xc58   :  { %v2867_v9 = vsel %vm71_vm0, %v4890_v29, 0.0  ;;  %v2668_v57 = vadd.f32 %v2667_v53, %v2666_v24  ;;  %v2899_v63 = vmul.f32 %v4890_v29, %v4890_v29  ;;  %v2846_v5 = vsel %vm1167_vm5, %v2845_v36, %v2844_v30 }
 0xc59   :  { %v2847_v43 = vrot.slane %v2762_v21, 3  ;;  %3744 = vmatprep.subr.bf16.mxu1 %v3743_v49  ;;  %v3755_v54 = vpack.c.bf16 %v3367_v22, %v3366_v15  ;;  %3752 = vmatprep.subr.bf16.mxu0 %v3751_v38  ;;  %v3759_v32 = vpack.c.bf16 %v3369_v6, %v3368_v26 }
 0xc5a   :  { %v2764_v28 = vadd.f32 %v2700_v10, %v2668_v57  ;;  %2868 = vadd.xlane.f32.xlu0 %v2867_v9  ;;  %v2907_v59 = vsel %vm71_vm0, %v2899_v63, 0.0  ;;  %3746 = vmatpush3.bf16.msra.mxu1 %v3743_v49 }
 0xc5b   :  { %v2848_v31 = vsel %vm1170_vm6, %v2847_v43, %v2846_v5  ;;  %3754 = vmatpush3.bf16.msra.mxu0 %v3751_v38 }
 0xc5c   :  { %v2851_v11 = vrot.slane %v2764_v28, 1  ;;  %v2850_v56 = vsel %vm1173_vm7, %v2849_v19, %v2848_v31  ;;  %3756 = vmatprep.subr.bf16.mxu0 %v3755_v54 }
 0xc5e   :  { %2908 = vadd.xlane.f32.xlu0 %v2907_v59  ;;  %v2852_v55 = vsel %vm1176_vm8, %v2851_v11, %v2850_v56 }
 0xc5f   :  { %v4904_v1 = vadd.f32 %v2852_v55, %v4529_v50  ;;  %v3362_v50 = vld [vmem:[%s5029_s5 + $0x30] sm:$0xff]  ;;  %3758 = vmatpush3.bf16.msra.mxu0 %v3755_v54 }
 0xc60   :  { %v3747_v17 = vpack.c.bf16 %v3363_v18, %v3362_v50  ;;  %3760 = vmatprep.subr.bf16.mxu0 %v3759_v32 }
 0xc61   :  { %v2870_v47 = vsel %vm71_vm0, %v4904_v1, 0.0  ;;  %v2900_v35 = vmul.f32 %v4904_v1, %v4904_v1 }
 0xc62   :  { %2871 = vadd.xlane.f32.xlu1 %v2870_v47  ;;  %3748 = vmatprep.subr.bf16.mxu1 %v3747_v17 }
 0xc63   :  { %v2910_v46 = vsel %vm71_vm0, %v2900_v35, 0.0  ;;  %3750 = vmatpush3.bf16.msra.mxu1 %v3747_v17  ;;  %3762 = vmatpush3.bf16.msra.mxu0 %v3759_v32 }
 0xc66   :  { %2911 = vadd.xlane.f32.xlu1 %v2910_v46 }
 0xcc9   :  { %v2866_v37 = vpop.xlane.xlu1 %2865 }
 0xcca   :  { %v2879_v4 = vrot.slane %v2866_v37, 4 }
 0xccc   :  { %v2880_v51 = vadd.f32 %v2879_v4, %v2866_v37 }
 0xcce   :  { %v2881_v62 = vrot.slane %v2880_v51, 2 }
 0xcd0   :  { %v2882_v48 = vadd.f32 %v2881_v62, %v2880_v51 }
 0xcd2   :  { %v2883_v23 = vrot.slane %v2882_v48, 1 }
 0xcd4   :  { %v2884_v27 = vadd.f32 %v2883_v23, %v2882_v48 }
 0xcd6   :  { %v2938_v21 = vmul.f32 0.00390625, %v2884_v27 }
 0xcd8   :  { %v2946_v5 = vmul.f32 %v2938_v21, %v2938_v21 }
 0xcda   :  { %v2863_v33 = vpop.xlane.xlu0 %2862 }
 0xcdb   :  { %v2873_v40 = vrot.slane %v2863_v33, 4 }
 0xcdd   :  { %v2874_v60 = vadd.f32 %v2873_v40, %v2863_v33 }
 0xcde   :  { %v2906_v42 = vpop.xlane.xlu0 %2905 }
 0xcdf   :  { %v2875_v52 = vrot.slane %v2874_v60, 2  ;;  %v2919_v8 = vrot.slane %v2906_v42, 4 }
 0xce1   :  { %v2876_v14 = vadd.f32 %v2875_v52, %v2874_v60  ;;  %v2920_v41 = vadd.f32 %v2919_v8, %v2906_v42  ;;  %v2954_v8 = vsub.f32 %v4806_v2, %v2938_v21  ;;  %v3374_v2 = vld [vmem:[%s5032_s8 + $0x28] sm:$0xff] }
 0xce3   :  { %v2903_v39 = vpop.xlane.xlu0 %2902  ;;  %v2877_v3 = vrot.slane %v2876_v14, 1  ;;  %v2921_v34 = vrot.slane %v2920_v41, 2 }
 0xce4   :  { %v2913_v16 = vrot.slane %v2903_v39, 4 }
 0xce5   :  { %v2922_v24 = vadd.f32 %v2921_v34, %v2920_v41  ;;  %v2878_v44 = vadd.f32 %v2877_v3, %v2876_v14 }
 0xce6   :  { %v2914_v61 = vadd.f32 %v2913_v16, %v2903_v39  ;;  %v3373_v16 = vld [vmem:[%s5032_s8 + $0x20] sm:$0xff] }
 0xce7   :  { %v2869_v20 = vpop.xlane.xlu0 %2868  ;;  %v2923_v53 = vrot.slane %v2922_v24, 1  ;;  %v2937_v57 = vmul.f32 0.00390625, %v2878_v44 }
 0xce8   :  { %v2915_v30 = vrot.slane %v2914_v61, 2  ;;  %v2885_v36 = vrot.slane %v2869_v20, 4 }
 0xce9   :  { %v2924_v9 = vadd.f32 %v2923_v53, %v2922_v24  ;;  %v2945_v47 = vmul.f32 %v2937_v57, %v2937_v57  ;;  %v2953_v34 = vsub.f32 %v4846_v45, %v2937_v57 }
 0xcea   :  { %v2916_v10 = vadd.f32 %v2915_v30, %v2914_v61  ;;  %v2886_v19 = vadd.f32 %v2885_v36, %v2869_v20 }
 0xceb   :  { %v2909_v63 = vpop.xlane.xlu0 %2908  ;;  %v2942_v43 = vmul.f32 0.00390625, %v2924_v9 }
 0xcec   :  { %v2917_v28 = vrot.slane %v2916_v10, 1  ;;  %v2925_v11 = vrot.slane %v2909_v63, 4  ;;  %v2887_v31 = vrot.slane %v2886_v19, 2 }
 0xced   :  { %v2950_v59 = vsub.f32 %v2942_v43, %v2946_v5 }
 0xcee   :  { %v2918_v56 = vadd.f32 %v2917_v28, %v2916_v10  ;;  %v2926_v55 = vadd.f32 %v2925_v11, %v2909_v63  ;;  %v2888_v35 = vadd.f32 %v2887_v31, %v2886_v19 }
 0xcef   :  { %v2872_v46 = vpop.xlane.xlu1 %2871  ;;  %v2958_v58 = vadd.f32 1e-05, %v2950_v59 }
 0xcf0   :  { %v2941_v25 = vmul.f32 0.00390625, %v2918_v56  ;;  %v2891_v50 = vrot.slane %v2872_v46, 4  ;;  %v2927_v49 = vrot.slane %v2926_v55, 2  ;;  %v2889_v18 = vrot.slane %v2888_v35, 1  ;;  %v3371_v56 = vld [vmem:[%s5030_s6 + $0x78] sm:$0xff] }
 0xcf1   :  { %3818 = vrsqrt.f32 %v2958_v58 }
 0xcf2   :  { %v2949_v17 = vsub.f32 %v2941_v25, %v2945_v47  ;;  %v2892_v12 = vadd.f32 %v2891_v50, %v2872_v46  ;;  %v2928_v13 = vadd.f32 %v2927_v49, %v2926_v55  ;;  %v2890_v15 = vadd.f32 %v2889_v18, %v2888_v35 }
 0xcf3   :  { %v2912_v38 = vpop.xlane.xlu1 %2911 }
 0xcf4   :  { %v2957_v22 = vadd.f32 1e-05, %v2949_v17  ;;  %v2893_v54 = vrot.slane %v2892_v12, 2  ;;  %v2929_v26 = vrot.slane %v2928_v13, 1  ;;  %v2931_v6 = vrot.slane %v2912_v38, 4 }
 0xcf5   :  { %v2939_v32 = vmul.f32 0.00390625, %v2890_v15 }
 0xcf6   :  { %3820 = vrsqrt.f32 %v2957_v22  ;;  %v2894_v37 = vadd.f32 %v2893_v54, %v2892_v12  ;;  %v2930_v4 = vadd.f32 %v2929_v26, %v2928_v13  ;;  %v2932_v51 = vadd.f32 %v2931_v6, %v2912_v38 }
 0xcf7   :  { %v2947_v62 = vmul.f32 %v2939_v32, %v2939_v32  ;;  %v2955_v45 = vsub.f32 %v4890_v29, %v2939_v32  ;;  %v3370_v29 = vld [vmem:[%s5030_s6 + $0x70] sm:$0xff] }
 0xcf8   :  { %v2895_v33 = vrot.slane %v2894_v37, 1  ;;  %v2943_v48 = vmul.f32 0.00390625, %v2930_v4  ;;  %v2933_v40 = vrot.slane %v2932_v51, 2  ;;  %v3763_v55 = vpack.c.bf16 %v3371_v56, %v3370_v29 }
 0xcfa   :  { %v2896_v60 = vadd.f32 %v2895_v33, %v2894_v37  ;;  %v2951_v42 = vsub.f32 %v2943_v48, %v2947_v62  ;;  %v2934_v23 = vadd.f32 %v2933_v40, %v2932_v51  ;;  %3764 = vmatprep.subr.bf16.mxu0 %v3763_v55 }
 0xcfb   :  { %v3819_v52 = vpop.eup %3818  ;;  %3766 = vmatpush3.bf16.msra.mxu0 %v3763_v55 }
 0xcfc   :  { %v2940_v14 = vmul.f32 0.00390625, %v2896_v60  ;;  %v2959_v41 = vadd.f32 1e-05, %v2951_v42  ;;  %v2935_v39 = vrot.slane %v2934_v23, 1  ;;  %v2966_v3 = vmul.f32 %v3819_v52, %v2954_v8 }
 0xcfe   :  { %3822 = vrsqrt.f32 %v2959_v41  ;;  %v2936_v27 = vadd.f32 %v2935_v39, %v2934_v23  ;;  %v2948_v61 = vmul.f32 %v2940_v14, %v2940_v14  ;;  %v2970_v30 = vmul.f32 %v3373_v16, %v2966_v3 }
 0xcff   :  { %v2956_v43 = vsub.f32 %v4904_v1, %v2940_v14  ;;  %v3839_v1 = vld [vmem:[%s5031_s7 + $0x8] sm:$0x1f] }
 0xd00   :  { %v3821_v24 = vpop.eup %3820  ;;  %v2944_v44 = vmul.f32 0.00390625, %v2936_v27  ;;  %v2974_v10 = vadd.f32 %v3374_v2, %v2970_v30  ;;  %v2980_v47 = vrot.slane %v3839_v1, %v4040_v0  ;;  %v3085_v0 = vrot.slane %v3839_v1, %v4050_v7 }
 0xd01   :  { %v2965_v20 = vmul.f32 %v3821_v24, %v2953_v34 }
 0xd02   :  { %v2952_v53 = vsub.f32 %v2944_v44, %v2948_v61 }
 0xd03   :  { %v2969_v21 = vmul.f32 %v3373_v16, %v2965_v20 }
 0xd04   :  { %v2960_v36 = vadd.f32 1e-05, %v2952_v53 }
 0xd05   :  { %v2973_v9 = vadd.f32 %v3374_v2, %v2969_v21 }
 0xd06   :  { %3824 = vrsqrt.f32 %v2960_v36 }
 0xd07   :  { %3643 = vmatprep.mubr.msk.f32.mxu1 %vm71_vm0, %v2973_v9 }
 0xd08   :  { %v3823_v57 = vpop.eup %3822  ;;  %3644 = vmatmul.mubr.msk.f32.vlgmr.msra.gmra.mrb[20].mxu1 %vm71_vm0, %v2974_v10 }
 0xd09   :  { %v2967_v19 = vmul.f32 %v3823_v57, %v2955_v45 }
 0xd0b   :  { %v2971_v63 = vmul.f32 %v3373_v16, %v2967_v19 }
 0xd0d   :  { %v2975_v5 = vadd.f32 %v3374_v2, %v2971_v63 }
 0xd0f   :  { %3646 = vmatprep.mubr.msk.f32.mxu1 %vm71_vm0, %v2975_v5 }
 0xd10   :  { %v3825_v28 = vpop.eup %3824 }
 0xd11   :  { %v2968_v11 = vmul.f32 %v3825_v28, %v2956_v43 }
 0xd13   :  { %v2972_v31 = vmul.f32 %v3373_v16, %v2968_v11 }
 0xd15   :  { %v2976_v59 = vadd.f32 %v3374_v2, %v2972_v31 }
 0xd17   :  { %3647 = vmatmul.mubr.msk.f32.gmra.mrb[22].mxu1 %vm71_vm0, %v2976_v59 }
 0xddb   :  { %v3645_v35 = vpop.f32.mrb[20].mxu1 }
 0xddc   :  { %v3065_v46 = vadd.f32 %v3645_v35, %v2980_v47  ;;  %v3059_v58 = vpop.f32.mrb[21].mxu1 }
 0xddd   :  { %v3060_v25 = vadd.f32 %v3059_v58, %v2980_v47 }
 0xdde   :  { %v3079_v49 = vmax.f32 %v3065_v46, 0.0 }
 0xddf   :  { %v3078_v50 = vmax.f32 %v3060_v25, 0.0 }
 0xde1   :  { %3665 = vmatprep.mubr.msk.f32.mxu0 %vm1453_vm9, %v3078_v50 }
 0xde2   :  { %3666 = vmatmul.mubr.msk.f32.vlgmr.msra.gmra.mrb[20].mxu0 %vm1453_vm9, %v3079_v49 }
 0xdea   :  { %v3648_v18 = vpop.f32.mrb[22].mxu1 }
 0xdeb   :  { %v3075_v17 = vadd.f32 %v3648_v18, %v2980_v47  ;;  %v3069_v12 = vpop.f32.mrb[23].mxu1 }
 0xdec   :  { %v3070_v13 = vadd.f32 %v3069_v12, %v2980_v47 }
 0xded   :  { %v3081_v38 = vmax.f32 %v3075_v17, 0.0 }
 0xdee   :  { %v3080_v15 = vmax.f32 %v3070_v13, 0.0 }
 0xdf0   :  { %3668 = vmatprep.mubr.msk.f32.mxu0 %vm1453_vm9, %v3080_v15 }
 0xdf1   :  { %3669 = vmatmul.mubr.msk.f32.gmra.mrb[22].mxu0 %vm1453_vm9, %v3081_v38 }
 0xeb5   :  { %v3667_v22 = vpop.f32.mrb[20].mxu0 }
 0xeb6   :  { %v3170_v54 = vadd.f32 %v3667_v22, %v3085_v0  ;;  %v3164_v26 = vpop.f32.mrb[21].mxu0 }
 0xeb7   :  { %v3165_v6 = vadd.f32 %v3164_v26, %v3085_v0 }
 0xeb8   :  { %v4970_v32 = vadd.f32 %v3170_v54, %v2974_v10 }
 0xeb9   :  { %v4972_v37 = vadd.f32 %v3165_v6, %v2973_v9 }
 0xeba   :  { %v3190_v4 = vsel %vm71_vm0, %v4970_v32, 0.0  ;;  %v3224_v51 = vmul.f32 %v4970_v32, %v4970_v32 }
 0xebb   :  { %3191 = vadd.xlane.f32.xlu1 %v3190_v4  ;;  %v3187_v62 = vsel %vm71_vm0, %v4972_v37, 0.0  ;;  %v3223_v7 = vmul.f32 %v4972_v37, %v4972_v37 }
 0xebc   :  { %3188 = vadd.xlane.f32.xlu0 %v3187_v62  ;;  %v3230_v33 = vsel %vm71_vm0, %v3224_v51, 0.0 }
 0xebd   :  { %v3227_v48 = vsel %vm71_vm0, %v3223_v7, 0.0 }
 0xebf   :  { %3231 = vadd.xlane.f32.xlu1 %v3230_v33 }
 0xec0   :  { %3228 = vadd.xlane.f32.xlu0 %v3227_v48 }
 0xec4   :  { %v3670_v40 = vpop.f32.mrb[22].mxu0 }
 0xec5   :  { %v3180_v60 = vadd.f32 %v3670_v40, %v3085_v0  ;;  %v3174_v42 = vpop.f32.mrb[23].mxu0 }
 0xec6   :  { %v3175_v23 = vadd.f32 %v3174_v42, %v3085_v0 }
 0xec7   :  { %v4984_v52 = vadd.f32 %v3180_v60, %v2976_v59 }
 0xec8   :  { %v4986_v8 = vadd.f32 %v3175_v23, %v2975_v5 }
 0xec9   :  { %v3196_v14 = vsel %vm71_vm0, %v4984_v52, 0.0  ;;  %v3226_v41 = vmul.f32 %v4984_v52, %v4984_v52 }
 0xeca   :  { %3197 = vadd.xlane.f32.xlu1 %v3196_v14  ;;  %v3193_v39 = vsel %vm71_vm0, %v4986_v8, 0.0  ;;  %v3225_v27 = vmul.f32 %v4986_v8, %v4986_v8 }
 0xecb   :  { %3194 = vadd.xlane.f32.xlu0 %v3193_v39  ;;  %v3236_v3 = vsel %vm71_vm0, %v3226_v41, 0.0 }
 0xecc   :  { %v3233_v34 = vsel %vm71_vm0, %v3225_v27, 0.0 }
 0xece   :  { %3237 = vadd.xlane.f32.xlu1 %v3236_v3 }
 0xecf   :  { %3234 = vadd.xlane.f32.xlu0 %v3233_v34 }
 0xf48   :  { %v3192_v16 = vpop.xlane.xlu1 %3191 }
 0xf49   :  { %v3205_v24 = vrot.slane %v3192_v16, 4  ;;  %v3189_v61 = vpop.xlane.xlu0 %3188 }
 0xf4a   :  { %v3199_v44 = vrot.slane %v3189_v61, 4 }
 0xf4b   :  { %v3206_v20 = vadd.f32 %v3205_v24, %v3192_v16 }
 0xf4c   :  { %v3200_v53 = vadd.f32 %v3199_v44, %v3189_v61  ;;  %v3232_v30 = vpop.xlane.xlu1 %3231 }
 0xf4d   :  { %v3207_v2 = vrot.slane %v3206_v20, 2  ;;  %v3245_v21 = vrot.slane %v3232_v30, 4  ;;  %v3229_v36 = vpop.xlane.xlu0 %3228 }
 0xf4e   :  { %v3201_v9 = vrot.slane %v3200_v53, 2  ;;  %v3239_v10 = vrot.slane %v3229_v36, 4 }
 0xf4f   :  { %v3208_v45 = vadd.f32 %v3207_v2, %v3206_v20  ;;  %v3246_v57 = vadd.f32 %v3245_v21, %v3232_v30 }
 0xf50   :  { %v3202_v19 = vadd.f32 %v3201_v9, %v3200_v53  ;;  %v3240_v63 = vadd.f32 %v3239_v10, %v3229_v36 }
 0xf51   :  { %v3209_v5 = vrot.slane %v3208_v45, 1  ;;  %v3247_v43 = vrot.slane %v3246_v57, 2 }
 0xf52   :  { %v3203_v28 = vrot.slane %v3202_v19, 1  ;;  %v3241_v11 = vrot.slane %v3240_v63, 2 }
 0xf53   :  { %v3210_v31 = vadd.f32 %v3209_v5, %v3208_v45  ;;  %v3248_v59 = vadd.f32 %v3247_v43, %v3246_v57 }
 0xf54   :  { %v3204_v29 = vadd.f32 %v3203_v28, %v3202_v19  ;;  %v3242_v56 = vadd.f32 %v3241_v11, %v3240_v63  ;;  %v3375_v63 = vld [vmem:[%s5032_s8 + $0x30] sm:$0xff] }
 0xf55   :  { %v3264_v55 = vmul.f32 0.00390625, %v3210_v31  ;;  %v3249_v1 = vrot.slane %v3248_v59, 1 }
 0xf56   :  { %v3263_v47 = vmul.f32 0.00390625, %v3204_v29  ;;  %v3243_v35 = vrot.slane %v3242_v56, 1 }
 0xf57   :  { %v3250_v46 = vadd.f32 %v3249_v1, %v3248_v59  ;;  %v3198_v58 = vpop.xlane.xlu1 %3197  ;;  %v3272_v18 = vmul.f32 %v3264_v55, %v3264_v55  ;;  %v3280_v21 = vsub.f32 %v4970_v32, %v3264_v55  ;;  %v3376_v32 = vld [vmem:[%s5032_s8 + $0x38] sm:$0xff]  ;;  %s3864_s8 = smov [#allocation2]  }
 0xf58   :  { %v3244_v25 = vadd.f32 %v3243_v35, %v3242_v56  ;;  %v3217_v50 = vrot.slane %v3198_v58, 4  ;;  %v3195_v49 = vpop.xlane.xlu0 %3194  ;;  %v3271_v13 = vmul.f32 %v3263_v47, %v3263_v47  ;;  %v3279_v45 = vsub.f32 %v4972_v37, %v3263_v47  ;;  %s3312_s29 = sshll.u32 %s3864_s8, 4  ;;  %s3313_s29 = int_to_ptr.vmem [resolvable:$true] %s3312_s29 }
 0xf59   :  { %v3268_v17 = vmul.f32 0.00390625, %v3250_v46  ;;  %v3211_v12 = vrot.slane %v3195_v49, 4  ;;  %s3840_s30 = scalar_lea.vmem %s3313_s29, 512  ;;  %p3845_p1 = scmp.lt.s32.totalorder %s3313_s29, %s3313_s29 }
 0xf5a   :  { %v3267_v15 = vmul.f32 0.00390625, %v3244_v25  ;;  %v3218_v38 = vadd.f32 %v3217_v50, %v3198_v58  ;;  %p3841_p0 = scmp.ne.s32.totalorder %s3313_s29, %s3840_s30  ;;  %p3846_p2 = scmp.lt.s32.totalorder %s3840_s30, %s3840_s30 }
 0xf5b   :  { %v3276_v0 = vsub.f32 %v3268_v17, %v3272_v18  ;;  %v3212_v22 = vadd.f32 %v3211_v12, %v3195_v49  ;;  %v3238_v54 = vpop.xlane.xlu1 %3237 }
 0xf5c   :  { %v3275_v26 = vsub.f32 %v3267_v15, %v3271_v13  ;;  %v3219_v6 = vrot.slane %v3218_v38, 2  ;;  %v3257_v4 = vrot.slane %v3238_v54, 4  ;;  %v3235_v51 = vpop.xlane.xlu0 %3234  ;;  %p3847_p3 = por %p3846_p2, %p3845_p1 }
 0xf5d   :  { %v3284_v62 = vadd.f32 1e-05, %v3276_v0  ;;  %v3213_v7 = vrot.slane %v3212_v22, 2  ;;  %v3251_v33 = vrot.slane %v3235_v51, 4 }
 0xf5e   :  { %v3283_v48 = vadd.f32 1e-05, %v3275_v26  ;;  %v3220_v40 = vadd.f32 %v3219_v6, %v3218_v38  ;;  %v3258_v60 = vadd.f32 %v3257_v4, %v3238_v54  ;;  %p3848_p4 = pnand %p3847_p3, %p3841_p0 }
 0xf5f   :  { %3826 = vrsqrt.f32 %v3284_v62  ;;  %v3214_v42 = vadd.f32 %v3213_v7, %v3212_v22  ;;  %v3252_v23 = vadd.f32 %v3251_v33, %v3235_v51 }
 0xf60   :  { %3828 = vrsqrt.f32 %v3283_v48  ;;  %v3221_v14 = vrot.slane %v3220_v40, 1  ;;  %v3259_v41 = vrot.slane %v3258_v60, 2 }
 0xf61   :  { %v3215_v39 = vrot.slane %v3214_v42, 1  ;;  %v3253_v27 = vrot.slane %v3252_v23, 2 }
 0xf62   :  { %v3222_v3 = vadd.f32 %v3221_v14, %v3220_v40  ;;  %v3260_v34 = vadd.f32 %v3259_v41, %v3258_v60 }
 0xf63   :  { %v3216_v16 = vadd.f32 %v3215_v39, %v3214_v42  ;;  %v3254_v24 = vadd.f32 %v3253_v27, %v3252_v23 }
 0xf64   :  { %v3266_v61 = vmul.f32 0.00390625, %v3222_v3  ;;  %v3261_v44 = vrot.slane %v3260_v34, 1 }
 0xf65   :  { %v3265_v20 = vmul.f32 0.00390625, %v3216_v16  ;;  %v3255_v53 = vrot.slane %v3254_v24, 1 }
 0xf66   :  { %v3262_v30 = vadd.f32 %v3261_v44, %v3260_v34  ;;  %v3274_v36 = vmul.f32 %v3266_v61, %v3266_v61  ;;  %v3282_v47 = vsub.f32 %v4984_v52, %v3266_v61 }
 0xf67   :  { %v3256_v2 = vadd.f32 %v3255_v53, %v3254_v24  ;;  %v3273_v57 = vmul.f32 %v3265_v20, %v3265_v20  ;;  %v3281_v46 = vsub.f32 %v4986_v8, %v3265_v20 }
 0xf68   :  { %v3270_v9 = vmul.f32 0.00390625, %v3262_v30 }
 0xf69   :  { %v3827_v10 = vpop.eup %3826  ;;  %v3269_v19 = vmul.f32 0.00390625, %v3256_v2 }
 0xf6a   :  { %v3829_v5 = vpop.eup %3828  ;;  %v3292_v43 = vmul.f32 %v3827_v10, %v3280_v21  ;;  %v3278_v28 = vsub.f32 %v3270_v9, %v3274_v36 }
 0xf6b   :  { %v3291_v11 = vmul.f32 %v3829_v5, %v3279_v45  ;;  %v3277_v31 = vsub.f32 %v3269_v19, %v3273_v57 }
 0xf6c   :  { %v3286_v59 = vadd.f32 1e-05, %v3278_v28  ;;  %v3296_v29 = vmul.f32 %v3375_v63, %v3292_v43 }
 0xf6d   :  { %v3285_v56 = vadd.f32 1e-05, %v3277_v31  ;;  %v3295_v55 = vmul.f32 %v3375_v63, %v3291_v11 }
 0xf6e   :  { %3830 = vrsqrt.f32 %v3286_v59  ;;  %v3300_v37 = vadd.f32 %v3376_v32, %v3296_v29 }
 0xf6f   :  { %3832 = vrsqrt.f32 %v3285_v56  ;;  %v3299_v1 = vadd.f32 %v3376_v32, %v3295_v55 }
 0xf70   :  { %3304 = vst.msk [vmem:[#allocation2 + $0x8] sm:$0xff] %vm71_vm0, %v3300_v37 }
 0xf71   :  { %3303 = vst.msk [vmem:[#allocation2] sm:$0xff] %vm71_vm0, %v3299_v1 }
 0xf78   :  { %v3831_v35 = vpop.eup %3830 }
 0xf79   :  { %v3833_v58 = vpop.eup %3832  ;;  %v3294_v25 = vmul.f32 %v3831_v35, %v3282_v47 }
 0xf7a   :  { %v3293_v50 = vmul.f32 %v3833_v58, %v3281_v46 }
 0xf7b   :  { %v3298_v49 = vmul.f32 %v3375_v63, %v3294_v25 }
 0xf7c   :  { %v3297_v18 = vmul.f32 %v3375_v63, %v3293_v50 }
 0xf7d   :  { %v3302_v17 = vadd.f32 %v3376_v32, %v3298_v49 }
 0xf7e   :  { %v3301_v12 = vadd.f32 %v3376_v32, %v3297_v18 }
 0xf7f   :  { %3306 = vst.msk [vmem:[#allocation2 + $0x18] sm:$0xff] %vm71_vm0, %v3302_v17 }
 0xf80   :  { %3305 = vst.msk [vmem:[#allocation2 + $0x10] sm:$0xff] %vm71_vm0, %v3301_v12 }
 0xf81   :  { %3851 = shalt.err (!%p3848_p4)
}
 0xf82   :  { %s3852_s11 = scalar_lea.hbm %s5033_s9, 512 }
 0xf83   :  { %p3853_p5 = scmp.ne.s32.totalorder %s5033_s9, %s3852_s11  ;;  %p3856_p6 = scmp.lt.u32.totalorder %s3852_s11, %s5033_s9 }
 0xf85   :  { %p3858_p7 = pnand %p3856_p6, %p3853_p5 }
 0xf87   :  { %3861 = shalt.err (!%p3858_p7)
}
 0xf88   :  { %s3865_s15 = smov 128   ;;  %s3866_s5 = smov 8  }
 0xf89   :  { %3318 = dma.vmem_to_hbm [thread:$0]  %s3313_s29, 512, %s5033_s9, [#allocation3], %s3865_s15, %s3865_s15, %s3866_s5  }
 0xf8a   :  { %3862 = dma.done.wait [#allocation3], 512  }
 0xf8b   :  { %3863 = vsyncadd [#allocation3], 4294966784 }
 0xf8c   :  { %3322 = vsyncpa [#allocation3], 1 }

</bundles_post_ra>
